<compile_context>
chip_gen: v7x
topology: tpu7x:2x2x1
jax: 0.10.0
libtpu: 0.0.40
codegen_flags: <defaults>
</compile_context>

<pallas_src>
import functools

import jax
import jax.numpy as jnp
from jax import lax
from jax.experimental import pallas as pl
from jax.experimental.pallas import tpu as pltpu


# ----------------------------------------------------------------------------
# Synthetic module_defs (what parse_model_config(config_path) would return).
# ----------------------------------------------------------------------------
MODULE_DEFS = [
    {'type': 'net', 'channels': '4', 'height': '16'},
    {'type': 'convolutional', 'batch_normalize': '1', 'filters': '8',  'size': '3', 'stride': '1', 'activation': 'leaky'},   # L0  (N,8,16,16)
    {'type': 'maxpool', 'size': '2', 'stride': '1'},                                                                          # L1  (N,8,16,16)
    {'type': 'convolutional', 'batch_normalize': '1', 'filters': '16', 'size': '3', 'stride': '2', 'activation': 'leaky'},   # L2  (N,16,8,8)
    {'type': 'convolutional', 'batch_normalize': '1', 'filters': '16', 'size': '3', 'stride': '1', 'activation': 'leaky'},   # L3  (N,16,8,8)
    {'type': 'shortcut', 'from': '-2', 'activation': 'linear'},                                                               # L4  (N,16,8,8)
    {'type': 'convolutional', 'batch_normalize': '1', 'filters': '32', 'size': '3', 'stride': '2', 'activation': 'leaky'},   # L5  (N,32,4,4)
    {'type': 'convolutional', 'batch_normalize': '0', 'filters': '14', 'size': '1', 'stride': '1', 'activation': 'linear'},  # L6  (N,14,4,4)
    {'type': 'yolo', 'mask': '0,1', 'anchors': '10,14, 23,27, 37,58', 'classes': '2'},                                        # L7  (N,32,7)
    {'type': 'route', 'layers': '-3'},                                                                                        # L8  -> L5
    {'type': 'upsample', 'stride': '2'},                                                                                      # L9  (N,32,8,8)
    {'type': 'route', 'layers': '-1,-7'},                                                                                     # L10 (N,48,8,8)
    {'type': 'convolutional', 'batch_normalize': '1', 'filters': '32', 'size': '3', 'stride': '1', 'activation': 'leaky'},   # L11 (N,32,8,8)
    {'type': 'convolutional', 'batch_normalize': '0', 'filters': '14', 'size': '1', 'stride': '1', 'activation': 'linear'},  # L12 (N,14,8,8)
    {'type': 'yolo', 'mask': '1,2', 'anchors': '10,14, 23,27, 37,58', 'classes': '2'},                                        # L13 (N,128,7)
]

_LANE = 128        # lane width: pad K / F to multiples of this for dense MXU/stores
_TM_MAX = 512      # M-tile; 2x(TM*Kp bf16 + TM*Fp f32) stays well under VMEM budgets
_VMEM_SPEC = pl.BlockSpec(memory_space=pltpu.MemorySpace.VMEM)


def _round_up(v, m):
    return (v + m - 1) // m * m


# ----------------------------------------------------------------------------
# Pallas kernels
# ----------------------------------------------------------------------------
def _conv_bias_act_kernel(p_ref, w_ref, b_ref, o_ref, *, leaky):
    # p_ref: (TM, Kp) bf16 im2col patches, w_ref: (Kp, Fp) bf16 with the folded
    # BN scale already multiplied into the columns, b_ref: (1, Fp) f32 bias.
    # Lane-dense (Fp multiple of 128) f32 store.
    y = jnp.dot(p_ref[...], w_ref[...], preferred_element_type=jnp.float32)
    y = y + b_ref[...]
    if leaky:
        y = jnp.where(y > 0, y, 0.1 * y)
    o_ref[...] = y


def _yolo_decode_kernel(p_ref, o_ref, *, g, num_anchors, stride, anchors_scaled):
    # p_ref: (M, D) raw head logits, row index == (((n*A + a)*g + gy)*g + gx).
    # Grid offsets and scaled anchors are derived in-kernel from the row iota
    # (float arithmetic is exact for these small integers) -- no aux tensor.
    p = p_ref[...]
    row = lax.broadcasted_iota(jnp.int32, p.shape, 0).astype(jnp.float32)
    col = lax.broadcasted_iota(jnp.int32, p.shape, 1)
    gf = float(g)
    gg = gf * gf
    cell = row - jnp.floor(row / gg) * gg                      # row % (g*g)
    gy = jnp.floor(cell / gf)
    gx = cell - gy * gf
    a_idx = jnp.floor(row / gg)
    a_idx = a_idx - jnp.floor(a_idx / num_anchors) * num_anchors  # anchor % A
    aw = jnp.full_like(p, anchors_scaled[0][0])
    ah = jnp.full_like(p, anchors_scaled[0][1])
    for ai in range(1, num_anchors):
        sel = a_idx == float(ai)
        aw = jnp.where(sel, anchors_scaled[ai][0], aw)
        ah = jnp.where(sel, anchors_scaled[ai][1], ah)
    sig = 1.0 / (1.0 + jnp.exp(-p))
    ewh = jnp.exp(jnp.where((col >= 2) & (col < 4), p, jnp.zeros_like(p)))
    xy = (sig + jnp.where(col == 0, gx, gy)) * stride           # box center
    wh = ewh * jnp.where(col == 2, aw, ah) * stride             # box size
    o_ref[...] = jnp.where(col < 2, xy, jnp.where(col < 4, wh, sig))


# ----------------------------------------------------------------------------
# Conv (+folded BN) (+LeakyReLU) on NHWC activations
# ----------------------------------------------------------------------------
def conv_bn_act_pallas(x, weight, scale, bias, stride, pad, leaky):
    """x: (N, H, W, C) NHWC; weight: (F, C, kh, kw) PyTorch layout."""
    N, H, W, C = x.shape
    F_, Cw, kh, kw = weight.shape
    assert Cw == C
    OH = (H + 2 * pad - kh) // stride + 1
    OW = (W + 2 * pad - kw) // stride + 1

    # im2col in NHWC: pure slicing + channel concat; row order == (n, oh, ow),
    # so no transpose is needed before or after the matmul.
    xp = jnp.pad(x, ((0, 0), (pad, pad), (pad, pad), (0, 0)))
    cols = []
    for i in range(kh):
        for j in range(kw):
            cols.append(xp[:, i:i + stride * OH:stride, j:j + stride * OW:stride, :])
    patches = jnp.concatenate(cols, axis=-1) if len(cols) > 1 else cols[0]
    M = N * OH * OW
    K = kh * kw * C
    patches = patches.reshape(M, K)

    Kp = _round_up(K, _LANE)
    Fp = _round_up(F_, _LANE)

    # Fold BN scale into the weight columns; zero-pad to lane-dense (Kp, Fp).
    # Padded bias/weight columns stay zero so padded output channels are exactly
    # zero (leaky(0)=0) and are sliced off below.
    w2d = weight.transpose(2, 3, 1, 0).reshape(K, F_) * scale[None, :]
    w_p = jnp.zeros((Kp, Fp), jnp.float32).at[:K, :F_].set(w2d).astype(jnp.bfloat16)
    b_p = jnp.zeros((1, Fp), jnp.float32).at[:, :F_].set(bias.reshape(1, F_))
    p_p = jnp.pad(patches, ((0, 0), (0, Kp - K))).astype(jnp.bfloat16)

    TM = M if M <= _TM_MAX else _TM_MAX
    grid = (pl.cdiv(M, TM),)

    cost = pl.CostEstimate(
        flops=2 * M * Kp * Fp,
        transcendentals=0,
        bytes_accessed=M * Kp * 2 + Kp * Fp * 2 + Fp * 4 + M * Fp * 4)

    out = pl.pallas_call(
        functools.partial(_conv_bias_act_kernel, leaky=leaky),
        out_shape=jax.ShapeDtypeStruct((M, Fp), jnp.float32),
        grid=grid,
        in_specs=[
            pl.BlockSpec((TM, Kp), lambda i: (i, 0)),
            pl.BlockSpec((Kp, Fp), lambda i: (0, 0)),
            pl.BlockSpec((1, Fp), lambda i: (0, 0)),
        ],
        out_specs=pl.BlockSpec((TM, Fp), lambda i: (i, 0)),
        compiler_params=pltpu.CompilerParams(
            dimension_semantics=("parallel",),
            vmem_limit_bytes=32 * 1024 * 1024),
        cost_estimate=cost,
    )(p_p, w_p, b_p)

    return out[:, :F_].reshape(N, OH, OW, F_)     # stays NHWC


# ----------------------------------------------------------------------------
# YOLO detection head decode (inference path, targets=None)
# ----------------------------------------------------------------------------
def yolo_layer_pallas(x_nhwc, anchors, num_classes, img_dim):
    N, g, _, _ = x_nhwc.shape
    A = len(anchors)
    D = num_classes + 5
    stride = img_dim / g
    # (N, g, g, A*D) -> (N, A, g, g, D) -> (M, D); same row order as the PyTorch
    # view(N, A, D, g, g).permute(0, 1, 3, 4, 2) path.
    pred = x_nhwc.reshape(N, g, g, A, D).transpose(0, 3, 1, 2, 4)
    M = N * A * g * g
    pred2 = pred.reshape(M, D).astype(jnp.float32)
    anchors_scaled = tuple((float(a[0]) / stride, float(a[1]) / stride) for a in anchors)

    out = pl.pallas_call(
        functools.partial(_yolo_decode_kernel, g=g, num_anchors=A,
                          stride=float(stride), anchors_scaled=anchors_scaled),
        out_shape=jax.ShapeDtypeStruct((M, D), jnp.float32),
        in_specs=[_VMEM_SPEC],
        out_specs=_VMEM_SPEC,
    )(pred2)
    return out.reshape(N, A * g * g, D)


# ----------------------------------------------------------------------------
# Deterministic parameter init (shapes follow create_modules / nn.Conv2d / BN)
# ----------------------------------------------------------------------------
def init_params(module_defs, key):
    hyper = module_defs[0]
    out_ch = [int(hyper['channels'])]
    params = []
    for mdef in module_defs[1:]:
        p = None
        if mdef['type'] == 'convolutional':
            bn = int(mdef['batch_normalize'])
            f = int(mdef['filters'])
            k = int(mdef['size'])
            cin = out_ch[-1]
            key, k1, k2, k3, k4, k5 = jax.random.split(key, 6)
            w = 0.1 * jax.random.normal(k1, (f, cin, k, k), jnp.float32)
            if bn:  # eval-mode BN folded into (scale, bias)
                gamma = 1.0 + 0.1 * jax.random.normal(k2, (f,), jnp.float32)
                beta = 0.1 * jax.random.normal(k3, (f,), jnp.float32)
                rmean = 0.1 * jax.random.normal(k4, (f,), jnp.float32)
                rvar = 1.0 + 0.1 * jnp.abs(jax.random.normal(k5, (f,), jnp.float32))
                scale = gamma / jnp.sqrt(rvar + 1e-5)
                bias = beta - rmean * scale
            else:   # conv bias, no BN
                scale = jnp.ones((f,), jnp.float32)
                bias = 0.1 * jax.random.normal(k2, (f,), jnp.float32)
            p = {'w': w, 'scale': scale, 'bias': bias}
            out_ch.append(f)
        elif mdef['type'] == 'route':
            layers = [int(v) for v in mdef['layers'].split(',')]
            out_ch.append(sum(out_ch[1:][i] for i in layers))
        elif mdef['type'] == 'shortcut':
            out_ch.append(out_ch[1:][int(mdef['from'])])
        else:  # maxpool / upsample / yolo keep channel count for bookkeeping
            out_ch.append(out_ch[-1])
        params.append(p)
    return params


# ----------------------------------------------------------------------------
# Darknet.forward (inference path, targets=None), activations kept NHWC
# ----------------------------------------------------------------------------
def darknet_forward(module_defs, params, x_nchw):
    img_dim = x_nchw.shape[2]
    x = x_nchw.transpose(0, 2, 3, 1)           # single NCHW -> NHWC conversion
    layer_outputs, yolo_outputs = [], []
    for mdef, p in zip(module_defs[1:], params):
        t = mdef['type']
        if t == 'convolutional':
            k = int(mdef['size']); s = int(mdef['stride'])
            pad = (k - 1) // 2
            leaky = mdef['activation'] == 'leaky'
            x = conv_bn_act_pallas(x, p['w'], p['scale'], p['bias'], s, pad, leaky)
        elif t == 'maxpool':
            k = int(mdef['size']); s = int(mdef['stride'])
            pad = (k - 1) // 2
            if k == 2 and s == 1:   # mirrors the nn.ZeroPad2d((0,1,0,1)) debug path
                xp = jnp.pad(x, ((0, 0), (0, 1), (0, 1), (0, 0)))
            else:
                xp = jnp.pad(x, ((0, 0), (pad, pad), (pad, pad), (0, 0)),
                             constant_values=-jnp.inf)
            H, W = xp.shape[1], xp.shape[2]
            OH = (H - k) // s + 1
            OW = (W - k) // s + 1
            m = None
            for i in range(k):
                for j in range(k):
                    v = xp[:, i:i + s * OH:s, j:j + s * OW:s, :]
                    m = v if m is None else jnp.maximum(m, v)
            x = m
        elif t == 'upsample':
            sf = int(mdef['stride'])
            x = jnp.repeat(jnp.repeat(x, sf, axis=1), sf, axis=2)   # nearest
        elif t == 'route':
            x = jnp.concatenate(
                [layer_outputs[int(li)] for li in mdef['layers'].split(',')], axis=-1)
        elif t == 'shortcut':
            # TODO(synk): not fused into the preceding conv epilogue because the
            # later route (-7) also consumes the pre-shortcut conv output, so
            # both tensors must be materialized anyway.
            x = layer_outputs[-1] + layer_outputs[int(mdef['from'])]
        elif t == 'yolo':
            mask = [int(v) for v in mdef['mask'].split(',')]
            av = [int(v) for v in mdef['anchors'].split(',')]
            anchors = [(av[i], av[i + 1]) for i in range(0, len(av), 2)]
            anchors = [anchors[i] for i in mask]
            nc = int(mdef['classes'])
            x = yolo_layer_pallas(x, anchors, nc, img_dim)
            yolo_outputs.append(x)
        layer_outputs.append(x)
    # TODO(synk): training branch (build_targets + losses) not implemented; this
    # reproduces the targets=None inference path only.
    return jnp.concatenate(yolo_outputs, axis=1)


if __name__ == "__main__":
    key = jax.random.PRNGKey(0)
    pkey, xkey = jax.random.split(key)
    params = init_params(MODULE_DEFS, pkey)
    x = jax.random.normal(xkey, (2, 4, 16, 16), jnp.float32)   # NCHW

    fwd = jax.jit(lambda inp: darknet_forward(MODULE_DEFS, params, inp))
    out = fwd(x)
    jax.block_until_ready(out)

    # grid 4 head: 2 anchors * 16 cells = 32 boxes; grid 8 head: 2 * 64 = 128.
    assert out.shape == (2, 160, 7), out.shape
    assert bool(jnp.all(jnp.isfinite(out)))
    print("KERNEL_OK")
</pallas_src>

<mosaic_0001>
module attributes {stable_mosaic.version = 11 : i64} {
  func.func @_conv_bias_act_kernel(%arg0: i32, %arg1: memref<512x128xbf16, #tpu.memory_space<vmem>>, %arg2: memref<128x128xbf16, #tpu.memory_space<vmem>>, %arg3: memref<1x128xf32, #tpu.memory_space<vmem>>, %arg4: memref<512x128xf32, #tpu.memory_space<vmem>>) attributes {dimension_semantics = [#tpu.dimension_semantics<parallel>], iteration_bounds = array<i64: 1>, scalar_prefetch = 0 : i64, scratch_operands = 0 : i64, tpu.core_type = #tpu.core_type<tc>, window_params = [{transform_indices = @transform_0, window_bounds = array<i64: 512, 128>}, {pipeline_mode = #tpu.pipeline_mode<synchronous>, transform_indices = @transform_1, window_bounds = array<i64: 128, 128>}, {pipeline_mode = #tpu.pipeline_mode<synchronous>, transform_indices = @transform_2, window_bounds = array<i64: 1, 128>}, {transform_indices = @transform_3, window_bounds = array<i64: 512, 128>}]} {
    %c0 = arith.constant 0 : index
    %c0_0 = arith.constant 0 : index
    %0 = vector.load %arg1[%c0, %c0_0] : memref<512x128xbf16, #tpu.memory_space<vmem>>, vector<512x128xbf16>
    %c0_1 = arith.constant 0 : index
    %c0_2 = arith.constant 0 : index
    %1 = vector.load %arg2[%c0_1, %c0_2] : memref<128x128xbf16, #tpu.memory_space<vmem>>, vector<128x128xbf16>
    %cst = arith.constant dense<0.000000e+00> : vector<512x128xf32>
    %2 = tpu.matmul %0, %1, %cst {dimension_numbers = #tpu.dot_dimension_numbers<[1], [0], [0], [1], [0, 0, 1, 1], [], []>} : vector<512x128xbf16>, vector<128x128xbf16>, vector<512x128xf32> -> vector<512x128xf32>
    %c0_3 = arith.constant 0 : index
    %c0_4 = arith.constant 0 : index
    %3 = vector.load %arg3[%c0_3, %c0_4] : memref<1x128xf32, #tpu.memory_space<vmem>>, vector<1x128xf32>
    %4 = vector.broadcast %3 : vector<1x128xf32> to vector<512x128xf32>
    %5 = arith.addf %2, %4 : vector<512x128xf32>
    %cst_5 = arith.constant 0.000000e+00 : f32
    %6 = vector.broadcast %cst_5 : f32 to vector<512x128xf32>
    %7 = arith.cmpf ogt, %5, %6 : vector<512x128xf32>
    %cst_6 = arith.constant 1.000000e-01 : f32
    %8 = vector.broadcast %cst_6 : f32 to vector<512x128xf32>
    %9 = arith.mulf %8, %5 : vector<512x128xf32>
    %10 = arith.select %7, %5, %9 : vector<512x128xi1>, vector<512x128xf32>
    %c0_7 = arith.constant 0 : index
    %c0_8 = arith.constant 0 : index
    %11 = vector.load %arg4[%c0_7, %c0_8] : memref<512x128xf32, #tpu.memory_space<vmem>>, vector<512x128xf32>
    tpu.vector_store %arg4[%c0_7, %c0_8], %10 {strides = array<i32>} : memref<512x128xf32, #tpu.memory_space<vmem>>, vector<512x128xf32>,
    return
  }
  func.func @transform_0(%arg0: i32) -> (i32, i32) {
    %c0_i32 = arith.constant 0 : i32
    %c0_i32_0 = arith.constant 0 : i32
    return %arg0, %c0_i32 : i32, i32
  }
  func.func @transform_1(%arg0: i32) -> (i32, i32) {
    %c0_i32 = arith.constant 0 : i32
    %c0_i32_0 = arith.constant 0 : i32
    %c0_i32_1 = arith.constant 0 : i32
    return %c0_i32, %c0_i32_0 : i32, i32
  }
  func.func @transform_2(%arg0: i32) -> (i32, i32) {
    %c0_i32 = arith.constant 0 : i32
    %c0_i32_0 = arith.constant 0 : i32
    %c0_i32_1 = arith.constant 0 : i32
    return %c0_i32, %c0_i32_0 : i32, i32
  }
  func.func @transform_3(%arg0: i32) -> (i32, i32) {
    %c0_i32 = arith.constant 0 : i32
    %c0_i32_0 = arith.constant 0 : i32
    return %arg0, %c0_i32 : i32, i32
  }
}

module attributes {stable_mosaic.version = 11 : i64} {
  func.func @_conv_bias_act_kernel(%arg0: i32, %arg1: memref<128x128xbf16, #tpu.memory_space<vmem>>, %arg2: memref<128x128xbf16, #tpu.memory_space<vmem>>, %arg3: memref<1x128xf32, #tpu.memory_space<vmem>>, %arg4: memref<128x128xf32, #tpu.memory_space<vmem>>) attributes {dimension_semantics = [#tpu.dimension_semantics<parallel>], iteration_bounds = array<i64: 1>, scalar_prefetch = 0 : i64, scratch_operands = 0 : i64, tpu.core_type = #tpu.core_type<tc>, window_params = [{transform_indices = @transform_0, window_bounds = array<i64: 128, 128>}, {pipeline_mode = #tpu.pipeline_mode<synchronous>, transform_indices = @transform_1, window_bounds = array<i64: 128, 128>}, {pipeline_mode = #tpu.pipeline_mode<synchronous>, transform_indices = @transform_2, window_bounds = array<i64: 1, 128>}, {transform_indices = @transform_3, window_bounds = array<i64: 128, 128>}]} {
    %c0 = arith.constant 0 : index
    %c0_0 = arith.constant 0 : index
    %0 = vector.load %arg1[%c0, %c0_0] : memref<128x128xbf16, #tpu.memory_space<vmem>>, vector<128x128xbf16>
    %c0_1 = arith.constant 0 : index
    %c0_2 = arith.constant 0 : index
    %1 = vector.load %arg2[%c0_1, %c0_2] : memref<128x128xbf16, #tpu.memory_space<vmem>>, vector<128x128xbf16>
    %cst = arith.constant dense<0.000000e+00> : vector<128x128xf32>
    %2 = tpu.matmul %0, %1, %cst {dimension_numbers = #tpu.dot_dimension_numbers<[1], [0], [0], [1], [0, 0, 1, 1], [], []>} : vector<128x128xbf16>, vector<128x128xbf16>, vector<128x128xf32> -> vector<128x128xf32>
    %c0_3 = arith.constant 0 : index
    %c0_4 = arith.constant 0 : index
    %3 = vector.load %arg3[%c0_3, %c0_4] : memref<1x128xf32, #tpu.memory_space<vmem>>, vector<1x128xf32>
    %4 = vector.broadcast %3 : vector<1x128xf32> to vector<128x128xf32>
    %5 = arith.addf %2, %4 : vector<128x128xf32>
    %cst_5 = arith.constant 0.000000e+00 : f32
    %6 = vector.broadcast %cst_5 : f32 to vector<128x128xf32>
    %7 = arith.cmpf ogt, %5, %6 : vector<128x128xf32>
    %cst_6 = arith.constant 1.000000e-01 : f32
    %8 = vector.broadcast %cst_6 : f32 to vector<128x128xf32>
    %9 = arith.mulf %8, %5 : vector<128x128xf32>
    %10 = arith.select %7, %5, %9 : vector<128x128xi1>, vector<128x128xf32>
    %c0_7 = arith.constant 0 : index
    %c0_8 = arith.constant 0 : index
    %11 = vector.load %arg4[%c0_7, %c0_8] : memref<128x128xf32, #tpu.memory_space<vmem>>, vector<128x128xf32>
    tpu.vector_store %arg4[%c0_7, %c0_8], %10 {strides = array<i32>} : memref<128x128xf32, #tpu.memory_space<vmem>>, vector<128x128xf32>,
    return
  }
  func.func @transform_0(%arg0: i32) -> (i32, i32) {
    %c0_i32 = arith.constant 0 : i32
    %c0_i32_0 = arith.constant 0 : i32
    return %arg0, %c0_i32 : i32, i32
  }
  func.func @transform_1(%arg0: i32) -> (i32, i32) {
    %c0_i32 = arith.constant 0 : i32
    %c0_i32_0 = arith.constant 0 : i32
    %c0_i32_1 = arith.constant 0 : i32
    return %c0_i32, %c0_i32_0 : i32, i32
  }
  func.func @transform_2(%arg0: i32) -> (i32, i32) {
    %c0_i32 = arith.constant 0 : i32
    %c0_i32_0 = arith.constant 0 : i32
    %c0_i32_1 = arith.constant 0 : i32
    return %c0_i32, %c0_i32_0 : i32, i32
  }
  func.func @transform_3(%arg0: i32) -> (i32, i32) {
    %c0_i32 = arith.constant 0 : i32
    %c0_i32_0 = arith.constant 0 : i32
    return %arg0, %c0_i32 : i32, i32
  }
}

module attributes {stable_mosaic.version = 11 : i64} {
  func.func @_conv_bias_act_kernel(%arg0: i32, %arg1: memref<128x256xbf16, #tpu.memory_space<vmem>>, %arg2: memref<256x128xbf16, #tpu.memory_space<vmem>>, %arg3: memref<1x128xf32, #tpu.memory_space<vmem>>, %arg4: memref<128x128xf32, #tpu.memory_space<vmem>>) attributes {dimension_semantics = [#tpu.dimension_semantics<parallel>], iteration_bounds = array<i64: 1>, scalar_prefetch = 0 : i64, scratch_operands = 0 : i64, tpu.core_type = #tpu.core_type<tc>, window_params = [{transform_indices = @transform_0, window_bounds = array<i64: 128, 256>}, {pipeline_mode = #tpu.pipeline_mode<synchronous>, transform_indices = @transform_1, window_bounds = array<i64: 256, 128>}, {pipeline_mode = #tpu.pipeline_mode<synchronous>, transform_indices = @transform_2, window_bounds = array<i64: 1, 128>}, {transform_indices = @transform_3, window_bounds = array<i64: 128, 128>}]} {
    %c0 = arith.constant 0 : index
    %c0_0 = arith.constant 0 : index
    %0 = vector.load %arg1[%c0, %c0_0] : memref<128x256xbf16, #tpu.memory_space<vmem>>, vector<128x256xbf16>
    %c0_1 = arith.constant 0 : index
    %c0_2 = arith.constant 0 : index
    %1 = vector.load %arg2[%c0_1, %c0_2] : memref<256x128xbf16, #tpu.memory_space<vmem>>, vector<256x128xbf16>
    %cst = arith.constant dense<0.000000e+00> : vector<128x128xf32>
    %2 = tpu.matmul %0, %1, %cst {dimension_numbers = #tpu.dot_dimension_numbers<[1], [0], [0], [1], [0, 0, 1, 1], [], []>} : vector<128x256xbf16>, vector<256x128xbf16>, vector<128x128xf32> -> vector<128x128xf32>
    %c0_3 = arith.constant 0 : index
    %c0_4 = arith.constant 0 : index
    %3 = vector.load %arg3[%c0_3, %c0_4] : memref<1x128xf32, #tpu.memory_space<vmem>>, vector<1x128xf32>
    %4 = vector.broadcast %3 : vector<1x128xf32> to vector<128x128xf32>
    %5 = arith.addf %2, %4 : vector<128x128xf32>
    %cst_5 = arith.constant 0.000000e+00 : f32
    %6 = vector.broadcast %cst_5 : f32 to vector<128x128xf32>
    %7 = arith.cmpf ogt, %5, %6 : vector<128x128xf32>
    %cst_6 = arith.constant 1.000000e-01 : f32
    %8 = vector.broadcast %cst_6 : f32 to vector<128x128xf32>
    %9 = arith.mulf %8, %5 : vector<128x128xf32>
    %10 = arith.select %7, %5, %9 : vector<128x128xi1>, vector<128x128xf32>
    %c0_7 = arith.constant 0 : index
    %c0_8 = arith.constant 0 : index
    %11 = vector.load %arg4[%c0_7, %c0_8] : memref<128x128xf32, #tpu.memory_space<vmem>>, vector<128x128xf32>
    tpu.vector_store %arg4[%c0_7, %c0_8], %10 {strides = array<i32>} : memref<128x128xf32, #tpu.memory_space<vmem>>, vector<128x128xf32>,
    return
  }
  func.func @transform_0(%arg0: i32) -> (i32, i32) {
    %c0_i32 = arith.constant 0 : i32
    %c0_i32_0 = arith.constant 0 : i32
    return %arg0, %c0_i32 : i32, i32
  }
  func.func @transform_1(%arg0: i32) -> (i32, i32) {
    %c0_i32 = arith.constant 0 : i32
    %c0_i32_0 = arith.constant 0 : i32
    %c0_i32_1 = arith.constant 0 : i32
    return %c0_i32, %c0_i32_0 : i32, i32
  }
  func.func @transform_2(%arg0: i32) -> (i32, i32) {
    %c0_i32 = arith.constant 0 : i32
    %c0_i32_0 = arith.constant 0 : i32
    %c0_i32_1 = arith.constant 0 : i32
    return %c0_i32, %c0_i32_0 : i32, i32
  }
  func.func @transform_3(%arg0: i32) -> (i32, i32) {
    %c0_i32 = arith.constant 0 : i32
    %c0_i32_0 = arith.constant 0 : i32
    return %arg0, %c0_i32 : i32, i32
  }
}

module attributes {stable_mosaic.version = 11 : i64} {
  func.func @_conv_bias_act_kernel(%arg0: i32, %arg1: memref<32x256xbf16, #tpu.memory_space<vmem>>, %arg2: memref<256x128xbf16, #tpu.memory_space<vmem>>, %arg3: memref<1x128xf32, #tpu.memory_space<vmem>>, %arg4: memref<32x128xf32, #tpu.memory_space<vmem>>) attributes {dimension_semantics = [#tpu.dimension_semantics<parallel>], iteration_bounds = array<i64: 1>, scalar_prefetch = 0 : i64, scratch_operands = 0 : i64, tpu.core_type = #tpu.core_type<tc>, window_params = [{transform_indices = @transform_0, window_bounds = array<i64: 32, 256>}, {pipeline_mode = #tpu.pipeline_mode<synchronous>, transform_indices = @transform_1, window_bounds = array<i64: 256, 128>}, {pipeline_mode = #tpu.pipeline_mode<synchronous>, transform_indices = @transform_2, window_bounds = array<i64: 1, 128>}, {transform_indices = @transform_3, window_bounds = array<i64: 32, 128>}]} {
    %c0 = arith.constant 0 : index
    %c0_0 = arith.constant 0 : index
    %0 = vector.load %arg1[%c0, %c0_0] : memref<32x256xbf16, #tpu.memory_space<vmem>>, vector<32x256xbf16>
    %c0_1 = arith.constant 0 : index
    %c0_2 = arith.constant 0 : index
    %1 = vector.load %arg2[%c0_1, %c0_2] : memref<256x128xbf16, #tpu.memory_space<vmem>>, vector<256x128xbf16>
    %cst = arith.constant dense<0.000000e+00> : vector<32x128xf32>
    %2 = tpu.matmul %0, %1, %cst {dimension_numbers = #tpu.dot_dimension_numbers<[1], [0], [0], [1], [0, 0, 1, 1], [], []>} : vector<32x256xbf16>, vector<256x128xbf16>, vector<32x128xf32> -> vector<32x128xf32>
    %c0_3 = arith.constant 0 : index
    %c0_4 = arith.constant 0 : index
    %3 = vector.load %arg3[%c0_3, %c0_4] : memref<1x128xf32, #tpu.memory_space<vmem>>, vector<1x128xf32>
    %4 = vector.broadcast %3 : vector<1x128xf32> to vector<32x128xf32>
    %5 = arith.addf %2, %4 : vector<32x128xf32>
    %cst_5 = arith.constant 0.000000e+00 : f32
    %6 = vector.broadcast %cst_5 : f32 to vector<32x128xf32>
    %7 = arith.cmpf ogt, %5, %6 : vector<32x128xf32>
    %cst_6 = arith.constant 1.000000e-01 : f32
    %8 = vector.broadcast %cst_6 : f32 to vector<32x128xf32>
    %9 = arith.mulf %8, %5 : vector<32x128xf32>
    %10 = arith.select %7, %5, %9 : vector<32x128xi1>, vector<32x128xf32>
    %c0_7 = arith.constant 0 : index
    %c0_8 = arith.constant 0 : index
    %11 = vector.load %arg4[%c0_7, %c0_8] : memref<32x128xf32, #tpu.memory_space<vmem>>, vector<32x128xf32>
    tpu.vector_store %arg4[%c0_7, %c0_8], %10 {strides = array<i32>} : memref<32x128xf32, #tpu.memory_space<vmem>>, vector<32x128xf32>,
    return
  }
  func.func @transform_0(%arg0: i32) -> (i32, i32) {
    %c0_i32 = arith.constant 0 : i32
    %c0_i32_0 = arith.constant 0 : i32
    return %arg0, %c0_i32 : i32, i32
  }
  func.func @transform_1(%arg0: i32) -> (i32, i32) {
    %c0_i32 = arith.constant 0 : i32
    %c0_i32_0 = arith.constant 0 : i32
    %c0_i32_1 = arith.constant 0 : i32
    return %c0_i32, %c0_i32_0 : i32, i32
  }
  func.func @transform_2(%arg0: i32) -> (i32, i32) {
    %c0_i32 = arith.constant 0 : i32
    %c0_i32_0 = arith.constant 0 : i32
    %c0_i32_1 = arith.constant 0 : i32
    return %c0_i32, %c0_i32_0 : i32, i32
  }
  func.func @transform_3(%arg0: i32) -> (i32, i32) {
    %c0_i32 = arith.constant 0 : i32
    %c0_i32_0 = arith.constant 0 : i32
    return %arg0, %c0_i32 : i32, i32
  }
}

module attributes {stable_mosaic.version = 11 : i64} {
  func.func @_conv_bias_act_kernel(%arg0: i32, %arg1: memref<128x512xbf16, #tpu.memory_space<vmem>>, %arg2: memref<512x128xbf16, #tpu.memory_space<vmem>>, %arg3: memref<1x128xf32, #tpu.memory_space<vmem>>, %arg4: memref<128x128xf32, #tpu.memory_space<vmem>>) attributes {dimension_semantics = [#tpu.dimension_semantics<parallel>], iteration_bounds = array<i64: 1>, scalar_prefetch = 0 : i64, scratch_operands = 0 : i64, tpu.core_type = #tpu.core_type<tc>, window_params = [{transform_indices = @transform_0, window_bounds = array<i64: 128, 512>}, {pipeline_mode = #tpu.pipeline_mode<synchronous>, transform_indices = @transform_1, window_bounds = array<i64: 512, 128>}, {pipeline_mode = #tpu.pipeline_mode<synchronous>, transform_indices = @transform_2, window_bounds = array<i64: 1, 128>}, {transform_indices = @transform_3, window_bounds = array<i64: 128, 128>}]} {
    %c0 = arith.constant 0 : index
    %c0_0 = arith.constant 0 : index
    %0 = vector.load %arg1[%c0, %c0_0] : memref<128x512xbf16, #tpu.memory_space<vmem>>, vector<128x512xbf16>
    %c0_1 = arith.constant 0 : index
    %c0_2 = arith.constant 0 : index
    %1 = vector.load %arg2[%c0_1, %c0_2] : memref<512x128xbf16, #tpu.memory_space<vmem>>, vector<512x128xbf16>
    %cst = arith.constant dense<0.000000e+00> : vector<128x128xf32>
    %2 = tpu.matmul %0, %1, %cst {dimension_numbers = #tpu.dot_dimension_numbers<[1], [0], [0], [1], [0, 0, 1, 1], [], []>} : vector<128x512xbf16>, vector<512x128xbf16>, vector<128x128xf32> -> vector<128x128xf32>
    %c0_3 = arith.constant 0 : index
    %c0_4 = arith.constant 0 : index
    %3 = vector.load %arg3[%c0_3, %c0_4] : memref<1x128xf32, #tpu.memory_space<vmem>>, vector<1x128xf32>
    %4 = vector.broadcast %3 : vector<1x128xf32> to vector<128x128xf32>
    %5 = arith.addf %2, %4 : vector<128x128xf32>
    %cst_5 = arith.constant 0.000000e+00 : f32
    %6 = vector.broadcast %cst_5 : f32 to vector<128x128xf32>
    %7 = arith.cmpf ogt, %5, %6 : vector<128x128xf32>
    %cst_6 = arith.constant 1.000000e-01 : f32
    %8 = vector.broadcast %cst_6 : f32 to vector<128x128xf32>
    %9 = arith.mulf %8, %5 : vector<128x128xf32>
    %10 = arith.select %7, %5, %9 : vector<128x128xi1>, vector<128x128xf32>
    %c0_7 = arith.constant 0 : index
    %c0_8 = arith.constant 0 : index
    %11 = vector.load %arg4[%c0_7, %c0_8] : memref<128x128xf32, #tpu.memory_space<vmem>>, vector<128x128xf32>
    tpu.vector_store %arg4[%c0_7, %c0_8], %10 {strides = array<i32>} : memref<128x128xf32, #tpu.memory_space<vmem>>, vector<128x128xf32>,
    return
  }
  func.func @transform_0(%arg0: i32) -> (i32, i32) {
    %c0_i32 = arith.constant 0 : i32
    %c0_i32_0 = arith.constant 0 : i32
    return %arg0, %c0_i32 : i32, i32
  }
  func.func @transform_1(%arg0: i32) -> (i32, i32) {
    %c0_i32 = arith.constant 0 : i32
    %c0_i32_0 = arith.constant 0 : i32
    %c0_i32_1 = arith.constant 0 : i32
    return %c0_i32, %c0_i32_0 : i32, i32
  }
  func.func @transform_2(%arg0: i32) -> (i32, i32) {
    %c0_i32 = arith.constant 0 : i32
    %c0_i32_0 = arith.constant 0 : i32
    %c0_i32_1 = arith.constant 0 : i32
    return %c0_i32, %c0_i32_0 : i32, i32
  }
  func.func @transform_3(%arg0: i32) -> (i32, i32) {
    %c0_i32 = arith.constant 0 : i32
    %c0_i32_0 = arith.constant 0 : i32
    return %arg0, %c0_i32 : i32, i32
  }
}

module attributes {stable_mosaic.version = 11 : i64} {
  func.func @_conv_bias_act_kernel(%arg0: i32, %arg1: memref<128x128xbf16, #tpu.memory_space<vmem>>, %arg2: memref<128x128xbf16, #tpu.memory_space<vmem>>, %arg3: memref<1x128xf32, #tpu.memory_space<vmem>>, %arg4: memref<128x128xf32, #tpu.memory_space<vmem>>) attributes {dimension_semantics = [#tpu.dimension_semantics<parallel>], iteration_bounds = array<i64: 1>, scalar_prefetch = 0 : i64, scratch_operands = 0 : i64, tpu.core_type = #tpu.core_type<tc>, window_params = [{transform_indices = @transform_0, window_bounds = array<i64: 128, 128>}, {pipeline_mode = #tpu.pipeline_mode<synchronous>, transform_indices = @transform_1, window_bounds = array<i64: 128, 128>}, {pipeline_mode = #tpu.pipeline_mode<synchronous>, transform_indices = @transform_2, window_bounds = array<i64: 1, 128>}, {transform_indices = @transform_3, window_bounds = array<i64: 128, 128>}]} {
    %c0 = arith.constant 0 : index
    %c0_0 = arith.constant 0 : index
    %0 = vector.load %arg1[%c0, %c0_0] : memref<128x128xbf16, #tpu.memory_space<vmem>>, vector<128x128xbf16>
    %c0_1 = arith.constant 0 : index
    %c0_2 = arith.constant 0 : index
    %1 = vector.load %arg2[%c0_1, %c0_2] : memref<128x128xbf16, #tpu.memory_space<vmem>>, vector<128x128xbf16>
    %cst = arith.constant dense<0.000000e+00> : vector<128x128xf32>
    %2 = tpu.matmul %0, %1, %cst {dimension_numbers = #tpu.dot_dimension_numbers<[1], [0], [0], [1], [0, 0, 1, 1], [], []>} : vector<128x128xbf16>, vector<128x128xbf16>, vector<128x128xf32> -> vector<128x128xf32>
    %c0_3 = arith.constant 0 : index
    %c0_4 = arith.constant 0 : index
    %3 = vector.load %arg3[%c0_3, %c0_4] : memref<1x128xf32, #tpu.memory_space<vmem>>, vector<1x128xf32>
    %4 = vector.broadcast %3 : vector<1x128xf32> to vector<128x128xf32>
    %5 = arith.addf %2, %4 : vector<128x128xf32>
    %c0_5 = arith.constant 0 : index
    %c0_6 = arith.constant 0 : index
    %6 = vector.load %arg4[%c0_5, %c0_6] : memref<128x128xf32, #tpu.memory_space<vmem>>, vector<128x128xf32>
    tpu.vector_store %arg4[%c0_5, %c0_6], %5 {strides = array<i32>} : memref<128x128xf32, #tpu.memory_space<vmem>>, vector<128x128xf32>,
    return
  }
  func.func @transform_0(%arg0: i32) -> (i32, i32) {
    %c0_i32 = arith.constant 0 : i32
    %c0_i32_0 = arith.constant 0 : i32
    return %arg0, %c0_i32 : i32, i32
  }
  func.func @transform_1(%arg0: i32) -> (i32, i32) {
    %c0_i32 = arith.constant 0 : i32
    %c0_i32_0 = arith.constant 0 : i32
    %c0_i32_1 = arith.constant 0 : i32
    return %c0_i32, %c0_i32_0 : i32, i32
  }
  func.func @transform_2(%arg0: i32) -> (i32, i32) {
    %c0_i32 = arith.constant 0 : i32
    %c0_i32_0 = arith.constant 0 : i32
    %c0_i32_1 = arith.constant 0 : i32
    return %c0_i32, %c0_i32_0 : i32, i32
  }
  func.func @transform_3(%arg0: i32) -> (i32, i32) {
    %c0_i32 = arith.constant 0 : i32
    %c0_i32_0 = arith.constant 0 : i32
    return %arg0, %c0_i32 : i32, i32
  }
}

module attributes {stable_mosaic.version = 11 : i64} {
  func.func @_yolo_decode_kernel(%arg0: memref<256x7xf32, #tpu.memory_space<vmem>>, %arg1: memref<256x7xf32, #tpu.memory_space<vmem>>) attributes {dimension_semantics = [], scalar_prefetch = 0 : i64, scratch_operands = 0 : i64, tpu.core_type = #tpu.core_type<tc>} {
    %c0 = arith.constant 0 : index
    %c0_0 = arith.constant 0 : index
    %0 = vector.load %arg0[%c0, %c0_0] : memref<256x7xf32, #tpu.memory_space<vmem>>, vector<256x7xf32>
    %1 = tpu.iota {dimensions = array<i32: 0>} : vector<256x7xi32>
    %2 = arith.sitofp %1 : vector<256x7xi32> to vector<256x7xf32>
    %3 = tpu.iota {dimensions = array<i32: 1>} : vector<256x7xi32>
    %cst = arith.constant 6.400000e+01 : f32
    %4 = vector.broadcast %cst : f32 to vector<256x7xf32>
    %5 = arith.divf %2, %4 : vector<256x7xf32>
    %6 = math.floor %5 : vector<256x7xf32>
    %cst_1 = arith.constant 6.400000e+01 : f32
    %7 = vector.broadcast %cst_1 : f32 to vector<256x7xf32>
    %8 = arith.mulf %6, %7 : vector<256x7xf32>
    %9 = arith.subf %2, %8 : vector<256x7xf32>
    %cst_2 = arith.constant 8.000000e+00 : f32
    %10 = vector.broadcast %cst_2 : f32 to vector<256x7xf32>
    %11 = arith.divf %9, %10 : vector<256x7xf32>
    %12 = math.floor %11 : vector<256x7xf32>
    %cst_3 = arith.constant 8.000000e+00 : f32
    %13 = vector.broadcast %cst_3 : f32 to vector<256x7xf32>
    %14 = arith.mulf %12, %13 : vector<256x7xf32>
    %15 = arith.subf %9, %14 : vector<256x7xf32>
    %cst_4 = arith.constant 6.400000e+01 : f32
    %16 = vector.broadcast %cst_4 : f32 to vector<256x7xf32>
    %17 = arith.divf %2, %16 : vector<256x7xf32>
    %18 = math.floor %17 : vector<256x7xf32>
    %cst_5 = arith.constant 2.000000e+00 : f32
    %19 = vector.broadcast %cst_5 : f32 to vector<256x7xf32>
    %20 = arith.divf %18, %19 : vector<256x7xf32>
    %21 = math.floor %20 : vector<256x7xf32>
    %cst_6 = arith.constant 2.000000e+00 : f32
    %22 = vector.broadcast %cst_6 : f32 to vector<256x7xf32>
    %23 = arith.mulf %21, %22 : vector<256x7xf32>
    %24 = arith.subf %18, %23 : vector<256x7xf32>
    %cst_7 = arith.constant 1.150000e+01 : f32
    %25 = vector.broadcast %cst_7 : f32 to vector<256x7xf32>
    %cst_8 = arith.constant 1.350000e+01 : f32
    %26 = vector.broadcast %cst_8 : f32 to vector<256x7xf32>
    %cst_9 = arith.constant 1.000000e+00 : f32
    %27 = vector.broadcast %cst_9 : f32 to vector<256x7xf32>
    %28 = arith.cmpf oeq, %24, %27 : vector<256x7xf32>
    %cst_10 = arith.constant 1.850000e+01 : f32
    %29 = vector.broadcast %cst_10 : f32 to vector<256x7xf32>
    %30 = arith.select %28, %29, %25 : vector<256x7xi1>, vector<256x7xf32>
    %cst_11 = arith.constant 2.900000e+01 : f32
    %31 = vector.broadcast %cst_11 : f32 to vector<256x7xf32>
    %32 = arith.select %28, %31, %26 : vector<256x7xi1>, vector<256x7xf32>
    %cst_12 = arith.constant 0.000000e+00 : f32
    %33 = vector.broadcast %cst_12 : f32 to vector<256x7xf32>
    %34 = arith.subf %33, %0 : vector<256x7xf32>
    %35 = math.exp %34 : vector<256x7xf32>
    %cst_13 = arith.constant 1.000000e+00 : f32
    %36 = vector.broadcast %cst_13 : f32 to vector<256x7xf32>
    %37 = arith.addf %36, %35 : vector<256x7xf32>
    %cst_14 = arith.constant 1.000000e+00 : f32
    %38 = vector.broadcast %cst_14 : f32 to vector<256x7xf32>
    %39 = arith.divf %38, %37 : vector<256x7xf32>
    %c2_i32 = arith.constant 2 : i32
    %40 = vector.broadcast %c2_i32 : i32 to vector<256x7xi32>
    %41 = arith.cmpi sge, %3, %40 : vector<256x7xi32>
    %c4_i32 = arith.constant 4 : i32
    %42 = vector.broadcast %c4_i32 : i32 to vector<256x7xi32>
    %43 = arith.cmpi slt, %3, %42 : vector<256x7xi32>
    %44 = arith.andi %41, %43 : vector<256x7xi1>
    %cst_15 = arith.constant 0.000000e+00 : f32
    %45 = vector.broadcast %cst_15 : f32 to vector<256x7xf32>
    %46 = arith.select %44, %0, %45 : vector<256x7xi1>, vector<256x7xf32>
    %47 = math.exp %46 : vector<256x7xf32>
    %c0_i32 = arith.constant 0 : i32
    %48 = vector.broadcast %c0_i32 : i32 to vector<256x7xi32>
    %49 = arith.cmpi eq, %3, %48 : vector<256x7xi32>
    %50 = arith.select %49, %15, %12 : vector<256x7xi1>, vector<256x7xf32>
    %51 = arith.addf %39, %50 : vector<256x7xf32>
    %cst_16 = arith.constant 2.000000e+00 : f32
    %52 = vector.broadcast %cst_16 : f32 to vector<256x7xf32>
    %53 = arith.mulf %51, %52 : vector<256x7xf32>
    %c2_i32_17 = arith.constant 2 : i32
    %54 = vector.broadcast %c2_i32_17 : i32 to vector<256x7xi32>
    %55 = arith.cmpi eq, %3, %54 : vector<256x7xi32>
    %56 = arith.select %55, %30, %32 : vector<256x7xi1>, vector<256x7xf32>
    %57 = arith.mulf %47, %56 : vector<256x7xf32>
    %cst_18 = arith.constant 2.000000e+00 : f32
    %58 = vector.broadcast %cst_18 : f32 to vector<256x7xf32>
    %59 = arith.mulf %57, %58 : vector<256x7xf32>
    %c2_i32_19 = arith.constant 2 : i32
    %60 = vector.broadcast %c2_i32_19 : i32 to vector<256x7xi32>
    %61 = arith.cmpi slt, %3, %60 : vector<256x7xi32>
    %c4_i32_20 = arith.constant 4 : i32
    %62 = vector.broadcast %c4_i32_20 : i32 to vector<256x7xi32>
    %63 = arith.cmpi slt, %3, %62 : vector<256x7xi32>
    %64 = arith.select %63, %59, %39 : vector<256x7xi1>, vector<256x7xf32>
    %65 = arith.select %61, %53, %64 : vector<256x7xi1>, vector<256x7xf32>
    %c0_21 = arith.constant 0 : index
    %c0_22 = arith.constant 0 : index
    %66 = vector.load %arg1[%c0_21, %c0_22] : memref<256x7xf32, #tpu.memory_space<vmem>>, vector<256x7xf32>
    tpu.vector_store %arg1[%c0_21, %c0_22], %65 {strides = array<i32>} : memref<256x7xf32, #tpu.memory_space<vmem>>, vector<256x7xf32>,
    return
  }
}

module attributes {stable_mosaic.version = 11 : i64} {
  func.func @_conv_bias_act_kernel(%arg0: i32, %arg1: memref<32x128xbf16, #tpu.memory_space<vmem>>, %arg2: memref<128x128xbf16, #tpu.memory_space<vmem>>, %arg3: memref<1x128xf32, #tpu.memory_space<vmem>>, %arg4: memref<32x128xf32, #tpu.memory_space<vmem>>) attributes {dimension_semantics = [#tpu.dimension_semantics<parallel>], iteration_bounds = array<i64: 1>, scalar_prefetch = 0 : i64, scratch_operands = 0 : i64, tpu.core_type = #tpu.core_type<tc>, window_params = [{transform_indices = @transform_0, window_bounds = array<i64: 32, 128>}, {pipeline_mode = #tpu.pipeline_mode<synchronous>, transform_indices = @transform_1, window_bounds = array<i64: 128, 128>}, {pipeline_mode = #tpu.pipeline_mode<synchronous>, transform_indices = @transform_2, window_bounds = array<i64: 1, 128>}, {transform_indices = @transform_3, window_bounds = array<i64: 32, 128>}]} {
    %c0 = arith.constant 0 : index
    %c0_0 = arith.constant 0 : index
    %0 = vector.load %arg1[%c0, %c0_0] : memref<32x128xbf16, #tpu.memory_space<vmem>>, vector<32x128xbf16>
    %c0_1 = arith.constant 0 : index
    %c0_2 = arith.constant 0 : index
    %1 = vector.load %arg2[%c0_1, %c0_2] : memref<128x128xbf16, #tpu.memory_space<vmem>>, vector<128x128xbf16>
    %cst = arith.constant dense<0.000000e+00> : vector<32x128xf32>
    %2 = tpu.matmul %0, %1, %cst {dimension_numbers = #tpu.dot_dimension_numbers<[1], [0], [0], [1], [0, 0, 1, 1], [], []>} : vector<32x128xbf16>, vector<128x128xbf16>, vector<32x128xf32> -> vector<32x128xf32>
    %c0_3 = arith.constant 0 : index
    %c0_4 = arith.constant 0 : index
    %3 = vector.load %arg3[%c0_3, %c0_4] : memref<1x128xf32, #tpu.memory_space<vmem>>, vector<1x128xf32>
    %4 = vector.broadcast %3 : vector<1x128xf32> to vector<32x128xf32>
    %5 = arith.addf %2, %4 : vector<32x128xf32>
    %c0_5 = arith.constant 0 : index
    %c0_6 = arith.constant 0 : index
    %6 = vector.load %arg4[%c0_5, %c0_6] : memref<32x128xf32, #tpu.memory_space<vmem>>, vector<32x128xf32>
    tpu.vector_store %arg4[%c0_5, %c0_6], %5 {strides = array<i32>} : memref<32x128xf32, #tpu.memory_space<vmem>>, vector<32x128xf32>,
    return
  }
  func.func @transform_0(%arg0: i32) -> (i32, i32) {
    %c0_i32 = arith.constant 0 : i32
    %c0_i32_0 = arith.constant 0 : i32
    return %arg0, %c0_i32 : i32, i32
  }
  func.func @transform_1(%arg0: i32) -> (i32, i32) {
    %c0_i32 = arith.constant 0 : i32
    %c0_i32_0 = arith.constant 0 : i32
    %c0_i32_1 = arith.constant 0 : i32
    return %c0_i32, %c0_i32_0 : i32, i32
  }
  func.func @transform_2(%arg0: i32) -> (i32, i32) {
    %c0_i32 = arith.constant 0 : i32
    %c0_i32_0 = arith.constant 0 : i32
    %c0_i32_1 = arith.constant 0 : i32
    return %c0_i32, %c0_i32_0 : i32, i32
  }
  func.func @transform_3(%arg0: i32) -> (i32, i32) {
    %c0_i32 = arith.constant 0 : i32
    %c0_i32_0 = arith.constant 0 : i32
    return %arg0, %c0_i32 : i32, i32
  }
}

module attributes {stable_mosaic.version = 11 : i64} {
  func.func @_yolo_decode_kernel(%arg0: memref<64x7xf32, #tpu.memory_space<vmem>>, %arg1: memref<64x7xf32, #tpu.memory_space<vmem>>) attributes {dimension_semantics = [], scalar_prefetch = 0 : i64, scratch_operands = 0 : i64, tpu.core_type = #tpu.core_type<tc>} {
    %c0 = arith.constant 0 : index
    %c0_0 = arith.constant 0 : index
    %0 = vector.load %arg0[%c0, %c0_0] : memref<64x7xf32, #tpu.memory_space<vmem>>, vector<64x7xf32>
    %1 = tpu.iota {dimensions = array<i32: 0>} : vector<64x7xi32>
    %2 = arith.sitofp %1 : vector<64x7xi32> to vector<64x7xf32>
    %3 = tpu.iota {dimensions = array<i32: 1>} : vector<64x7xi32>
    %cst = arith.constant 1.600000e+01 : f32
    %4 = vector.broadcast %cst : f32 to vector<64x7xf32>
    %5 = arith.divf %2, %4 : vector<64x7xf32>
    %6 = math.floor %5 : vector<64x7xf32>
    %cst_1 = arith.constant 1.600000e+01 : f32
    %7 = vector.broadcast %cst_1 : f32 to vector<64x7xf32>
    %8 = arith.mulf %6, %7 : vector<64x7xf32>
    %9 = arith.subf %2, %8 : vector<64x7xf32>
    %cst_2 = arith.constant 4.000000e+00 : f32
    %10 = vector.broadcast %cst_2 : f32 to vector<64x7xf32>
    %11 = arith.divf %9, %10 : vector<64x7xf32>
    %12 = math.floor %11 : vector<64x7xf32>
    %cst_3 = arith.constant 4.000000e+00 : f32
    %13 = vector.broadcast %cst_3 : f32 to vector<64x7xf32>
    %14 = arith.mulf %12, %13 : vector<64x7xf32>
    %15 = arith.subf %9, %14 : vector<64x7xf32>
    %cst_4 = arith.constant 1.600000e+01 : f32
    %16 = vector.broadcast %cst_4 : f32 to vector<64x7xf32>
    %17 = arith.divf %2, %16 : vector<64x7xf32>
    %18 = math.floor %17 : vector<64x7xf32>
    %cst_5 = arith.constant 2.000000e+00 : f32
    %19 = vector.broadcast %cst_5 : f32 to vector<64x7xf32>
    %20 = arith.divf %18, %19 : vector<64x7xf32>
    %21 = math.floor %20 : vector<64x7xf32>
    %cst_6 = arith.constant 2.000000e+00 : f32
    %22 = vector.broadcast %cst_6 : f32 to vector<64x7xf32>
    %23 = arith.mulf %21, %22 : vector<64x7xf32>
    %24 = arith.subf %18, %23 : vector<64x7xf32>
    %cst_7 = arith.constant 2.500000e+00 : f32
    %25 = vector.broadcast %cst_7 : f32 to vector<64x7xf32>
    %cst_8 = arith.constant 3.500000e+00 : f32
    %26 = vector.broadcast %cst_8 : f32 to vector<64x7xf32>
    %cst_9 = arith.constant 1.000000e+00 : f32
    %27 = vector.broadcast %cst_9 : f32 to vector<64x7xf32>
    %28 = arith.cmpf oeq, %24, %27 : vector<64x7xf32>
    %cst_10 = arith.constant 5.750000e+00 : f32
    %29 = vector.broadcast %cst_10 : f32 to vector<64x7xf32>
    %30 = arith.select %28, %29, %25 : vector<64x7xi1>, vector<64x7xf32>
    %cst_11 = arith.constant 6.750000e+00 : f32
    %31 = vector.broadcast %cst_11 : f32 to vector<64x7xf32>
    %32 = arith.select %28, %31, %26 : vector<64x7xi1>, vector<64x7xf32>
    %cst_12 = arith.constant 0.000000e+00 : f32
    %33 = vector.broadcast %cst_12 : f32 to vector<64x7xf32>
    %34 = arith.subf %33, %0 : vector<64x7xf32>
    %35 = math.exp %34 : vector<64x7xf32>
    %cst_13 = arith.constant 1.000000e+00 : f32
    %36 = vector.broadcast %cst_13 : f32 to vector<64x7xf32>
    %37 = arith.addf %36, %35 : vector<64x7xf32>
    %cst_14 = arith.constant 1.000000e+00 : f32
    %38 = vector.broadcast %cst_14 : f32 to vector<64x7xf32>
    %39 = arith.divf %38, %37 : vector<64x7xf32>
    %c2_i32 = arith.constant 2 : i32
    %40 = vector.broadcast %c2_i32 : i32 to vector<64x7xi32>
    %41 = arith.cmpi sge, %3, %40 : vector<64x7xi32>
    %c4_i32 = arith.constant 4 : i32
    %42 = vector.broadcast %c4_i32 : i32 to vector<64x7xi32>
    %43 = arith.cmpi slt, %3, %42 : vector<64x7xi32>
    %44 = arith.andi %41, %43 : vector<64x7xi1>
    %cst_15 = arith.constant 0.000000e+00 : f32
    %45 = vector.broadcast %cst_15 : f32 to vector<64x7xf32>
    %46 = arith.select %44, %0, %45 : vector<64x7xi1>, vector<64x7xf32>
    %47 = math.exp %46 : vector<64x7xf32>
    %c0_i32 = arith.constant 0 : i32
    %48 = vector.broadcast %c0_i32 : i32 to vector<64x7xi32>
    %49 = arith.cmpi eq, %3, %48 : vector<64x7xi32>
    %50 = arith.select %49, %15, %12 : vector<64x7xi1>, vector<64x7xf32>
    %51 = arith.addf %39, %50 : vector<64x7xf32>
    %cst_16 = arith.constant 4.000000e+00 : f32
    %52 = vector.broadcast %cst_16 : f32 to vector<64x7xf32>
    %53 = arith.mulf %51, %52 : vector<64x7xf32>
    %c2_i32_17 = arith.constant 2 : i32
    %54 = vector.broadcast %c2_i32_17 : i32 to vector<64x7xi32>
    %55 = arith.cmpi eq, %3, %54 : vector<64x7xi32>
    %56 = arith.select %55, %30, %32 : vector<64x7xi1>, vector<64x7xf32>
    %57 = arith.mulf %47, %56 : vector<64x7xf32>
    %cst_18 = arith.constant 4.000000e+00 : f32
    %58 = vector.broadcast %cst_18 : f32 to vector<64x7xf32>
    %59 = arith.mulf %57, %58 : vector<64x7xf32>
    %c2_i32_19 = arith.constant 2 : i32
    %60 = vector.broadcast %c2_i32_19 : i32 to vector<64x7xi32>
    %61 = arith.cmpi slt, %3, %60 : vector<64x7xi32>
    %c4_i32_20 = arith.constant 4 : i32
    %62 = vector.broadcast %c4_i32_20 : i32 to vector<64x7xi32>
    %63 = arith.cmpi slt, %3, %62 : vector<64x7xi32>
    %64 = arith.select %63, %59, %39 : vector<64x7xi1>, vector<64x7xf32>
    %65 = arith.select %61, %53, %64 : vector<64x7xi1>, vector<64x7xf32>
    %c0_21 = arith.constant 0 : index
    %c0_22 = arith.constant 0 : index
    %66 = vector.load %arg1[%c0_21, %c0_22] : memref<64x7xf32, #tpu.memory_space<vmem>>, vector<64x7xf32>
    tpu.vector_store %arg1[%c0_21, %c0_22], %65 {strides = array<i32>} : memref<64x7xf32, #tpu.memory_space<vmem>>, vector<64x7xf32>,
    return
  }
}

</mosaic_0001>

<bundles_post_ra>
// kernel: _lambda_.9
= control target key start
LH: loop header
LB: loop body
LE: loop exit
PB: predicated region body
PF: predicated region fallthrough
CT: control target
= control target key end

     0   :  { %s1509_s1 = inlined_call_operand.vmem [shape: bf16[128,128], index: 1, kind: input, shape index: {}]   ;;  %s1510_s0 = inlined_call_operand.vmem [shape: bf16[512,128], index: 0, kind: input, shape index: {}]   ;;  %s1511_s2 = inlined_call_operand.vmem [shape: f32[1,128], index: 2, kind: input, shape index: {}]   ;;  %s1512_s3 = inlined_call_operand.vmem [shape: f32[512,128], index: 3, kind: output, shape index: {}]  }
   0x1   :  { %v1068_v0 = vld [vmem:[%s1509_s1] sm:$0xff]   ;;  %v1069_v1 = vld [vmem:[%s1509_s1 + $0x8] sm:$0xff]   ;;  %v1070_v2 = vld [vmem:[%s1509_s1 + $0x10] sm:$0xff]  }
   0x2   :  { %972 = vmatprep.subr.bf16.mxu0 %v1068_v0  ;;  %1052 = vmatprep.subr.bf16.mxu1 %v1068_v0  ;;  %v1071_v3 = vld [vmem:[%s1509_s1 + $0x18] sm:$0xff]   ;;  %v1076_v4 = vld [vmem:[%s1510_s0] sm:$0xff]   ;;  %v1073_v7 = vld [vmem:[%s1509_s1 + $0x28] sm:$0xff]  }
   0x3   :  { %973 = vmatpush3.bf16.msra.mxu0 %v1068_v0  ;;  %1060 = vmatpush3.bf16.msra.mxu1 %v1068_v0  ;;  %v1077_v5 = vld [vmem:[%s1510_s0 + $0x80] sm:$0xff]   ;;  %v1074_v8 = vld [vmem:[%s1509_s1 + $0x30] sm:$0xff]   ;;  %v1075_v9 = vld [vmem:[%s1509_s1 + $0x38] sm:$0xff]  }
   0x4   :  { %974 = vmatprep.subr.bf16.mxu0 %v1069_v1  ;;  %1053 = vmatprep.subr.bf16.mxu1 %v1069_v1  ;;  %v1072_v6 = vld [vmem:[%s1509_s1 + $0x20] sm:$0xff]   ;;  %v1078_v10 = vld [vmem:[%s1510_s0 + $0x8] sm:$0xff]   ;;  %v1080_v12 = vld [vmem:[%s1510_s0 + $0x10] sm:$0xff]  }
   0x5   :  { %988 = vmatprep.mubr.bf16.mxu0 %v1076_v4  ;;  %1020 = vmatprep.mubr.bf16.mxu1 %v1077_v5  ;;  %v1079_v11 = vld [vmem:[%s1510_s0 + $0x88] sm:$0xff]   ;;  %v1081_v13 = vld [vmem:[%s1510_s0 + $0x90] sm:$0xff]   ;;  %v1082_v14 = vld [vmem:[%s1510_s0 + $0x18] sm:$0xff]  }
   0x6   :  { %v1083_v15 = vld [vmem:[%s1510_s0 + $0x98] sm:$0xff]   ;;  %v1084_v16 = vld [vmem:[%s1510_s0 + $0x20] sm:$0xff]   ;;  %v1086_v18 = vld [vmem:[%s1510_s0 + $0x28] sm:$0xff]  }
   0x7   :  { %975 = vmatpush3.bf16.msra.mxu0 %v1069_v1  ;;  %1061 = vmatpush3.bf16.msra.mxu1 %v1069_v1  ;;  %v1085_v17 = vld [vmem:[%s1510_s0 + $0xa0] sm:$0xff]   ;;  %v1087_v19 = vld [vmem:[%s1510_s0 + $0xa8] sm:$0xff]   ;;  %v1088_v20 = vld [vmem:[%s1510_s0 + $0x30] sm:$0xff]  }
   0x8   :  { %976 = vmatprep.subr.bf16.mxu0 %v1070_v2  ;;  %1054 = vmatprep.subr.bf16.mxu1 %v1070_v2  ;;  %v1089_v21 = vld [vmem:[%s1510_s0 + $0xb0] sm:$0xff]   ;;  %v1090_v22 = vld [vmem:[%s1510_s0 + $0x38] sm:$0xff]   ;;  %v1092_v24 = vld [vmem:[%s1510_s0 + $0x40] sm:$0xff]  }
   0x9   :  { %v1091_v23 = vld [vmem:[%s1510_s0 + $0xb8] sm:$0xff]   ;;  %v1093_v25 = vld [vmem:[%s1510_s0 + $0xc0] sm:$0xff]   ;;  %v1094_v26 = vld [vmem:[%s1510_s0 + $0x48] sm:$0xff]  }
   0xa   :  { %v1095_v27 = vld [vmem:[%s1510_s0 + $0xc8] sm:$0xff]   ;;  %v1096_v28 = vld [vmem:[%s1510_s0 + $0x50] sm:$0xff]   ;;  %v1098_v30 = vld [vmem:[%s1510_s0 + $0x58] sm:$0xff]  }
   0xb   :  { %977 = vmatpush3.bf16.msra.mxu0 %v1070_v2  ;;  %1062 = vmatpush3.bf16.msra.mxu1 %v1070_v2  ;;  %v1097_v29 = vld [vmem:[%s1510_s0 + $0xd0] sm:$0xff]   ;;  %v1099_v31 = vld [vmem:[%s1510_s0 + $0xd8] sm:$0xff]   ;;  %v1100_v32 = vld [vmem:[%s1510_s0 + $0x60] sm:$0xff]  }
   0xc   :  { %978 = vmatprep.subr.bf16.mxu0 %v1071_v3  ;;  %1055 = vmatprep.subr.bf16.mxu1 %v1071_v3  ;;  %v1101_v33 = vld [vmem:[%s1510_s0 + $0xe0] sm:$0xff]   ;;  %v1102_v34 = vld [vmem:[%s1510_s0 + $0x68] sm:$0xff]   ;;  %v1104_v36 = vld [vmem:[%s1510_s0 + $0x70] sm:$0xff]  }
   0xd   :  { %v1103_v35 = vld [vmem:[%s1510_s0 + $0xe8] sm:$0xff]   ;;  %v1105_v37 = vld [vmem:[%s1510_s0 + $0xf0] sm:$0xff]   ;;  %v1106_v38 = vld [vmem:[%s1510_s0 + $0x78] sm:$0xff]  }
   0xe   :  { %v1107_v39 = vld [vmem:[%s1510_s0 + $0xf8] sm:$0xff]   ;;  %v1251_v40 = vld [vmem:[%s1511_s2] ss:$0 sm:$0xff] }
   0xf   :  { %979 = vmatpush3.bf16.msra.mxu0 %v1071_v3  ;;  %1063 = vmatpush3.bf16.msra.mxu1 %v1071_v3 }
  0x10   :  { %980 = vmatprep.subr.bf16.mxu0 %v1072_v6  ;;  %1056 = vmatprep.subr.bf16.mxu1 %v1072_v6 }
  0x13   :  { %981 = vmatpush3.bf16.msra.mxu0 %v1072_v6  ;;  %1064 = vmatpush3.bf16.msra.mxu1 %v1072_v6 }
  0x14   :  { %982 = vmatprep.subr.bf16.mxu0 %v1073_v7  ;;  %1057 = vmatprep.subr.bf16.mxu1 %v1073_v7 }
  0x17   :  { %983 = vmatpush3.bf16.msra.mxu0 %v1073_v7  ;;  %1065 = vmatpush3.bf16.msra.mxu1 %v1073_v7 }
  0x18   :  { %984 = vmatprep.subr.bf16.mxu0 %v1074_v8  ;;  %1058 = vmatprep.subr.bf16.mxu1 %v1074_v8 }
  0x1b   :  { %985 = vmatpush3.bf16.msra.mxu0 %v1074_v8  ;;  %1066 = vmatpush3.bf16.msra.mxu1 %v1074_v8 }
  0x1c   :  { %986 = vmatprep.subr.bf16.mxu0 %v1075_v9  ;;  %1059 = vmatprep.subr.bf16.mxu1 %v1075_v9 }
  0x1f   :  { %987 = vmatpush3.bf16.msra.mxu0 %v1075_v9  ;;  %1067 = vmatpush3.bf16.msra.mxu1 %v1075_v9 }
  0x22   :  { %989 = vmatmul.mubr.bf16.vlgmr.msra.gmra.mrb[0].mxu0 %v1078_v10  ;;  %1021 = vmatmul.mubr.bf16.vlgmr.msra.gmra.mrb[0].mxu1 %v1079_v11 }
  0x23   :  { %992 = vmatprep.mubr.bf16.mxu0 %v1080_v12  ;;  %1024 = vmatprep.mubr.bf16.mxu1 %v1081_v13 }
  0x2a   :  { %993 = vmatmul.mubr.bf16.gmra.mrb[4].mxu0 %v1082_v14  ;;  %1025 = vmatmul.mubr.bf16.gmra.mrb[4].mxu1 %v1083_v15 }
  0x2b   :  { %996 = vmatprep.mubr.bf16.mxu0 %v1084_v16  ;;  %1028 = vmatprep.mubr.bf16.mxu1 %v1085_v17 }
  0x32   :  { %997 = vmatmul.mubr.bf16.gmra.mrb[8].mxu0 %v1086_v18  ;;  %1029 = vmatmul.mubr.bf16.gmra.mrb[8].mxu1 %v1087_v19 }
  0x33   :  { %1000 = vmatprep.mubr.bf16.mxu0 %v1088_v20  ;;  %1032 = vmatprep.mubr.bf16.mxu1 %v1089_v21 }
  0x3a   :  { %1001 = vmatmul.mubr.bf16.gmra.mrb[12].mxu0 %v1090_v22  ;;  %1033 = vmatmul.mubr.bf16.gmra.mrb[12].mxu1 %v1091_v23 }
  0x3b   :  { %1004 = vmatprep.mubr.bf16.mxu0 %v1092_v24  ;;  %1036 = vmatprep.mubr.bf16.mxu1 %v1093_v25 }
  0x42   :  { %1005 = vmatmul.mubr.bf16.gmra.mrb[16].mxu0 %v1094_v26  ;;  %1037 = vmatmul.mubr.bf16.gmra.mrb[16].mxu1 %v1095_v27 }
  0x43   :  { %1008 = vmatprep.mubr.bf16.mxu0 %v1096_v28  ;;  %1040 = vmatprep.mubr.bf16.mxu1 %v1097_v29 }
  0x4a   :  { %1009 = vmatmul.mubr.bf16.gmra.mrb[20].mxu0 %v1098_v30  ;;  %1041 = vmatmul.mubr.bf16.gmra.mrb[20].mxu1 %v1099_v31 }
  0x4b   :  { %1012 = vmatprep.mubr.bf16.mxu0 %v1100_v32  ;;  %1044 = vmatprep.mubr.bf16.mxu1 %v1101_v33 }
  0x52   :  { %1013 = vmatmul.mubr.bf16.gmra.mrb[24].mxu0 %v1102_v34  ;;  %1045 = vmatmul.mubr.bf16.gmra.mrb[24].mxu1 %v1103_v35 }
  0x53   :  { %1016 = vmatprep.mubr.bf16.mxu0 %v1104_v36  ;;  %1048 = vmatprep.mubr.bf16.mxu1 %v1105_v37 }
  0x5a   :  { %1017 = vmatmul.mubr.bf16.gmra.mrb[28].mxu0 %v1106_v38  ;;  %1049 = vmatmul.mubr.bf16.gmra.mrb[28].mxu1 %v1107_v39 }
  0xf5   :  { %v990_v41 = vpop.f32.mrb[0].mxu0  ;;  %v1022_v42 = vpop.f32.mrb[0].mxu1 }
  0xf6   :  { %v385_v43 = vadd.f32 %v990_v41, %v1251_v40  ;;  %v513_v44 = vadd.f32 %v1022_v42, %v1251_v40  ;;  %v376_v45 = vpop.f32.mrb[1].mxu0  ;;  %v504_v46 = vpop.f32.mrb[1].mxu1 }
  0xf7   :  { %v377_v47 = vadd.f32 %v1251_v40, %v376_v45  ;;  %v505_v48 = vadd.f32 %v1251_v40, %v504_v46  ;;  %v991_v49 = vpop.f32.mrb[2].mxu0  ;;  %v1023_v50 = vpop.f32.mrb[2].mxu1 }
  0xf8   :  { %vm633_vm0 = vcmp.gt.f32.partialorder %v385_v43, 0.0  ;;  %v697_v51 = vmul.f32 0.1, %v385_v43  ;;  %vm665_vm1 = vcmp.gt.f32.partialorder %v513_v44, 0.0  ;;  %v729_v52 = vmul.f32 0.1, %v513_v44 }
  0xf9   :  { %vm631_vm2 = vcmp.gt.f32.partialorder %v377_v47, 0.0  ;;  %v695_v53 = vmul.f32 0.1, %v377_v47  ;;  %vm663_vm3 = vcmp.gt.f32.partialorder %v505_v48, 0.0  ;;  %v727_v54 = vmul.f32 0.1, %v505_v48 }
  0xfa   :  { %v761_v55 = vsel %vm633_vm0, %v385_v43, %v697_v51  ;;  %v793_v56 = vsel %vm665_vm1, %v513_v44, %v729_v52  ;;  %v388_v57 = vadd.f32 %v991_v49, %v1251_v40  ;;  %v516_v58 = vadd.f32 %v1023_v50, %v1251_v40  ;;  %v379_v59 = vpop.f32.mrb[3].mxu0  ;;  %v507_v60 = vpop.f32.mrb[3].mxu1 }
  0xfb   :  { %825 = vst [vmem:[%s1512_s3 + $0x10] sm:$0xff] %v761_v55  ;;  %857 = vst [vmem:[%s1512_s3 + $0x110] sm:$0xff] %v793_v56  ;;  %v759_v61 = vsel %vm631_vm2, %v377_v47, %v695_v53  ;;  %v791_v62 = vsel %vm663_vm3, %v505_v48, %v727_v54  ;;  %v380_v63 = vadd.f32 %v1251_v40, %v379_v59 }
  0xfc   :  { %v508_v0 = vadd.f32 %v1251_v40, %v507_v60  ;;  %823 = vst [vmem:[%s1512_s3] sm:$0xff] %v759_v61  ;;  %855 = vst [vmem:[%s1512_s3 + $0x100] sm:$0xff] %v791_v62  ;;  %vm634_vm4 = vcmp.gt.f32.partialorder %v388_v57, 0.0  ;;  %v698_v1 = vmul.f32 0.1, %v388_v57  ;;  %vm666_vm5 = vcmp.gt.f32.partialorder %v516_v58, 0.0 }
  0xfd   :  { %v730_v2 = vmul.f32 0.1, %v516_v58  ;;  %vm632_vm6 = vcmp.gt.f32.partialorder %v380_v63, 0.0  ;;  %v696_v3 = vmul.f32 0.1, %v380_v63  ;;  %v994_v7 = vpop.f32.mrb[4].mxu0 }
  0xfe   :  { %vm664_vm7 = vcmp.gt.f32.partialorder %v508_v0, 0.0  ;;  %v728_v4 = vmul.f32 0.1, %v508_v0  ;;  %v762_v5 = vsel %vm634_vm4, %v388_v57, %v698_v1  ;;  %v1026_v8 = vpop.f32.mrb[4].mxu1  ;;  %v401_v11 = vadd.f32 %v994_v7, %v1251_v40  ;;  %v392_v13 = vpop.f32.mrb[5].mxu0 }
  0xff   :  { %v794_v6 = vsel %vm666_vm5, %v516_v58, %v730_v2  ;;  %826 = vst [vmem:[%s1512_s3 + $0x18] sm:$0xff] %v762_v5  ;;  %v760_v9 = vsel %vm632_vm6, %v380_v63, %v696_v3  ;;  %v529_v12 = vadd.f32 %v1026_v8, %v1251_v40  ;;  %v520_v14 = vpop.f32.mrb[5].mxu1  ;;  %v393_v15 = vadd.f32 %v1251_v40, %v392_v13  ;;  %v995_v17 = vpop.f32.mrb[6].mxu0 }
 0x100   :  { %858 = vst [vmem:[%s1512_s3 + $0x118] sm:$0xff] %v794_v6  ;;  %v792_v10 = vsel %vm664_vm7, %v508_v0, %v728_v4  ;;  %824 = vst [vmem:[%s1512_s3 + $0x8] sm:$0xff] %v760_v9  ;;  %v521_v16 = vadd.f32 %v1251_v40, %v520_v14  ;;  %v1027_v18 = vpop.f32.mrb[6].mxu1  ;;  %vm637_vm8 = vcmp.gt.f32.partialorder %v401_v11, 0.0  ;;  %v701_v19 = vmul.f32 0.1, %v401_v11 }
 0x101   :  { %856 = vst [vmem:[%s1512_s3 + $0x108] sm:$0xff] %v792_v10  ;;  %vm669_vm9 = vcmp.gt.f32.partialorder %v529_v12, 0.0  ;;  %v733_v20 = vmul.f32 0.1, %v529_v12  ;;  %vm635_vm10 = vcmp.gt.f32.partialorder %v393_v15, 0.0  ;;  %v404_v25 = vadd.f32 %v995_v17, %v1251_v40  ;;  %v395_v27 = vpop.f32.mrb[7].mxu0 }
 0x102   :  { %v699_v21 = vmul.f32 0.1, %v393_v15  ;;  %vm667_vm11 = vcmp.gt.f32.partialorder %v521_v16, 0.0  ;;  %v731_v22 = vmul.f32 0.1, %v521_v16  ;;  %v765_v23 = vsel %vm637_vm8, %v401_v11, %v701_v19  ;;  %v523_v28 = vpop.f32.mrb[7].mxu1 }
 0x103   :  { %v797_v24 = vsel %vm669_vm9, %v529_v12, %v733_v20  ;;  %v532_v26 = vadd.f32 %v1027_v18, %v1251_v40  ;;  %829 = vst [vmem:[%s1512_s3 + $0x30] sm:$0xff] %v765_v23  ;;  %v396_v31 = vadd.f32 %v1251_v40, %v395_v27  ;;  %v524_v32 = vadd.f32 %v1251_v40, %v523_v28 }
 0x104   :  { %861 = vst [vmem:[%s1512_s3 + $0x130] sm:$0xff] %v797_v24  ;;  %v763_v29 = vsel %vm635_vm10, %v393_v15, %v699_v21  ;;  %v795_v30 = vsel %vm667_vm11, %v521_v16, %v731_v22  ;;  %vm638_vm12 = vcmp.gt.f32.partialorder %v404_v25, 0.0  ;;  %v702_v33 = vmul.f32 0.1, %v404_v25 }
 0x105   :  { %827 = vst [vmem:[%s1512_s3 + $0x20] sm:$0xff] %v763_v29  ;;  %859 = vst [vmem:[%s1512_s3 + $0x120] sm:$0xff] %v795_v30  ;;  %vm670_vm13 = vcmp.gt.f32.partialorder %v532_v26, 0.0  ;;  %v734_v34 = vmul.f32 0.1, %v532_v26  ;;  %vm636_vm14 = vcmp.gt.f32.partialorder %v396_v31, 0.0 }
 0x106   :  { %v700_v35 = vmul.f32 0.1, %v396_v31  ;;  %vm668_vm15 = vcmp.gt.f32.partialorder %v524_v32, 0.0  ;;  %v732_v36 = vmul.f32 0.1, %v524_v32  ;;  %v766_v37 = vsel %vm638_vm12, %v404_v25, %v702_v33  ;;  %v998_v39 = vpop.f32.mrb[8].mxu0 }
 0x107   :  { %v798_v38 = vsel %vm670_vm13, %v532_v26, %v734_v34  ;;  %v1030_v41 = vpop.f32.mrb[8].mxu1  ;;  %830 = vst [vmem:[%s1512_s3 + $0x38] sm:$0xff] %v766_v37  ;;  %v417_v44 = vadd.f32 %v998_v39, %v1251_v40  ;;  %v408_v46 = vpop.f32.mrb[9].mxu0 }
 0x108   :  { %862 = vst [vmem:[%s1512_s3 + $0x138] sm:$0xff] %v798_v38  ;;  %v764_v42 = vsel %vm636_vm14, %v396_v31, %v700_v35  ;;  %v796_v43 = vsel %vm668_vm15, %v524_v32, %v732_v36  ;;  %v545_v45 = vadd.f32 %v1030_v41, %v1251_v40  ;;  %v536_v47 = vpop.f32.mrb[9].mxu1  ;;  %v409_v48 = vadd.f32 %v1251_v40, %v408_v46  ;;  %v999_v50 = vpop.f32.mrb[10].mxu0 }
 0x109   :  { %828 = vst [vmem:[%s1512_s3 + $0x28] sm:$0xff] %v764_v42  ;;  %860 = vst [vmem:[%s1512_s3 + $0x128] sm:$0xff] %v796_v43  ;;  %v537_v49 = vadd.f32 %v1251_v40, %v536_v47  ;;  %v1031_v51 = vpop.f32.mrb[10].mxu1  ;;  %vm641_vm0 = vcmp.gt.f32.partialorder %v417_v44, 0.0  ;;  %v705_v52 = vmul.f32 0.1, %v417_v44  ;;  %v420_v58 = vadd.f32 %v999_v50, %v1251_v40 }
 0x10a   :  { %vm673_vm1 = vcmp.gt.f32.partialorder %v545_v45, 0.0  ;;  %v737_v53 = vmul.f32 0.1, %v545_v45  ;;  %vm639_vm2 = vcmp.gt.f32.partialorder %v409_v48, 0.0  ;;  %v703_v54 = vmul.f32 0.1, %v409_v48 }
 0x10b   :  { %vm671_vm3 = vcmp.gt.f32.partialorder %v537_v49, 0.0  ;;  %v735_v55 = vmul.f32 0.1, %v537_v49  ;;  %v769_v56 = vsel %vm641_vm0, %v417_v44, %v705_v52  ;;  %v548_v59 = vadd.f32 %v1031_v51, %v1251_v40  ;;  %v411_v60 = vpop.f32.mrb[11].mxu0  ;;  %v539_v61 = vpop.f32.mrb[11].mxu1 }
 0x10c   :  { %v801_v57 = vsel %vm673_vm1, %v545_v45, %v737_v53  ;;  %833 = vst [vmem:[%s1512_s3 + $0x50] sm:$0xff] %v769_v56  ;;  %v767_v62 = vsel %vm639_vm2, %v409_v48, %v703_v54  ;;  %v412_v0 = vadd.f32 %v1251_v40, %v411_v60  ;;  %v540_v1 = vadd.f32 %v1251_v40, %v539_v61 }
 0x10d   :  { %865 = vst [vmem:[%s1512_s3 + $0x150] sm:$0xff] %v801_v57  ;;  %v799_v63 = vsel %vm671_vm3, %v537_v49, %v735_v55  ;;  %v1002_v2 = vpop.f32.mrb[12].mxu0  ;;  %v1034_v3 = vpop.f32.mrb[12].mxu1  ;;  %831 = vst [vmem:[%s1512_s3 + $0x40] sm:$0xff] %v767_v62  ;;  %vm642_vm4 = vcmp.gt.f32.partialorder %v420_v58, 0.0  ;;  %vm674_vm5 = vcmp.gt.f32.partialorder %v548_v59, 0.0 }
 0x10e   :  { %863 = vst [vmem:[%s1512_s3 + $0x140] sm:$0xff] %v799_v63  ;;  %v706_v4 = vmul.f32 0.1, %v420_v58  ;;  %v738_v5 = vmul.f32 0.1, %v548_v59  ;;  %vm640_vm6 = vcmp.gt.f32.partialorder %v412_v0, 0.0  ;;  %v433_v10 = vadd.f32 %v1002_v2, %v1251_v40 }
 0x10f   :  { %v704_v6 = vmul.f32 0.1, %v412_v0  ;;  %vm672_vm7 = vcmp.gt.f32.partialorder %v540_v1, 0.0  ;;  %v736_v7 = vmul.f32 0.1, %v540_v1  ;;  %v561_v11 = vadd.f32 %v1034_v3, %v1251_v40  ;;  %v424_v12 = vpop.f32.mrb[13].mxu0 }
 0x110   :  { %v770_v8 = vsel %vm642_vm4, %v420_v58, %v706_v4  ;;  %v802_v9 = vsel %vm674_vm5, %v548_v59, %v738_v5  ;;  %v552_v13 = vpop.f32.mrb[13].mxu1  ;;  %v425_v16 = vadd.f32 %v1251_v40, %v424_v12  ;;  %v1003_v18 = vpop.f32.mrb[14].mxu0  ;;  %vm645_vm8 = vcmp.gt.f32.partialorder %v433_v10, 0.0 }
 0x111   :  { %834 = vst [vmem:[%s1512_s3 + $0x58] sm:$0xff] %v770_v8  ;;  %866 = vst [vmem:[%s1512_s3 + $0x158] sm:$0xff] %v802_v9  ;;  %v768_v14 = vsel %vm640_vm6, %v412_v0, %v704_v6  ;;  %v800_v15 = vsel %vm672_vm7, %v540_v1, %v736_v7  ;;  %v553_v17 = vadd.f32 %v1251_v40, %v552_v13  ;;  %v1035_v19 = vpop.f32.mrb[14].mxu1  ;;  %v709_v20 = vmul.f32 0.1, %v433_v10  ;;  %v427_v28 = vpop.f32.mrb[15].mxu0 }
 0x112   :  { %832 = vst [vmem:[%s1512_s3 + $0x48] sm:$0xff] %v768_v14  ;;  %864 = vst [vmem:[%s1512_s3 + $0x148] sm:$0xff] %v800_v15  ;;  %vm677_vm9 = vcmp.gt.f32.partialorder %v561_v11, 0.0  ;;  %v741_v21 = vmul.f32 0.1, %v561_v11  ;;  %vm643_vm10 = vcmp.gt.f32.partialorder %v425_v16, 0.0  ;;  %v436_v26 = vadd.f32 %v1003_v18, %v1251_v40 }
 0x113   :  { %v707_v22 = vmul.f32 0.1, %v425_v16  ;;  %vm675_vm11 = vcmp.gt.f32.partialorder %v553_v17, 0.0  ;;  %v739_v23 = vmul.f32 0.1, %v553_v17  ;;  %v773_v24 = vsel %vm645_vm8, %v433_v10, %v709_v20  ;;  %v555_v29 = vpop.f32.mrb[15].mxu1 }
 0x114   :  { %v805_v25 = vsel %vm677_vm9, %v561_v11, %v741_v21  ;;  %v564_v27 = vadd.f32 %v1035_v19, %v1251_v40  ;;  %837 = vst [vmem:[%s1512_s3 + $0x70] sm:$0xff] %v773_v24  ;;  %v428_v32 = vadd.f32 %v1251_v40, %v427_v28  ;;  %v556_v33 = vadd.f32 %v1251_v40, %v555_v29 }
 0x115   :  { %869 = vst [vmem:[%s1512_s3 + $0x170] sm:$0xff] %v805_v25  ;;  %v771_v30 = vsel %vm643_vm10, %v425_v16, %v707_v22  ;;  %v803_v31 = vsel %vm675_vm11, %v553_v17, %v739_v23  ;;  %v1006_v34 = vpop.f32.mrb[16].mxu0  ;;  %v1038_v35 = vpop.f32.mrb[16].mxu1  ;;  %vm646_vm12 = vcmp.gt.f32.partialorder %v436_v26, 0.0  ;;  %v710_v36 = vmul.f32 0.1, %v436_v26 }
 0x116   :  { %835 = vst [vmem:[%s1512_s3 + $0x60] sm:$0xff] %v771_v30  ;;  %867 = vst [vmem:[%s1512_s3 + $0x160] sm:$0xff] %v803_v31  ;;  %vm678_vm13 = vcmp.gt.f32.partialorder %v564_v27, 0.0  ;;  %v742_v37 = vmul.f32 0.1, %v564_v27  ;;  %vm644_vm14 = vcmp.gt.f32.partialorder %v428_v32, 0.0  ;;  %v449_v43 = vadd.f32 %v1006_v34, %v1251_v40 }
 0x117   :  { %v708_v38 = vmul.f32 0.1, %v428_v32  ;;  %vm676_vm15 = vcmp.gt.f32.partialorder %v556_v33, 0.0  ;;  %v740_v39 = vmul.f32 0.1, %v556_v33  ;;  %v774_v41 = vsel %vm646_vm12, %v436_v26, %v710_v36  ;;  %v440_v45 = vpop.f32.mrb[17].mxu0 }
 0x118   :  { %v806_v42 = vsel %vm678_vm13, %v564_v27, %v742_v37  ;;  %v577_v44 = vadd.f32 %v1038_v35, %v1251_v40  ;;  %v568_v46 = vpop.f32.mrb[17].mxu1  ;;  %838 = vst [vmem:[%s1512_s3 + $0x78] sm:$0xff] %v774_v41  ;;  %v441_v49 = vadd.f32 %v1251_v40, %v440_v45  ;;  %v1007_v51 = vpop.f32.mrb[18].mxu0  ;;  %vm649_vm0 = vcmp.gt.f32.partialorder %v449_v43, 0.0 }
 0x119   :  { %870 = vst [vmem:[%s1512_s3 + $0x178] sm:$0xff] %v806_v42  ;;  %v772_v47 = vsel %vm644_vm14, %v428_v32, %v708_v38  ;;  %v804_v48 = vsel %vm676_vm15, %v556_v33, %v740_v39  ;;  %v569_v50 = vadd.f32 %v1251_v40, %v568_v46  ;;  %v1039_v52 = vpop.f32.mrb[18].mxu1  ;;  %v713_v53 = vmul.f32 0.1, %v449_v43  ;;  %v443_v61 = vpop.f32.mrb[19].mxu0 }
 0x11a   :  { %836 = vst [vmem:[%s1512_s3 + $0x68] sm:$0xff] %v772_v47  ;;  %868 = vst [vmem:[%s1512_s3 + $0x168] sm:$0xff] %v804_v48  ;;  %vm681_vm1 = vcmp.gt.f32.partialorder %v577_v44, 0.0  ;;  %v745_v54 = vmul.f32 0.1, %v577_v44  ;;  %vm647_vm2 = vcmp.gt.f32.partialorder %v441_v49, 0.0  ;;  %v452_v59 = vadd.f32 %v1007_v51, %v1251_v40 }
 0x11b   :  { %v711_v55 = vmul.f32 0.1, %v441_v49  ;;  %vm679_vm3 = vcmp.gt.f32.partialorder %v569_v50, 0.0  ;;  %v743_v56 = vmul.f32 0.1, %v569_v50  ;;  %v777_v57 = vsel %vm649_vm0, %v449_v43, %v713_v53  ;;  %v571_v62 = vpop.f32.mrb[19].mxu1 }
 0x11c   :  { %v809_v58 = vsel %vm681_vm1, %v577_v44, %v745_v54  ;;  %v580_v60 = vadd.f32 %v1039_v52, %v1251_v40  ;;  %841 = vst [vmem:[%s1512_s3 + $0x90] sm:$0xff] %v777_v57  ;;  %v444_v1 = vadd.f32 %v1251_v40, %v443_v61  ;;  %v572_v2 = vadd.f32 %v1251_v40, %v571_v62 }
 0x11d   :  { %873 = vst [vmem:[%s1512_s3 + $0x190] sm:$0xff] %v809_v58  ;;  %v775_v63 = vsel %vm647_vm2, %v441_v49, %v711_v55  ;;  %v807_v0 = vsel %vm679_vm3, %v569_v50, %v743_v56  ;;  %v1010_v3 = vpop.f32.mrb[20].mxu0  ;;  %v1042_v4 = vpop.f32.mrb[20].mxu1  ;;  %vm650_vm4 = vcmp.gt.f32.partialorder %v452_v59, 0.0  ;;  %v714_v5 = vmul.f32 0.1, %v452_v59 }
 0x11e   :  { %839 = vst [vmem:[%s1512_s3 + $0x80] sm:$0xff] %v775_v63  ;;  %871 = vst [vmem:[%s1512_s3 + $0x180] sm:$0xff] %v807_v0  ;;  %vm682_vm5 = vcmp.gt.f32.partialorder %v580_v60, 0.0  ;;  %v746_v6 = vmul.f32 0.1, %v580_v60  ;;  %vm648_vm6 = vcmp.gt.f32.partialorder %v444_v1, 0.0  ;;  %v465_v11 = vadd.f32 %v1010_v3, %v1251_v40 }
 0x11f   :  { %v712_v7 = vmul.f32 0.1, %v444_v1  ;;  %vm680_vm7 = vcmp.gt.f32.partialorder %v572_v2, 0.0  ;;  %v744_v8 = vmul.f32 0.1, %v572_v2  ;;  %v778_v9 = vsel %vm650_vm4, %v452_v59, %v714_v5  ;;  %v456_v13 = vpop.f32.mrb[21].mxu0 }
 0x120   :  { %v810_v10 = vsel %vm682_vm5, %v580_v60, %v746_v6  ;;  %v593_v12 = vadd.f32 %v1042_v4, %v1251_v40  ;;  %v584_v14 = vpop.f32.mrb[21].mxu1  ;;  %842 = vst [vmem:[%s1512_s3 + $0x98] sm:$0xff] %v778_v9  ;;  %v457_v17 = vadd.f32 %v1251_v40, %v456_v13  ;;  %v1011_v19 = vpop.f32.mrb[22].mxu0  ;;  %vm653_vm8 = vcmp.gt.f32.partialorder %v465_v11, 0.0 }
 0x121   :  { %874 = vst [vmem:[%s1512_s3 + $0x198] sm:$0xff] %v810_v10  ;;  %v776_v15 = vsel %vm648_vm6, %v444_v1, %v712_v7  ;;  %v808_v16 = vsel %vm680_vm7, %v572_v2, %v744_v8  ;;  %v585_v18 = vadd.f32 %v1251_v40, %v584_v14  ;;  %v1043_v20 = vpop.f32.mrb[22].mxu1  ;;  %v717_v21 = vmul.f32 0.1, %v465_v11  ;;  %v459_v29 = vpop.f32.mrb[23].mxu0 }
 0x122   :  { %840 = vst [vmem:[%s1512_s3 + $0x88] sm:$0xff] %v776_v15  ;;  %872 = vst [vmem:[%s1512_s3 + $0x188] sm:$0xff] %v808_v16  ;;  %vm685_vm9 = vcmp.gt.f32.partialorder %v593_v12, 0.0  ;;  %v749_v22 = vmul.f32 0.1, %v593_v12  ;;  %vm651_vm10 = vcmp.gt.f32.partialorder %v457_v17, 0.0  ;;  %v468_v27 = vadd.f32 %v1011_v19, %v1251_v40 }
 0x123   :  { %v715_v23 = vmul.f32 0.1, %v457_v17  ;;  %vm683_vm11 = vcmp.gt.f32.partialorder %v585_v18, 0.0  ;;  %v747_v24 = vmul.f32 0.1, %v585_v18  ;;  %v781_v25 = vsel %vm653_vm8, %v465_v11, %v717_v21  ;;  %v587_v30 = vpop.f32.mrb[23].mxu1 }
 0x124   :  { %v813_v26 = vsel %vm685_vm9, %v593_v12, %v749_v22  ;;  %v596_v28 = vadd.f32 %v1043_v20, %v1251_v40  ;;  %845 = vst [vmem:[%s1512_s3 + $0xb0] sm:$0xff] %v781_v25  ;;  %v460_v33 = vadd.f32 %v1251_v40, %v459_v29  ;;  %v588_v34 = vadd.f32 %v1251_v40, %v587_v30 }
 0x125   :  { %877 = vst [vmem:[%s1512_s3 + $0x1b0] sm:$0xff] %v813_v26  ;;  %v779_v31 = vsel %vm651_vm10, %v457_v17, %v715_v23  ;;  %v811_v32 = vsel %vm683_vm11, %v585_v18, %v747_v24  ;;  %v1014_v35 = vpop.f32.mrb[24].mxu0  ;;  %v1046_v36 = vpop.f32.mrb[24].mxu1  ;;  %vm654_vm12 = vcmp.gt.f32.partialorder %v468_v27, 0.0  ;;  %v718_v37 = vmul.f32 0.1, %v468_v27 }
 0x126   :  { %843 = vst [vmem:[%s1512_s3 + $0xa0] sm:$0xff] %v779_v31  ;;  %875 = vst [vmem:[%s1512_s3 + $0x1a0] sm:$0xff] %v811_v32  ;;  %vm686_vm13 = vcmp.gt.f32.partialorder %v596_v28, 0.0  ;;  %v750_v38 = vmul.f32 0.1, %v596_v28  ;;  %vm652_vm14 = vcmp.gt.f32.partialorder %v460_v33, 0.0  ;;  %v481_v44 = vadd.f32 %v1014_v35, %v1251_v40 }
 0x127   :  { %v716_v39 = vmul.f32 0.1, %v460_v33  ;;  %vm684_vm15 = vcmp.gt.f32.partialorder %v588_v34, 0.0  ;;  %v748_v41 = vmul.f32 0.1, %v588_v34  ;;  %v782_v42 = vsel %vm654_vm12, %v468_v27, %v718_v37  ;;  %v472_v46 = vpop.f32.mrb[25].mxu0 }
 0x128   :  { %v814_v43 = vsel %vm686_vm13, %v596_v28, %v750_v38  ;;  %v609_v45 = vadd.f32 %v1046_v36, %v1251_v40  ;;  %v600_v47 = vpop.f32.mrb[25].mxu1  ;;  %846 = vst [vmem:[%s1512_s3 + $0xb8] sm:$0xff] %v782_v42  ;;  %v473_v50 = vadd.f32 %v1251_v40, %v472_v46  ;;  %v1015_v52 = vpop.f32.mrb[26].mxu0  ;;  %vm657_vm0 = vcmp.gt.f32.partialorder %v481_v44, 0.0 }
 0x129   :  { %878 = vst [vmem:[%s1512_s3 + $0x1b8] sm:$0xff] %v814_v43  ;;  %v780_v48 = vsel %vm652_vm14, %v460_v33, %v716_v39  ;;  %v812_v49 = vsel %vm684_vm15, %v588_v34, %v748_v41  ;;  %v601_v51 = vadd.f32 %v1251_v40, %v600_v47  ;;  %v1047_v53 = vpop.f32.mrb[26].mxu1  ;;  %v721_v54 = vmul.f32 0.1, %v481_v44  ;;  %v475_v62 = vpop.f32.mrb[27].mxu0 }
 0x12a   :  { %844 = vst [vmem:[%s1512_s3 + $0xa8] sm:$0xff] %v780_v48  ;;  %876 = vst [vmem:[%s1512_s3 + $0x1a8] sm:$0xff] %v812_v49  ;;  %vm689_vm1 = vcmp.gt.f32.partialorder %v609_v45, 0.0  ;;  %v753_v55 = vmul.f32 0.1, %v609_v45  ;;  %vm655_vm2 = vcmp.gt.f32.partialorder %v473_v50, 0.0  ;;  %v484_v60 = vadd.f32 %v1015_v52, %v1251_v40 }
 0x12b   :  { %v719_v56 = vmul.f32 0.1, %v473_v50  ;;  %vm687_vm3 = vcmp.gt.f32.partialorder %v601_v51, 0.0  ;;  %v751_v57 = vmul.f32 0.1, %v601_v51  ;;  %v785_v58 = vsel %vm657_vm0, %v481_v44, %v721_v54  ;;  %v603_v63 = vpop.f32.mrb[27].mxu1 }
 0x12c   :  { %v817_v59 = vsel %vm689_vm1, %v609_v45, %v753_v55  ;;  %v612_v61 = vadd.f32 %v1047_v53, %v1251_v40  ;;  %849 = vst [vmem:[%s1512_s3 + $0xd0] sm:$0xff] %v785_v58  ;;  %v476_v2 = vadd.f32 %v1251_v40, %v475_v62  ;;  %v604_v3 = vadd.f32 %v1251_v40, %v603_v63 }
 0x12d   :  { %881 = vst [vmem:[%s1512_s3 + $0x1d0] sm:$0xff] %v817_v59  ;;  %v783_v0 = vsel %vm655_vm2, %v473_v50, %v719_v56  ;;  %v815_v1 = vsel %vm687_vm3, %v601_v51, %v751_v57  ;;  %v1018_v4 = vpop.f32.mrb[28].mxu0  ;;  %v1050_v5 = vpop.f32.mrb[28].mxu1  ;;  %vm658_vm4 = vcmp.gt.f32.partialorder %v484_v60, 0.0  ;;  %v722_v6 = vmul.f32 0.1, %v484_v60 }
 0x12e   :  { %847 = vst [vmem:[%s1512_s3 + $0xc0] sm:$0xff] %v783_v0  ;;  %879 = vst [vmem:[%s1512_s3 + $0x1c0] sm:$0xff] %v815_v1  ;;  %vm690_vm5 = vcmp.gt.f32.partialorder %v612_v61, 0.0  ;;  %v754_v7 = vmul.f32 0.1, %v612_v61  ;;  %vm656_vm6 = vcmp.gt.f32.partialorder %v476_v2, 0.0  ;;  %v497_v12 = vadd.f32 %v1018_v4, %v1251_v40 }
 0x12f   :  { %v720_v8 = vmul.f32 0.1, %v476_v2  ;;  %vm688_vm7 = vcmp.gt.f32.partialorder %v604_v3, 0.0  ;;  %v752_v9 = vmul.f32 0.1, %v604_v3  ;;  %v786_v10 = vsel %vm658_vm4, %v484_v60, %v722_v6  ;;  %v488_v14 = vpop.f32.mrb[29].mxu0 }
 0x130   :  { %v818_v11 = vsel %vm690_vm5, %v612_v61, %v754_v7  ;;  %v625_v13 = vadd.f32 %v1050_v5, %v1251_v40  ;;  %v616_v15 = vpop.f32.mrb[29].mxu1  ;;  %850 = vst [vmem:[%s1512_s3 + $0xd8] sm:$0xff] %v786_v10  ;;  %v489_v18 = vadd.f32 %v1251_v40, %v488_v14  ;;  %v1019_v20 = vpop.f32.mrb[30].mxu0  ;;  %vm661_vm8 = vcmp.gt.f32.partialorder %v497_v12, 0.0 }
 0x131   :  { %882 = vst [vmem:[%s1512_s3 + $0x1d8] sm:$0xff] %v818_v11  ;;  %v784_v16 = vsel %vm656_vm6, %v476_v2, %v720_v8  ;;  %v816_v17 = vsel %vm688_vm7, %v604_v3, %v752_v9  ;;  %v617_v19 = vadd.f32 %v1251_v40, %v616_v15  ;;  %v1051_v21 = vpop.f32.mrb[30].mxu1  ;;  %v725_v22 = vmul.f32 0.1, %v497_v12  ;;  %v491_v30 = vpop.f32.mrb[31].mxu0 }
 0x132   :  { %848 = vst [vmem:[%s1512_s3 + $0xc8] sm:$0xff] %v784_v16  ;;  %880 = vst [vmem:[%s1512_s3 + $0x1c8] sm:$0xff] %v816_v17  ;;  %vm693_vm9 = vcmp.gt.f32.partialorder %v625_v13, 0.0  ;;  %v757_v23 = vmul.f32 0.1, %v625_v13  ;;  %vm659_vm10 = vcmp.gt.f32.partialorder %v489_v18, 0.0  ;;  %v500_v28 = vadd.f32 %v1019_v20, %v1251_v40 }
 0x133   :  { %v723_v24 = vmul.f32 0.1, %v489_v18  ;;  %vm691_vm11 = vcmp.gt.f32.partialorder %v617_v19, 0.0  ;;  %v755_v25 = vmul.f32 0.1, %v617_v19  ;;  %v789_v26 = vsel %vm661_vm8, %v497_v12, %v725_v22  ;;  %v619_v31 = vpop.f32.mrb[31].mxu1 }
 0x134   :  { %v821_v27 = vsel %vm693_vm9, %v625_v13, %v757_v23  ;;  %v628_v29 = vadd.f32 %v1051_v21, %v1251_v40  ;;  %853 = vst [vmem:[%s1512_s3 + $0xf0] sm:$0xff] %v789_v26  ;;  %v492_v34 = vadd.f32 %v1251_v40, %v491_v30  ;;  %v620_v35 = vadd.f32 %v1251_v40, %v619_v31 }
 0x135   :  { %885 = vst [vmem:[%s1512_s3 + $0x1f0] sm:$0xff] %v821_v27  ;;  %v787_v32 = vsel %vm659_vm10, %v489_v18, %v723_v24  ;;  %v819_v33 = vsel %vm691_vm11, %v617_v19, %v755_v25  ;;  %vm662_vm12 = vcmp.gt.f32.partialorder %v500_v28, 0.0  ;;  %v726_v36 = vmul.f32 0.1, %v500_v28 }
 0x136   :  { %851 = vst [vmem:[%s1512_s3 + $0xe0] sm:$0xff] %v787_v32  ;;  %883 = vst [vmem:[%s1512_s3 + $0x1e0] sm:$0xff] %v819_v33  ;;  %vm694_vm13 = vcmp.gt.f32.partialorder %v628_v29, 0.0  ;;  %v758_v37 = vmul.f32 0.1, %v628_v29  ;;  %vm660_vm14 = vcmp.gt.f32.partialorder %v492_v34, 0.0 }
 0x137   :  { %v724_v38 = vmul.f32 0.1, %v492_v34  ;;  %vm692_vm15 = vcmp.gt.f32.partialorder %v620_v35, 0.0  ;;  %v756_v39 = vmul.f32 0.1, %v620_v35  ;;  %v790_v41 = vsel %vm662_vm12, %v500_v28, %v726_v36 }
 0x138   :  { %v822_v42 = vsel %vm694_vm13, %v628_v29, %v758_v37  ;;  %854 = vst [vmem:[%s1512_s3 + $0xf8] sm:$0xff] %v790_v41 }
 0x139   :  { %886 = vst [vmem:[%s1512_s3 + $0x1f8] sm:$0xff] %v822_v42  ;;  %v788_v40 = vsel %vm660_vm14, %v492_v34, %v724_v38  ;;  %v820_v43 = vsel %vm692_vm15, %v620_v35, %v756_v39 }
 0x13a   :  { %852 = vst [vmem:[%s1512_s3 + $0xe8] sm:$0xff] %v788_v40  ;;  %884 = vst [vmem:[%s1512_s3 + $0x1e8] sm:$0xff] %v820_v43 }

// kernel: _lambda_.10
= control target key start
LH: loop header
LB: loop body
LE: loop exit
PB: predicated region body
PF: predicated region fallthrough
CT: control target
= control target key end

     0   :  { %s549_s1 = inlined_call_operand.vmem [shape: bf16[128,128], index: 1, kind: input, shape index: {}]   ;;  %s550_s0 = inlined_call_operand.vmem [shape: bf16[128,128], index: 0, kind: input, shape index: {}]   ;;  %s551_s2 = inlined_call_operand.vmem [shape: f32[1,128], index: 2, kind: input, shape index: {}]   ;;  %s552_s3 = inlined_call_operand.vmem [shape: f32[128,128], index: 3, kind: output, shape index: {}]  }
   0x1   :  { %v396_v0 = vld [vmem:[%s549_s1] sm:$0xff]   ;;  %v397_v1 = vld [vmem:[%s549_s1 + $0x8] sm:$0xff]   ;;  %v398_v2 = vld [vmem:[%s549_s1 + $0x10] sm:$0xff]  }
   0x2   :  { %348 = vmatprep.subr.bf16.mxu0 %v396_v0  ;;  %380 = vmatprep.subr.bf16.mxu1 %v396_v0  ;;  %v399_v3 = vld [vmem:[%s549_s1 + $0x18] sm:$0xff]   ;;  %v404_v4 = vld [vmem:[%s550_s0] sm:$0xff]   ;;  %v401_v7 = vld [vmem:[%s549_s1 + $0x28] sm:$0xff]  }
   0x3   :  { %349 = vmatpush3.bf16.msra.mxu0 %v396_v0  ;;  %388 = vmatpush3.bf16.msra.mxu1 %v396_v0  ;;  %v405_v5 = vld [vmem:[%s550_s0 + $0x20] sm:$0xff]   ;;  %v402_v8 = vld [vmem:[%s549_s1 + $0x30] sm:$0xff]   ;;  %v403_v9 = vld [vmem:[%s549_s1 + $0x38] sm:$0xff]  }
   0x4   :  { %350 = vmatprep.subr.bf16.mxu0 %v397_v1  ;;  %381 = vmatprep.subr.bf16.mxu1 %v397_v1  ;;  %v400_v6 = vld [vmem:[%s549_s1 + $0x20] sm:$0xff]   ;;  %v406_v10 = vld [vmem:[%s550_s0 + $0x8] sm:$0xff]   ;;  %v408_v12 = vld [vmem:[%s550_s0 + $0x10] sm:$0xff]  }
   0x5   :  { %364 = vmatprep.mubr.bf16.mxu0 %v404_v4  ;;  %372 = vmatprep.mubr.bf16.mxu1 %v405_v5  ;;  %v407_v11 = vld [vmem:[%s550_s0 + $0x28] sm:$0xff]   ;;  %v409_v13 = vld [vmem:[%s550_s0 + $0x30] sm:$0xff]   ;;  %v410_v14 = vld [vmem:[%s550_s0 + $0x18] sm:$0xff]  }
   0x6   :  { %v411_v15 = vld [vmem:[%s550_s0 + $0x38] sm:$0xff]   ;;  %v483_v16 = vld [vmem:[%s551_s2] ss:$0 sm:$0xff] }
   0x7   :  { %351 = vmatpush3.bf16.msra.mxu0 %v397_v1  ;;  %389 = vmatpush3.bf16.msra.mxu1 %v397_v1 }
   0x8   :  { %352 = vmatprep.subr.bf16.mxu0 %v398_v2  ;;  %382 = vmatprep.subr.bf16.mxu1 %v398_v2 }
   0xb   :  { %353 = vmatpush3.bf16.msra.mxu0 %v398_v2  ;;  %390 = vmatpush3.bf16.msra.mxu1 %v398_v2 }
   0xc   :  { %354 = vmatprep.subr.bf16.mxu0 %v399_v3  ;;  %383 = vmatprep.subr.bf16.mxu1 %v399_v3 }
   0xf   :  { %355 = vmatpush3.bf16.msra.mxu0 %v399_v3  ;;  %391 = vmatpush3.bf16.msra.mxu1 %v399_v3 }
  0x10   :  { %356 = vmatprep.subr.bf16.mxu0 %v400_v6  ;;  %384 = vmatprep.subr.bf16.mxu1 %v400_v6 }
  0x13   :  { %357 = vmatpush3.bf16.msra.mxu0 %v400_v6  ;;  %392 = vmatpush3.bf16.msra.mxu1 %v400_v6 }
  0x14   :  { %358 = vmatprep.subr.bf16.mxu0 %v401_v7  ;;  %385 = vmatprep.subr.bf16.mxu1 %v401_v7 }
  0x17   :  { %359 = vmatpush3.bf16.msra.mxu0 %v401_v7  ;;  %393 = vmatpush3.bf16.msra.mxu1 %v401_v7 }
  0x18   :  { %360 = vmatprep.subr.bf16.mxu0 %v402_v8  ;;  %386 = vmatprep.subr.bf16.mxu1 %v402_v8 }
  0x1b   :  { %361 = vmatpush3.bf16.msra.mxu0 %v402_v8  ;;  %394 = vmatpush3.bf16.msra.mxu1 %v402_v8 }
  0x1c   :  { %362 = vmatprep.subr.bf16.mxu0 %v403_v9  ;;  %387 = vmatprep.subr.bf16.mxu1 %v403_v9 }
  0x1f   :  { %363 = vmatpush3.bf16.msra.mxu0 %v403_v9  ;;  %395 = vmatpush3.bf16.msra.mxu1 %v403_v9 }
  0x22   :  { %365 = vmatmul.mubr.bf16.vlgmr.msra.gmra.mrb[0].mxu0 %v406_v10  ;;  %373 = vmatmul.mubr.bf16.vlgmr.msra.gmra.mrb[0].mxu1 %v407_v11 }
  0x23   :  { %368 = vmatprep.mubr.bf16.mxu0 %v408_v12  ;;  %376 = vmatprep.mubr.bf16.mxu1 %v409_v13 }
  0x2a   :  { %369 = vmatmul.mubr.bf16.gmra.mrb[4].mxu0 %v410_v14  ;;  %377 = vmatmul.mubr.bf16.gmra.mrb[4].mxu1 %v411_v15 }
  0xf5   :  { %v366_v17 = vpop.f32.mrb[0].mxu0  ;;  %v374_v18 = vpop.f32.mrb[0].mxu1 }
  0xf6   :  { %v193_v19 = vadd.f32 %v366_v17, %v483_v16  ;;  %v225_v20 = vadd.f32 %v374_v18, %v483_v16  ;;  %v184_v21 = vpop.f32.mrb[1].mxu0  ;;  %v216_v22 = vpop.f32.mrb[1].mxu1 }
  0xf7   :  { %v185_v23 = vadd.f32 %v483_v16, %v184_v21  ;;  %v217_v24 = vadd.f32 %v483_v16, %v216_v22  ;;  %v367_v25 = vpop.f32.mrb[2].mxu0  ;;  %v375_v26 = vpop.f32.mrb[2].mxu1 }
  0xf8   :  { %vm249_vm0 = vcmp.gt.f32.partialorder %v193_v19, 0.0  ;;  %v265_v27 = vmul.f32 0.1, %v193_v19  ;;  %vm257_vm1 = vcmp.gt.f32.partialorder %v225_v20, 0.0  ;;  %v273_v28 = vmul.f32 0.1, %v225_v20 }
  0xf9   :  { %vm247_vm2 = vcmp.gt.f32.partialorder %v185_v23, 0.0  ;;  %v263_v29 = vmul.f32 0.1, %v185_v23  ;;  %vm255_vm3 = vcmp.gt.f32.partialorder %v217_v24, 0.0  ;;  %v271_v30 = vmul.f32 0.1, %v217_v24 }
  0xfa   :  { %v281_v31 = vsel %vm249_vm0, %v193_v19, %v265_v27  ;;  %v289_v32 = vsel %vm257_vm1, %v225_v20, %v273_v28  ;;  %v196_v33 = vadd.f32 %v367_v25, %v483_v16  ;;  %v228_v34 = vadd.f32 %v375_v26, %v483_v16  ;;  %v187_v35 = vpop.f32.mrb[3].mxu0  ;;  %v219_v36 = vpop.f32.mrb[3].mxu1 }
  0xfb   :  { %297 = vst [vmem:[%s552_s3 + $0x10] sm:$0xff] %v281_v31  ;;  %305 = vst [vmem:[%s552_s3 + $0x50] sm:$0xff] %v289_v32  ;;  %v279_v37 = vsel %vm247_vm2, %v185_v23, %v263_v29  ;;  %v287_v38 = vsel %vm255_vm3, %v217_v24, %v271_v30  ;;  %v188_v39 = vadd.f32 %v483_v16, %v187_v35 }
  0xfc   :  { %v220_v40 = vadd.f32 %v483_v16, %v219_v36  ;;  %295 = vst [vmem:[%s552_s3] sm:$0xff] %v279_v37  ;;  %303 = vst [vmem:[%s552_s3 + $0x40] sm:$0xff] %v287_v38  ;;  %vm250_vm4 = vcmp.gt.f32.partialorder %v196_v33, 0.0  ;;  %v266_v41 = vmul.f32 0.1, %v196_v33  ;;  %vm258_vm5 = vcmp.gt.f32.partialorder %v228_v34, 0.0 }
  0xfd   :  { %v274_v42 = vmul.f32 0.1, %v228_v34  ;;  %vm248_vm6 = vcmp.gt.f32.partialorder %v188_v39, 0.0  ;;  %v264_v43 = vmul.f32 0.1, %v188_v39  ;;  %v370_v47 = vpop.f32.mrb[4].mxu0 }
  0xfe   :  { %vm256_vm7 = vcmp.gt.f32.partialorder %v220_v40, 0.0  ;;  %v272_v44 = vmul.f32 0.1, %v220_v40  ;;  %v282_v45 = vsel %vm250_vm4, %v196_v33, %v266_v41  ;;  %v378_v48 = vpop.f32.mrb[4].mxu1  ;;  %v209_v51 = vadd.f32 %v370_v47, %v483_v16  ;;  %v200_v53 = vpop.f32.mrb[5].mxu0 }
  0xff   :  { %v290_v46 = vsel %vm258_vm5, %v228_v34, %v274_v42  ;;  %298 = vst [vmem:[%s552_s3 + $0x18] sm:$0xff] %v282_v45  ;;  %v280_v49 = vsel %vm248_vm6, %v188_v39, %v264_v43  ;;  %v241_v52 = vadd.f32 %v378_v48, %v483_v16  ;;  %v232_v54 = vpop.f32.mrb[5].mxu1  ;;  %v201_v55 = vadd.f32 %v483_v16, %v200_v53  ;;  %v371_v57 = vpop.f32.mrb[6].mxu0 }
 0x100   :  { %306 = vst [vmem:[%s552_s3 + $0x58] sm:$0xff] %v290_v46  ;;  %v288_v50 = vsel %vm256_vm7, %v220_v40, %v272_v44  ;;  %296 = vst [vmem:[%s552_s3 + $0x8] sm:$0xff] %v280_v49  ;;  %v233_v56 = vadd.f32 %v483_v16, %v232_v54  ;;  %v379_v58 = vpop.f32.mrb[6].mxu1  ;;  %vm253_vm8 = vcmp.gt.f32.partialorder %v209_v51, 0.0  ;;  %v269_v59 = vmul.f32 0.1, %v209_v51 }
 0x101   :  { %304 = vst [vmem:[%s552_s3 + $0x48] sm:$0xff] %v288_v50  ;;  %vm261_vm9 = vcmp.gt.f32.partialorder %v241_v52, 0.0  ;;  %v277_v60 = vmul.f32 0.1, %v241_v52  ;;  %vm251_vm10 = vcmp.gt.f32.partialorder %v201_v55, 0.0  ;;  %v212_v1 = vadd.f32 %v371_v57, %v483_v16  ;;  %v203_v3 = vpop.f32.mrb[7].mxu0 }
 0x102   :  { %v267_v61 = vmul.f32 0.1, %v201_v55  ;;  %vm259_vm11 = vcmp.gt.f32.partialorder %v233_v56, 0.0  ;;  %v275_v62 = vmul.f32 0.1, %v233_v56  ;;  %v285_v63 = vsel %vm253_vm8, %v209_v51, %v269_v59  ;;  %v235_v4 = vpop.f32.mrb[7].mxu1 }
 0x103   :  { %v293_v0 = vsel %vm261_vm9, %v241_v52, %v277_v60  ;;  %v244_v2 = vadd.f32 %v379_v58, %v483_v16  ;;  %301 = vst [vmem:[%s552_s3 + $0x30] sm:$0xff] %v285_v63  ;;  %v204_v7 = vadd.f32 %v483_v16, %v203_v3  ;;  %v236_v8 = vadd.f32 %v483_v16, %v235_v4 }
 0x104   :  { %309 = vst [vmem:[%s552_s3 + $0x70] sm:$0xff] %v293_v0  ;;  %v283_v5 = vsel %vm251_vm10, %v201_v55, %v267_v61  ;;  %v291_v6 = vsel %vm259_vm11, %v233_v56, %v275_v62  ;;  %vm254_vm12 = vcmp.gt.f32.partialorder %v212_v1, 0.0  ;;  %v270_v9 = vmul.f32 0.1, %v212_v1 }
 0x105   :  { %299 = vst [vmem:[%s552_s3 + $0x20] sm:$0xff] %v283_v5  ;;  %307 = vst [vmem:[%s552_s3 + $0x60] sm:$0xff] %v291_v6  ;;  %vm262_vm13 = vcmp.gt.f32.partialorder %v244_v2, 0.0  ;;  %v278_v10 = vmul.f32 0.1, %v244_v2  ;;  %vm252_vm14 = vcmp.gt.f32.partialorder %v204_v7, 0.0 }
 0x106   :  { %v268_v11 = vmul.f32 0.1, %v204_v7  ;;  %vm260_vm15 = vcmp.gt.f32.partialorder %v236_v8, 0.0  ;;  %v276_v12 = vmul.f32 0.1, %v236_v8  ;;  %v286_v13 = vsel %vm254_vm12, %v212_v1, %v270_v9 }
 0x107   :  { %v294_v14 = vsel %vm262_vm13, %v244_v2, %v278_v10  ;;  %302 = vst [vmem:[%s552_s3 + $0x38] sm:$0xff] %v286_v13 }
 0x108   :  { %310 = vst [vmem:[%s552_s3 + $0x78] sm:$0xff] %v294_v14  ;;  %v284_v15 = vsel %vm252_vm14, %v204_v7, %v268_v11  ;;  %v292_v16 = vsel %vm260_vm15, %v236_v8, %v276_v12 }
 0x109   :  { %300 = vst [vmem:[%s552_s3 + $0x28] sm:$0xff] %v284_v15  ;;  %308 = vst [vmem:[%s552_s3 + $0x68] sm:$0xff] %v292_v16 }

// kernel: _lambda_.11
= control target key start
LH: loop header
LB: loop body
LE: loop exit
PB: predicated region body
PF: predicated region fallthrough
CT: control target
= control target key end

     0   :  { %s749_s1 = inlined_call_operand.vmem [shape: bf16[256,128], index: 1, kind: input, shape index: {}]   ;;  %s750_s0 = inlined_call_operand.vmem [shape: bf16[128,256], index: 0, kind: input, shape index: {}]   ;;  %s751_s2 = inlined_call_operand.vmem [shape: f32[1,128], index: 2, kind: input, shape index: {}]   ;;  %s752_s3 = inlined_call_operand.vmem [shape: f32[128,128], index: 3, kind: output, shape index: {}]  }
   0x1   :  { %v524_v0 = vld [vmem:[%s749_s1 + $0x40] sm:$0xff]   ;;  %v526_v2 = vld [vmem:[%s749_s1 + $0x48] sm:$0xff]   ;;  %v528_v4 = vld [vmem:[%s749_s1 + $0x50] sm:$0xff]  }
   0x2   :  { %v525_v1 = vld [vmem:[%s749_s1] sm:$0xff]   ;;  %444 = vmatprep.subr.bf16.mxu0 %v524_v0  ;;  %508 = vmatprep.subr.bf16.mxu1 %v524_v0  ;;  %v527_v3 = vld [vmem:[%s749_s1 + $0x8] sm:$0xff]   ;;  %v529_v5 = vld [vmem:[%s749_s1 + $0x10] sm:$0xff]  }
   0x3   :  { %445 = vmatpush3.bf16.msra.mxu0 %v525_v1  ;;  %516 = vmatpush3.bf16.msra.mxu1 %v525_v1  ;;  %v530_v6 = vld [vmem:[%s749_s1 + $0x58] sm:$0xff]   ;;  %v532_v8 = vld [vmem:[%s749_s1 + $0x60] sm:$0xff]   ;;  %v534_v10 = vld [vmem:[%s749_s1 + $0x68] sm:$0xff]  }
   0x4   :  { %446 = vmatprep.subr.bf16.mxu0 %v526_v2  ;;  %509 = vmatprep.subr.bf16.mxu1 %v526_v2  ;;  %v531_v7 = vld [vmem:[%s749_s1 + $0x18] sm:$0xff]   ;;  %v533_v9 = vld [vmem:[%s749_s1 + $0x20] sm:$0xff]   ;;  %v535_v13 = vld [vmem:[%s749_s1 + $0x28] sm:$0xff]  }
   0x5   :  { %v542_v11 = vld [vmem:[%s750_s0 + $0x4] ss:$8 sps:$4 sm:$0xff]   ;;  %v536_v14 = vld [vmem:[%s749_s1 + $0x70] sm:$0xff]   ;;  %v538_v16 = vld [vmem:[%s749_s1 + $0x78] sm:$0xff]  }
   0x6   :  { %v545_v12 = vld [vmem:[%s750_s0 + $0x44] ss:$8 sps:$4 sm:$0xff]   ;;  %278 = vmatprep.mubr.bf16.mxu0 %v542_v11  ;;  %v537_v15 = vld [vmem:[%s749_s1 + $0x30] sm:$0xff]   ;;  %v539_v17 = vld [vmem:[%s749_s1 + $0x38] sm:$0xff]  }
   0x7   :  { %447 = vmatpush3.bf16.msra.mxu0 %v527_v3  ;;  %517 = vmatpush3.bf16.msra.mxu1 %v527_v3  ;;  %v540_v18 = vld [vmem:[%s750_s0] ss:$8 sps:$4 sm:$0xff]   ;;  %v546_v20 = vld [vmem:[%s750_s0 + $0x14] ss:$8 sps:$4 sm:$0xff]   ;;  %v550_v22 = vld [vmem:[%s750_s0 + $0x10] ss:$8 sps:$4 sm:$0xff]  }
   0x8   :  { %448 = vmatprep.subr.bf16.mxu0 %v528_v4  ;;  %510 = vmatprep.subr.bf16.mxu1 %v528_v4  ;;  %v543_v19 = vld [vmem:[%s750_s0 + $0x40] ss:$8 sps:$4 sm:$0xff]   ;;  %v548_v21 = vld [vmem:[%s750_s0 + $0x54] ss:$8 sps:$4 sm:$0xff]   ;;  %v551_v23 = vld [vmem:[%s750_s0 + $0x50] ss:$8 sps:$4 sm:$0xff]  }
   0x9   :  { %310 = vmatprep.mubr.bf16.mxu1 %v545_v12  ;;  %v552_v24 = vld [vmem:[%s750_s0 + $0x24] ss:$8 sps:$4 sm:$0xff]   ;;  %v556_v26 = vld [vmem:[%s750_s0 + $0x20] ss:$8 sps:$4 sm:$0xff]   ;;  %v558_v28 = vld [vmem:[%s750_s0 + $0x34] ss:$8 sps:$4 sm:$0xff]  }
   0xa   :  { %v554_v25 = vld [vmem:[%s750_s0 + $0x64] ss:$8 sps:$4 sm:$0xff]   ;;  %v557_v27 = vld [vmem:[%s750_s0 + $0x60] ss:$8 sps:$4 sm:$0xff]   ;;  %v560_v29 = vld [vmem:[%s750_s0 + $0x74] ss:$8 sps:$4 sm:$0xff]  }
   0xb   :  { %449 = vmatpush3.bf16.msra.mxu0 %v529_v5  ;;  %518 = vmatpush3.bf16.msra.mxu1 %v529_v5  ;;  %v562_v30 = vld [vmem:[%s750_s0 + $0x30] ss:$8 sps:$4 sm:$0xff]   ;;  %v683_v34 = vld [vmem:[%s751_s2] ss:$0 sm:$0xff] }
   0xc   :  { %450 = vmatprep.subr.bf16.mxu0 %v530_v6  ;;  %511 = vmatprep.subr.bf16.mxu1 %v530_v6  ;;  %v563_v31 = vld [vmem:[%s750_s0 + $0x70] ss:$8 sps:$4 sm:$0xff]  }
   0xf   :  { %451 = vmatpush3.bf16.msra.mxu0 %v531_v7  ;;  %519 = vmatpush3.bf16.msra.mxu1 %v531_v7 }
  0x10   :  { %452 = vmatprep.subr.bf16.mxu0 %v532_v8  ;;  %512 = vmatprep.subr.bf16.mxu1 %v532_v8 }
  0x13   :  { %453 = vmatpush3.bf16.msra.mxu0 %v533_v9  ;;  %520 = vmatpush3.bf16.msra.mxu1 %v533_v9 }
  0x14   :  { %454 = vmatprep.subr.bf16.mxu0 %v534_v10  ;;  %513 = vmatprep.subr.bf16.mxu1 %v534_v10 }
  0x17   :  { %455 = vmatpush3.bf16.msra.mxu0 %v535_v13  ;;  %521 = vmatpush3.bf16.msra.mxu1 %v535_v13 }
  0x18   :  { %456 = vmatprep.subr.bf16.mxu0 %v536_v14  ;;  %514 = vmatprep.subr.bf16.mxu1 %v536_v14 }
  0x1b   :  { %457 = vmatpush3.bf16.msra.mxu0 %v537_v15  ;;  %522 = vmatpush3.bf16.msra.mxu1 %v537_v15 }
  0x1c   :  { %458 = vmatprep.subr.bf16.mxu0 %v538_v16  ;;  %515 = vmatprep.subr.bf16.mxu1 %v538_v16 }
  0x1f   :  { %459 = vmatpush3.bf16.msra.mxu0 %v539_v17  ;;  %523 = vmatpush3.bf16.msra.mxu1 %v539_v17 }
  0x22   :  { %279 = vmatmul.mubr.bf16.vlgmr.msra.gmra.mrb[0].mxu0 %v540_v18  ;;  %311 = vmatmul.mubr.bf16.vlgmr.msra.gmra.mrb[0].mxu1 %v543_v19 }
  0x23   :  { %286 = vmatprep.mubr.bf16.mxu0 %v546_v20  ;;  %318 = vmatprep.mubr.bf16.mxu1 %v548_v21 }
  0x2a   :  { %287 = vmatmul.mubr.bf16.gmra.mrb[4].mxu0 %v550_v22  ;;  %319 = vmatmul.mubr.bf16.gmra.mrb[4].mxu1 %v551_v23 }
  0x2b   :  { %294 = vmatprep.mubr.bf16.mxu0 %v552_v24  ;;  %326 = vmatprep.mubr.bf16.mxu1 %v554_v25 }
  0x32   :  { %295 = vmatmul.mubr.bf16.gmra.mrb[8].mxu0 %v556_v26  ;;  %327 = vmatmul.mubr.bf16.gmra.mrb[8].mxu1 %v557_v27 }
  0x33   :  { %302 = vmatprep.mubr.bf16.mxu0 %v558_v28  ;;  %334 = vmatprep.mubr.bf16.mxu1 %v560_v29 }
  0x3a   :  { %303 = vmatmul.mubr.bf16.gmra.mrb[12].mxu0 %v562_v30  ;;  %335 = vmatmul.mubr.bf16.gmra.mrb[12].mxu1 %v563_v31 }
  0xf5   :  { %v460_v32 = vpop.f32.mrb[0].mxu0  ;;  %v484_v33 = vpop.f32.mrb[0].mxu1 }
  0xf6   :  { %v461_v35 = vpop.f32.mrb[1].mxu0  ;;  %v485_v36 = vpop.f32.mrb[1].mxu1 }
  0xf7   :  { %v462_v37 = vadd.f32 %v461_v35, %v460_v32  ;;  %v486_v38 = vadd.f32 %v485_v36, %v484_v33  ;;  %v463_v39 = vpop.f32.mrb[2].mxu0  ;;  %v487_v40 = vpop.f32.mrb[2].mxu1 }
  0xf8   :  { %v464_v41 = vpop.f32.mrb[3].mxu0  ;;  %v488_v42 = vpop.f32.mrb[3].mxu1 }
  0xf9   :  { %v281_v43 = vadd.f32 %v462_v37, %v683_v34  ;;  %v313_v44 = vadd.f32 %v486_v38, %v683_v34  ;;  %v465_v45 = vadd.f32 %v464_v41, %v463_v39  ;;  %v489_v46 = vadd.f32 %v488_v42, %v487_v40 }
  0xfb   :  { %vm343_vm0 = vcmp.gt.f32.partialorder %v281_v43, 0.0  ;;  %v359_v47 = vmul.f32 0.1, %v281_v43  ;;  %vm351_vm1 = vcmp.gt.f32.partialorder %v313_v44, 0.0  ;;  %v367_v48 = vmul.f32 0.1, %v313_v44 }
  0xfc   :  { %v284_v49 = vadd.f32 %v465_v45, %v683_v34  ;;  %v316_v50 = vadd.f32 %v489_v46, %v683_v34 }
  0xfd   :  { %v375_v51 = vsel %vm343_vm0, %v281_v43, %v359_v47  ;;  %v383_v52 = vsel %vm351_vm1, %v313_v44, %v367_v48  ;;  %v466_v53 = vpop.f32.mrb[4].mxu0  ;;  %v490_v54 = vpop.f32.mrb[4].mxu1 }
  0xfe   :  { %391 = vst [vmem:[%s752_s3] sm:$0xff] %v375_v51  ;;  %399 = vst [vmem:[%s752_s3 + $0x40] sm:$0xff] %v383_v52  ;;  %vm344_vm2 = vcmp.gt.f32.partialorder %v284_v49, 0.0  ;;  %v360_v55 = vmul.f32 0.1, %v284_v49  ;;  %vm352_vm3 = vcmp.gt.f32.partialorder %v316_v50, 0.0  ;;  %v467_v57 = vpop.f32.mrb[5].mxu0 }
  0xff   :  { %v368_v56 = vmul.f32 0.1, %v316_v50  ;;  %v491_v58 = vpop.f32.mrb[5].mxu1  ;;  %v468_v61 = vadd.f32 %v467_v57, %v466_v53  ;;  %v469_v63 = vpop.f32.mrb[6].mxu0 }
 0x100   :  { %v376_v59 = vsel %vm344_vm2, %v284_v49, %v360_v55  ;;  %v492_v62 = vadd.f32 %v491_v58, %v490_v54  ;;  %v493_v0 = vpop.f32.mrb[6].mxu1  ;;  %v470_v1 = vpop.f32.mrb[7].mxu0 }
 0x101   :  { %v384_v60 = vsel %vm352_vm3, %v316_v50, %v368_v56  ;;  %392 = vst [vmem:[%s752_s3 + $0x8] sm:$0xff] %v376_v59  ;;  %v494_v2 = vpop.f32.mrb[7].mxu1  ;;  %v289_v3 = vadd.f32 %v468_v61, %v683_v34  ;;  %v471_v5 = vadd.f32 %v470_v1, %v469_v63 }
 0x102   :  { %400 = vst [vmem:[%s752_s3 + $0x48] sm:$0xff] %v384_v60  ;;  %v321_v4 = vadd.f32 %v492_v62, %v683_v34  ;;  %v495_v6 = vadd.f32 %v494_v2, %v493_v0 }
 0x103   :  { %vm345_vm4 = vcmp.gt.f32.partialorder %v289_v3, 0.0  ;;  %v361_v7 = vmul.f32 0.1, %v289_v3  ;;  %v292_v9 = vadd.f32 %v471_v5, %v683_v34 }
 0x104   :  { %vm353_vm5 = vcmp.gt.f32.partialorder %v321_v4, 0.0  ;;  %v369_v8 = vmul.f32 0.1, %v321_v4  ;;  %v324_v10 = vadd.f32 %v495_v6, %v683_v34 }
 0x105   :  { %v472_v11 = vpop.f32.mrb[8].mxu0  ;;  %v496_v12 = vpop.f32.mrb[8].mxu1  ;;  %v377_v13 = vsel %vm345_vm4, %v289_v3, %v361_v7  ;;  %vm346_vm6 = vcmp.gt.f32.partialorder %v292_v9, 0.0  ;;  %v362_v17 = vmul.f32 0.1, %v292_v9 }
 0x106   :  { %v385_v14 = vsel %vm353_vm5, %v321_v4, %v369_v8  ;;  %v473_v15 = vpop.f32.mrb[9].mxu0  ;;  %v497_v16 = vpop.f32.mrb[9].mxu1  ;;  %393 = vst [vmem:[%s752_s3 + $0x10] sm:$0xff] %v377_v13  ;;  %vm354_vm7 = vcmp.gt.f32.partialorder %v324_v10, 0.0  ;;  %v370_v18 = vmul.f32 0.1, %v324_v10 }
 0x107   :  { %401 = vst [vmem:[%s752_s3 + $0x50] sm:$0xff] %v385_v14  ;;  %v474_v19 = vadd.f32 %v473_v15, %v472_v11  ;;  %v498_v20 = vadd.f32 %v497_v16, %v496_v12  ;;  %v475_v21 = vpop.f32.mrb[10].mxu0  ;;  %v499_v22 = vpop.f32.mrb[10].mxu1  ;;  %v378_v23 = vsel %vm346_vm6, %v292_v9, %v362_v17 }
 0x108   :  { %v386_v24 = vsel %vm354_vm7, %v324_v10, %v370_v18  ;;  %v476_v25 = vpop.f32.mrb[11].mxu0  ;;  %v500_v26 = vpop.f32.mrb[11].mxu1  ;;  %394 = vst [vmem:[%s752_s3 + $0x18] sm:$0xff] %v378_v23 }
 0x109   :  { %402 = vst [vmem:[%s752_s3 + $0x58] sm:$0xff] %v386_v24  ;;  %v297_v27 = vadd.f32 %v474_v19, %v683_v34  ;;  %v329_v28 = vadd.f32 %v498_v20, %v683_v34  ;;  %v477_v29 = vadd.f32 %v476_v25, %v475_v21  ;;  %v501_v30 = vadd.f32 %v500_v26, %v499_v22 }
 0x10b   :  { %vm347_vm8 = vcmp.gt.f32.partialorder %v297_v27, 0.0  ;;  %v363_v31 = vmul.f32 0.1, %v297_v27  ;;  %vm355_vm9 = vcmp.gt.f32.partialorder %v329_v28, 0.0  ;;  %v371_v32 = vmul.f32 0.1, %v329_v28 }
 0x10c   :  { %v300_v33 = vadd.f32 %v477_v29, %v683_v34  ;;  %v332_v35 = vadd.f32 %v501_v30, %v683_v34 }
 0x10d   :  { %v478_v36 = vpop.f32.mrb[12].mxu0  ;;  %v502_v37 = vpop.f32.mrb[12].mxu1  ;;  %v379_v38 = vsel %vm347_vm8, %v297_v27, %v363_v31  ;;  %v387_v39 = vsel %vm355_vm9, %v329_v28, %v371_v32 }
 0x10e   :  { %v479_v40 = vpop.f32.mrb[13].mxu0  ;;  %v503_v41 = vpop.f32.mrb[13].mxu1  ;;  %395 = vst [vmem:[%s752_s3 + $0x20] sm:$0xff] %v379_v38  ;;  %403 = vst [vmem:[%s752_s3 + $0x60] sm:$0xff] %v387_v39  ;;  %vm348_vm10 = vcmp.gt.f32.partialorder %v300_v33, 0.0  ;;  %vm356_vm11 = vcmp.gt.f32.partialorder %v332_v35, 0.0 }
 0x10f   :  { %v364_v42 = vmul.f32 0.1, %v300_v33  ;;  %v372_v43 = vmul.f32 0.1, %v332_v35  ;;  %v480_v44 = vadd.f32 %v479_v40, %v478_v36  ;;  %v504_v45 = vadd.f32 %v503_v41, %v502_v37  ;;  %v481_v46 = vpop.f32.mrb[14].mxu0  ;;  %v505_v47 = vpop.f32.mrb[14].mxu1 }
 0x110   :  { %v482_v50 = vpop.f32.mrb[15].mxu0  ;;  %v506_v51 = vpop.f32.mrb[15].mxu1 }
 0x111   :  { %v380_v48 = vsel %vm348_vm10, %v300_v33, %v364_v42  ;;  %v388_v49 = vsel %vm356_vm11, %v332_v35, %v372_v43  ;;  %v305_v52 = vadd.f32 %v480_v44, %v683_v34  ;;  %v337_v53 = vadd.f32 %v504_v45, %v683_v34 }
 0x112   :  { %396 = vst [vmem:[%s752_s3 + $0x28] sm:$0xff] %v380_v48  ;;  %404 = vst [vmem:[%s752_s3 + $0x68] sm:$0xff] %v388_v49  ;;  %v483_v54 = vadd.f32 %v482_v50, %v481_v46  ;;  %v507_v55 = vadd.f32 %v506_v51, %v505_v47 }
 0x113   :  { %vm349_vm12 = vcmp.gt.f32.partialorder %v305_v52, 0.0  ;;  %v365_v56 = vmul.f32 0.1, %v305_v52  ;;  %vm357_vm13 = vcmp.gt.f32.partialorder %v337_v53, 0.0  ;;  %v373_v57 = vmul.f32 0.1, %v337_v53 }
 0x114   :  { %v308_v58 = vadd.f32 %v483_v54, %v683_v34  ;;  %v340_v59 = vadd.f32 %v507_v55, %v683_v34 }
 0x115   :  { %v381_v60 = vsel %vm349_vm12, %v305_v52, %v365_v56  ;;  %v389_v61 = vsel %vm357_vm13, %v337_v53, %v373_v57 }
 0x116   :  { %397 = vst [vmem:[%s752_s3 + $0x30] sm:$0xff] %v381_v60  ;;  %405 = vst [vmem:[%s752_s3 + $0x70] sm:$0xff] %v389_v61  ;;  %vm350_vm14 = vcmp.gt.f32.partialorder %v308_v58, 0.0  ;;  %v366_v62 = vmul.f32 0.1, %v308_v58  ;;  %vm358_vm15 = vcmp.gt.f32.partialorder %v340_v59, 0.0 }
 0x117   :  { %v374_v63 = vmul.f32 0.1, %v340_v59 }
 0x118   :  { %v382_v0 = vsel %vm350_vm14, %v308_v58, %v366_v62 }
 0x119   :  { %v390_v1 = vsel %vm358_vm15, %v340_v59, %v374_v63  ;;  %398 = vst [vmem:[%s752_s3 + $0x38] sm:$0xff] %v382_v0 }
 0x11a   :  { %406 = vst [vmem:[%s752_s3 + $0x78] sm:$0xff] %v390_v1 }

// kernel: _lambda_.12
= control target key start
LH: loop header
LB: loop body
LE: loop exit
PB: predicated region body
PF: predicated region fallthrough
CT: control target
= control target key end

     0   :  { %s425_s1 = inlined_call_operand.vmem [shape: bf16[256,128], index: 1, kind: input, shape index: {}]   ;;  %s426_s0 = inlined_call_operand.vmem [shape: bf16[32,256], index: 0, kind: input, shape index: {}]   ;;  %s427_s2 = inlined_call_operand.vmem [shape: f32[1,128], index: 2, kind: input, shape index: {}]   ;;  %s428_s3 = inlined_call_operand.vmem [shape: f32[32,128], index: 3, kind: output, shape index: {}]  }
   0x1   :  { %v308_v0 = vld [vmem:[%s425_s1 + $0x40] sm:$0xff]   ;;  %v310_v2 = vld [vmem:[%s425_s1 + $0x48] sm:$0xff]   ;;  %v312_v4 = vld [vmem:[%s425_s1 + $0x50] sm:$0xff]  }
   0x2   :  { %v309_v1 = vld [vmem:[%s425_s1] sm:$0xff]   ;;  %264 = vmatprep.subr.bf16.mxu0 %v308_v0  ;;  %292 = vmatprep.subr.bf16.mxu1 %v308_v0  ;;  %v311_v3 = vld [vmem:[%s425_s1 + $0x8] sm:$0xff]   ;;  %v313_v5 = vld [vmem:[%s425_s1 + $0x10] sm:$0xff]  }
   0x3   :  { %265 = vmatpush3.bf16.msra.mxu0 %v309_v1  ;;  %300 = vmatpush3.bf16.msra.mxu1 %v309_v1  ;;  %v314_v6 = vld [vmem:[%s425_s1 + $0x58] sm:$0xff]   ;;  %v316_v8 = vld [vmem:[%s425_s1 + $0x60] sm:$0xff]   ;;  %v318_v10 = vld [vmem:[%s425_s1 + $0x68] sm:$0xff]  }
   0x4   :  { %266 = vmatprep.subr.bf16.mxu0 %v310_v2  ;;  %293 = vmatprep.subr.bf16.mxu1 %v310_v2  ;;  %v315_v7 = vld [vmem:[%s425_s1 + $0x18] sm:$0xff]   ;;  %v317_v9 = vld [vmem:[%s425_s1 + $0x20] sm:$0xff]   ;;  %v319_v13 = vld [vmem:[%s425_s1 + $0x28] sm:$0xff]  }
   0x5   :  { %v326_v11 = vld [vmem:[%s426_s0 + $0x4] ss:$8 sps:$4 sm:$0xff]   ;;  %v329_v12 = vld [vmem:[%s426_s0 + $0x14] ss:$8 sps:$4 sm:$0xff]   ;;  %v324_v18 = vld [vmem:[%s426_s0] ss:$8 sps:$4 sm:$0xff]  }
   0x6   :  { %v320_v14 = vld [vmem:[%s425_s1 + $0x70] sm:$0xff]   ;;  %206 = vmatprep.mubr.bf16.mxu0 %v326_v11  ;;  %214 = vmatprep.mubr.bf16.mxu1 %v329_v12  ;;  %v322_v16 = vld [vmem:[%s425_s1 + $0x78] sm:$0xff]   ;;  %v243_v22 = vld [vmem:[%s427_s2] ss:$0 sm:$0xff] }
   0x7   :  { %267 = vmatpush3.bf16.msra.mxu0 %v311_v3  ;;  %301 = vmatpush3.bf16.msra.mxu1 %v311_v3  ;;  %v321_v15 = vld [vmem:[%s425_s1 + $0x30] sm:$0xff]   ;;  %v323_v17 = vld [vmem:[%s425_s1 + $0x38] sm:$0xff]  }
   0x8   :  { %268 = vmatprep.subr.bf16.mxu0 %v312_v4  ;;  %294 = vmatprep.subr.bf16.mxu1 %v312_v4  ;;  %v327_v19 = vld [vmem:[%s426_s0 + $0x10] ss:$8 sps:$4 sm:$0xff]  }
   0xb   :  { %269 = vmatpush3.bf16.msra.mxu0 %v313_v5  ;;  %302 = vmatpush3.bf16.msra.mxu1 %v313_v5 }
   0xc   :  { %270 = vmatprep.subr.bf16.mxu0 %v314_v6  ;;  %295 = vmatprep.subr.bf16.mxu1 %v314_v6 }
   0xf   :  { %271 = vmatpush3.bf16.msra.mxu0 %v315_v7  ;;  %303 = vmatpush3.bf16.msra.mxu1 %v315_v7 }
  0x10   :  { %272 = vmatprep.subr.bf16.mxu0 %v316_v8  ;;  %296 = vmatprep.subr.bf16.mxu1 %v316_v8 }
  0x13   :  { %273 = vmatpush3.bf16.msra.mxu0 %v317_v9  ;;  %304 = vmatpush3.bf16.msra.mxu1 %v317_v9 }
  0x14   :  { %274 = vmatprep.subr.bf16.mxu0 %v318_v10  ;;  %297 = vmatprep.subr.bf16.mxu1 %v318_v10 }
  0x17   :  { %275 = vmatpush3.bf16.msra.mxu0 %v319_v13  ;;  %305 = vmatpush3.bf16.msra.mxu1 %v319_v13 }
  0x18   :  { %276 = vmatprep.subr.bf16.mxu0 %v320_v14  ;;  %298 = vmatprep.subr.bf16.mxu1 %v320_v14 }
  0x1b   :  { %277 = vmatpush3.bf16.msra.mxu0 %v321_v15  ;;  %306 = vmatpush3.bf16.msra.mxu1 %v321_v15 }
  0x1c   :  { %278 = vmatprep.subr.bf16.mxu0 %v322_v16  ;;  %299 = vmatprep.subr.bf16.mxu1 %v322_v16 }
  0x1f   :  { %279 = vmatpush3.bf16.msra.mxu0 %v323_v17  ;;  %307 = vmatpush3.bf16.msra.mxu1 %v323_v17 }
  0x22   :  { %207 = vmatmul.mubr.bf16.vlgmr.msra.gmra.mrb[0].mxu0 %v324_v18  ;;  %215 = vmatmul.mubr.bf16.vlgmr.msra.gmra.mrb[0].mxu1 %v327_v19 }
  0xf5   :  { %v280_v20 = vpop.f32.mrb[0].mxu0  ;;  %v286_v21 = vpop.f32.mrb[0].mxu1 }
  0xf6   :  { %v281_v23 = vpop.f32.mrb[1].mxu0  ;;  %v287_v24 = vpop.f32.mrb[1].mxu1 }
  0xf7   :  { %v282_v25 = vadd.f32 %v281_v23, %v280_v20  ;;  %v288_v26 = vadd.f32 %v287_v24, %v286_v21  ;;  %v283_v27 = vpop.f32.mrb[2].mxu0  ;;  %v289_v28 = vpop.f32.mrb[2].mxu1 }
  0xf8   :  { %v284_v29 = vpop.f32.mrb[3].mxu0  ;;  %v290_v30 = vpop.f32.mrb[3].mxu1 }
  0xf9   :  { %v209_v31 = vadd.f32 %v282_v25, %v243_v22  ;;  %v217_v32 = vadd.f32 %v288_v26, %v243_v22  ;;  %v285_v33 = vadd.f32 %v284_v29, %v283_v27  ;;  %v291_v34 = vadd.f32 %v290_v30, %v289_v28 }
  0xfb   :  { %vm223_vm0 = vcmp.gt.f32.partialorder %v209_v31, 0.0  ;;  %v227_v35 = vmul.f32 0.1, %v209_v31  ;;  %vm225_vm1 = vcmp.gt.f32.partialorder %v217_v32, 0.0  ;;  %v229_v36 = vmul.f32 0.1, %v217_v32 }
  0xfc   :  { %v212_v37 = vadd.f32 %v285_v33, %v243_v22  ;;  %v220_v38 = vadd.f32 %v291_v34, %v243_v22 }
  0xfd   :  { %v231_v39 = vsel %vm223_vm0, %v209_v31, %v227_v35  ;;  %v233_v40 = vsel %vm225_vm1, %v217_v32, %v229_v36 }
  0xfe   :  { %235 = vst [vmem:[%s428_s3] sm:$0xff] %v231_v39  ;;  %237 = vst [vmem:[%s428_s3 + $0x10] sm:$0xff] %v233_v40  ;;  %vm224_vm2 = vcmp.gt.f32.partialorder %v212_v37, 0.0  ;;  %v228_v41 = vmul.f32 0.1, %v212_v37  ;;  %vm226_vm3 = vcmp.gt.f32.partialorder %v220_v38, 0.0 }
  0xff   :  { %v230_v42 = vmul.f32 0.1, %v220_v38 }
 0x100   :  { %v232_v43 = vsel %vm224_vm2, %v212_v37, %v228_v41 }
 0x101   :  { %v234_v44 = vsel %vm226_vm3, %v220_v38, %v230_v42  ;;  %236 = vst [vmem:[%s428_s3 + $0x8] sm:$0xff] %v232_v43 }
 0x102   :  { %238 = vst [vmem:[%s428_s3 + $0x18] sm:$0xff] %v234_v44 }

// kernel: _lambda_.16
= control target key start
LH: loop header
LB: loop body
LE: loop exit
PB: predicated region body
PF: predicated region fallthrough
CT: control target
= control target key end

     0   :  { %s483_s1 = inlined_call_operand.vmem [shape: bf16[128,128], index: 1, kind: input, shape index: {}]   ;;  %s484_s0 = inlined_call_operand.vmem [shape: bf16[128,128], index: 0, kind: input, shape index: {}]   ;;  %s485_s2 = inlined_call_operand.vmem [shape: f32[1,128], index: 2, kind: input, shape index: {}]   ;;  %s486_s3 = inlined_call_operand.vmem [shape: f32[128,128], index: 3, kind: output, shape index: {}]  }
   0x1   :  { %v348_v0 = vld [vmem:[%s483_s1] sm:$0xff]   ;;  %v349_v1 = vld [vmem:[%s483_s1 + $0x8] sm:$0xff]   ;;  %v350_v2 = vld [vmem:[%s483_s1 + $0x10] sm:$0xff]  }
   0x2   :  { %300 = vmatprep.subr.bf16.mxu0 %v348_v0  ;;  %332 = vmatprep.subr.bf16.mxu1 %v348_v0  ;;  %v351_v3 = vld [vmem:[%s483_s1 + $0x18] sm:$0xff]   ;;  %v356_v4 = vld [vmem:[%s484_s0] sm:$0xff]   ;;  %v353_v7 = vld [vmem:[%s483_s1 + $0x28] sm:$0xff]  }
   0x3   :  { %301 = vmatpush3.bf16.msra.mxu0 %v348_v0  ;;  %340 = vmatpush3.bf16.msra.mxu1 %v348_v0  ;;  %v357_v5 = vld [vmem:[%s484_s0 + $0x20] sm:$0xff]   ;;  %v354_v8 = vld [vmem:[%s483_s1 + $0x30] sm:$0xff]   ;;  %v355_v9 = vld [vmem:[%s483_s1 + $0x38] sm:$0xff]  }
   0x4   :  { %302 = vmatprep.subr.bf16.mxu0 %v349_v1  ;;  %333 = vmatprep.subr.bf16.mxu1 %v349_v1  ;;  %v352_v6 = vld [vmem:[%s483_s1 + $0x20] sm:$0xff]   ;;  %v358_v10 = vld [vmem:[%s484_s0 + $0x8] sm:$0xff]   ;;  %v360_v12 = vld [vmem:[%s484_s0 + $0x10] sm:$0xff]  }
   0x5   :  { %316 = vmatprep.mubr.bf16.mxu0 %v356_v4  ;;  %324 = vmatprep.mubr.bf16.mxu1 %v357_v5  ;;  %v359_v11 = vld [vmem:[%s484_s0 + $0x28] sm:$0xff]   ;;  %v361_v13 = vld [vmem:[%s484_s0 + $0x30] sm:$0xff]   ;;  %v362_v14 = vld [vmem:[%s484_s0 + $0x18] sm:$0xff]  }
   0x6   :  { %v363_v15 = vld [vmem:[%s484_s0 + $0x38] sm:$0xff]   ;;  %v267_v16 = vld [vmem:[%s485_s2] ss:$0 sm:$0xff] }
   0x7   :  { %303 = vmatpush3.bf16.msra.mxu0 %v349_v1  ;;  %341 = vmatpush3.bf16.msra.mxu1 %v349_v1 }
   0x8   :  { %304 = vmatprep.subr.bf16.mxu0 %v350_v2  ;;  %334 = vmatprep.subr.bf16.mxu1 %v350_v2 }
   0xb   :  { %305 = vmatpush3.bf16.msra.mxu0 %v350_v2  ;;  %342 = vmatpush3.bf16.msra.mxu1 %v350_v2 }
   0xc   :  { %306 = vmatprep.subr.bf16.mxu0 %v351_v3  ;;  %335 = vmatprep.subr.bf16.mxu1 %v351_v3 }
   0xf   :  { %307 = vmatpush3.bf16.msra.mxu0 %v351_v3  ;;  %343 = vmatpush3.bf16.msra.mxu1 %v351_v3 }
  0x10   :  { %308 = vmatprep.subr.bf16.mxu0 %v352_v6  ;;  %336 = vmatprep.subr.bf16.mxu1 %v352_v6 }
  0x13   :  { %309 = vmatpush3.bf16.msra.mxu0 %v352_v6  ;;  %344 = vmatpush3.bf16.msra.mxu1 %v352_v6 }
  0x14   :  { %310 = vmatprep.subr.bf16.mxu0 %v353_v7  ;;  %337 = vmatprep.subr.bf16.mxu1 %v353_v7 }
  0x17   :  { %311 = vmatpush3.bf16.msra.mxu0 %v353_v7  ;;  %345 = vmatpush3.bf16.msra.mxu1 %v353_v7 }
  0x18   :  { %312 = vmatprep.subr.bf16.mxu0 %v354_v8  ;;  %338 = vmatprep.subr.bf16.mxu1 %v354_v8 }
  0x1b   :  { %313 = vmatpush3.bf16.msra.mxu0 %v354_v8  ;;  %346 = vmatpush3.bf16.msra.mxu1 %v354_v8 }
  0x1c   :  { %314 = vmatprep.subr.bf16.mxu0 %v355_v9  ;;  %339 = vmatprep.subr.bf16.mxu1 %v355_v9 }
  0x1f   :  { %315 = vmatpush3.bf16.msra.mxu0 %v355_v9  ;;  %347 = vmatpush3.bf16.msra.mxu1 %v355_v9 }
  0x22   :  { %317 = vmatmul.mubr.bf16.vlgmr.msra.gmra.mrb[0].mxu0 %v358_v10  ;;  %325 = vmatmul.mubr.bf16.vlgmr.msra.gmra.mrb[0].mxu1 %v359_v11 }
  0x23   :  { %320 = vmatprep.mubr.bf16.mxu0 %v360_v12  ;;  %328 = vmatprep.mubr.bf16.mxu1 %v361_v13 }
  0x2a   :  { %321 = vmatmul.mubr.bf16.gmra.mrb[4].mxu0 %v362_v14  ;;  %329 = vmatmul.mubr.bf16.gmra.mrb[4].mxu1 %v363_v15 }
  0xf5   :  { %v318_v17 = vpop.f32.mrb[0].mxu0  ;;  %v326_v18 = vpop.f32.mrb[0].mxu1 }
  0xf6   :  { %v193_v19 = vadd.f32 %v318_v17, %v267_v16  ;;  %v225_v20 = vadd.f32 %v326_v18, %v267_v16  ;;  %v184_v21 = vpop.f32.mrb[1].mxu0  ;;  %v216_v22 = vpop.f32.mrb[1].mxu1 }
  0xf7   :  { %v185_v23 = vadd.f32 %v267_v16, %v184_v21  ;;  %v217_v24 = vadd.f32 %v267_v16, %v216_v22  ;;  %v319_v25 = vpop.f32.mrb[2].mxu0  ;;  %v327_v26 = vpop.f32.mrb[2].mxu1 }
  0xf8   :  { %249 = vst [vmem:[%s486_s3 + $0x10] sm:$0xff] %v193_v19  ;;  %257 = vst [vmem:[%s486_s3 + $0x50] sm:$0xff] %v225_v20  ;;  %v196_v27 = vadd.f32 %v319_v25, %v267_v16  ;;  %v228_v28 = vadd.f32 %v327_v26, %v267_v16  ;;  %v187_v29 = vpop.f32.mrb[3].mxu0  ;;  %v219_v30 = vpop.f32.mrb[3].mxu1 }
  0xf9   :  { %247 = vst [vmem:[%s486_s3] sm:$0xff] %v185_v23  ;;  %255 = vst [vmem:[%s486_s3 + $0x40] sm:$0xff] %v217_v24  ;;  %v188_v31 = vadd.f32 %v267_v16, %v187_v29  ;;  %v220_v32 = vadd.f32 %v267_v16, %v219_v30 }
  0xfa   :  { %250 = vst [vmem:[%s486_s3 + $0x18] sm:$0xff] %v196_v27  ;;  %258 = vst [vmem:[%s486_s3 + $0x58] sm:$0xff] %v228_v28 }
  0xfb   :  { %248 = vst [vmem:[%s486_s3 + $0x8] sm:$0xff] %v188_v31  ;;  %256 = vst [vmem:[%s486_s3 + $0x48] sm:$0xff] %v220_v32 }
  0xfd   :  { %v322_v33 = vpop.f32.mrb[4].mxu0  ;;  %v330_v34 = vpop.f32.mrb[4].mxu1 }
  0xfe   :  { %v209_v35 = vadd.f32 %v322_v33, %v267_v16  ;;  %v241_v36 = vadd.f32 %v330_v34, %v267_v16  ;;  %v200_v37 = vpop.f32.mrb[5].mxu0  ;;  %v232_v38 = vpop.f32.mrb[5].mxu1 }
  0xff   :  { %v201_v39 = vadd.f32 %v267_v16, %v200_v37  ;;  %v233_v40 = vadd.f32 %v267_v16, %v232_v38  ;;  %v323_v41 = vpop.f32.mrb[6].mxu0  ;;  %v331_v42 = vpop.f32.mrb[6].mxu1 }
 0x100   :  { %253 = vst [vmem:[%s486_s3 + $0x30] sm:$0xff] %v209_v35  ;;  %261 = vst [vmem:[%s486_s3 + $0x70] sm:$0xff] %v241_v36  ;;  %v212_v43 = vadd.f32 %v323_v41, %v267_v16  ;;  %v244_v44 = vadd.f32 %v331_v42, %v267_v16  ;;  %v203_v45 = vpop.f32.mrb[7].mxu0  ;;  %v235_v46 = vpop.f32.mrb[7].mxu1 }
 0x101   :  { %251 = vst [vmem:[%s486_s3 + $0x20] sm:$0xff] %v201_v39  ;;  %259 = vst [vmem:[%s486_s3 + $0x60] sm:$0xff] %v233_v40  ;;  %v204_v47 = vadd.f32 %v267_v16, %v203_v45  ;;  %v236_v48 = vadd.f32 %v267_v16, %v235_v46 }
 0x102   :  { %254 = vst [vmem:[%s486_s3 + $0x38] sm:$0xff] %v212_v43  ;;  %262 = vst [vmem:[%s486_s3 + $0x78] sm:$0xff] %v244_v44 }
 0x103   :  { %252 = vst [vmem:[%s486_s3 + $0x28] sm:$0xff] %v204_v47  ;;  %260 = vst [vmem:[%s486_s3 + $0x68] sm:$0xff] %v236_v48 }

// kernel: _lambda_.15
= control target key start
LH: loop header
LB: loop body
LE: loop exit
PB: predicated region body
PF: predicated region fallthrough
CT: control target
= control target key end

     0   :  { %s1286_s1 = inlined_call_operand.vmem [shape: bf16[512,128], index: 1, kind: input, shape index: {}]   ;;  %s1287_s0 = inlined_call_operand.vmem [shape: bf16[128,512], index: 0, kind: input, shape index: {}]   ;;  %s1288_s2 = inlined_call_operand.vmem [shape: f32[1,128], index: 2, kind: input, shape index: {}]   ;;  %s1289_s3 = inlined_call_operand.vmem [shape: f32[128,128], index: 3, kind: output, shape index: {}]  }
   0x1   :  { %v925_v0 = vld [vmem:[%s1286_s1 + $0x40] sm:$0xff]   ;;  %v929_v4 = vld [vmem:[%s1286_s1 + $0x48] sm:$0xff]   ;;  %v933_v8 = vld [vmem:[%s1286_s1 + $0x50] sm:$0xff]  }
   0x2   :  { %v926_v1 = vld [vmem:[%s1286_s1 + $0xc0] sm:$0xff]   ;;  %797 = vmatprep.subr.bf16.mxu0 %v925_v0  ;;  %v930_v5 = vld [vmem:[%s1286_s1 + $0xc8] sm:$0xff]   ;;  %v934_v9 = vld [vmem:[%s1286_s1 + $0xd0] sm:$0xff]  }
   0x3   :  { %v927_v2 = vld [vmem:[%s1286_s1] sm:$0xff]   ;;  %861 = vmatprep.subr.bf16.mxu1 %v926_v1  ;;  %v931_v6 = vld [vmem:[%s1286_s1 + $0x8] sm:$0xff]   ;;  %v935_v10 = vld [vmem:[%s1286_s1 + $0x10] sm:$0xff]  }
   0x4   :  { %v928_v3 = vld [vmem:[%s1286_s1 + $0x80] sm:$0xff]   ;;  %798 = vmatpush3.bf16.msra.mxu0 %v927_v2  ;;  %v932_v7 = vld [vmem:[%s1286_s1 + $0x88] sm:$0xff]   ;;  %v936_v11 = vld [vmem:[%s1286_s1 + $0x90] sm:$0xff]  }
   0x5   :  { %862 = vmatpush3.bf16.msra.mxu1 %v928_v3  ;;  %799 = vmatprep.subr.bf16.mxu0 %v929_v4  ;;  %v937_v12 = vld [vmem:[%s1286_s1 + $0x58] sm:$0xff]   ;;  %v941_v16 = vld [vmem:[%s1286_s1 + $0x60] sm:$0xff]   ;;  %v945_v20 = vld [vmem:[%s1286_s1 + $0x68] sm:$0xff]  }
   0x6   :  { %863 = vmatprep.subr.bf16.mxu1 %v930_v5  ;;  %v938_v13 = vld [vmem:[%s1286_s1 + $0xd8] sm:$0xff]   ;;  %v942_v17 = vld [vmem:[%s1286_s1 + $0xe0] sm:$0xff]   ;;  %v946_v21 = vld [vmem:[%s1286_s1 + $0xe8] sm:$0xff]  }
   0x7   :  { %v939_v14 = vld [vmem:[%s1286_s1 + $0x18] sm:$0xff]   ;;  %v943_v18 = vld [vmem:[%s1286_s1 + $0x20] sm:$0xff]   ;;  %v947_v22 = vld [vmem:[%s1286_s1 + $0x28] sm:$0xff]  }
   0x8   :  { %800 = vmatpush3.bf16.msra.mxu0 %v931_v6  ;;  %v940_v15 = vld [vmem:[%s1286_s1 + $0x98] sm:$0xff]   ;;  %v944_v19 = vld [vmem:[%s1286_s1 + $0xa0] sm:$0xff]   ;;  %v948_v23 = vld [vmem:[%s1286_s1 + $0xa8] sm:$0xff]  }
   0x9   :  { %864 = vmatpush3.bf16.msra.mxu1 %v932_v7  ;;  %801 = vmatprep.subr.bf16.mxu0 %v933_v8  ;;  %v949_v24 = vld [vmem:[%s1286_s1 + $0x70] sm:$0xff]   ;;  %v953_v28 = vld [vmem:[%s1286_s1 + $0x78] sm:$0xff]   ;;  %v1220_v2 = vld [vmem:[%s1288_s2] ss:$0 sm:$0xff] }
   0xa   :  { %865 = vmatprep.subr.bf16.mxu1 %v934_v9  ;;  %v950_v25 = vld [vmem:[%s1286_s1 + $0xf0] sm:$0xff]   ;;  %v954_v29 = vld [vmem:[%s1286_s1 + $0xf8] sm:$0xff]  }
   0xb   :  { %v951_v26 = vld [vmem:[%s1286_s1 + $0x30] sm:$0xff]   ;;  %v955_v30 = vld [vmem:[%s1286_s1 + $0x38] sm:$0xff]  }
   0xc   :  { %802 = vmatpush3.bf16.msra.mxu0 %v935_v10  ;;  %v952_v27 = vld [vmem:[%s1286_s1 + $0xb0] sm:$0xff]   ;;  %v956_v31 = vld [vmem:[%s1286_s1 + $0xb8] sm:$0xff]  }
   0xd   :  { %866 = vmatpush3.bf16.msra.mxu1 %v936_v11  ;;  %803 = vmatprep.subr.bf16.mxu0 %v937_v12  ;;  %v957_v32 = vld [vmem:[%s1287_s0] ss:$16 sps:$4 sm:$0xff]   ;;  %v959_v33 = vld [vmem:[%s1287_s0 + $0x4] ss:$16 sps:$4 sm:$0xff]   ;;  %v960_v34 = vld [vmem:[%s1287_s0 + $0x8] ss:$16 sps:$4 sm:$0xff]  }
   0xe   :  { %867 = vmatprep.subr.bf16.mxu1 %v938_v13  ;;  %v962_v35 = vld [vmem:[%s1287_s0 + $0xc] ss:$16 sps:$4 sm:$0xff]   ;;  %502 = vmatprep.mubr.bf16.mxu0 %v959_v33  ;;  %v963_v36 = vld [vmem:[%s1287_s0 + $0x24] ss:$16 sps:$4 sm:$0xff]   ;;  %v967_v38 = vld [vmem:[%s1287_s0 + $0x20] ss:$16 sps:$4 sm:$0xff]  }
   0xf   :  { %599 = vmatprep.mubr.bf16.mxu1 %v962_v35  ;;  %v965_v37 = vld [vmem:[%s1287_s0 + $0x2c] ss:$16 sps:$4 sm:$0xff]   ;;  %v968_v39 = vld [vmem:[%s1287_s0 + $0x28] ss:$16 sps:$4 sm:$0xff]   ;;  %v969_v40 = vld [vmem:[%s1287_s0 + $0x44] ss:$16 sps:$4 sm:$0xff]  }
  0x10   :  { %804 = vmatpush3.bf16.msra.mxu0 %v939_v14  ;;  %v971_v41 = vld [vmem:[%s1287_s0 + $0x4c] ss:$16 sps:$4 sm:$0xff]   ;;  %v973_v42 = vld [vmem:[%s1287_s0 + $0x40] ss:$16 sps:$4 sm:$0xff]   ;;  %v974_v43 = vld [vmem:[%s1287_s0 + $0x48] ss:$16 sps:$4 sm:$0xff]  }
  0x11   :  { %868 = vmatpush3.bf16.msra.mxu1 %v940_v15  ;;  %805 = vmatprep.subr.bf16.mxu0 %v941_v16  ;;  %v975_v44 = vld [vmem:[%s1287_s0 + $0x64] ss:$16 sps:$4 sm:$0xff]   ;;  %v977_v45 = vld [vmem:[%s1287_s0 + $0x6c] ss:$16 sps:$4 sm:$0xff]   ;;  %v979_v46 = vld [vmem:[%s1287_s0 + $0x60] ss:$16 sps:$4 sm:$0xff]  }
  0x12   :  { %869 = vmatprep.subr.bf16.mxu1 %v942_v17  ;;  %v980_v47 = vld [vmem:[%s1287_s0 + $0x68] ss:$16 sps:$4 sm:$0xff]   ;;  %v981_v48 = vld [vmem:[%s1287_s0 + $0x84] ss:$16 sps:$4 sm:$0xff]   ;;  %v983_v49 = vld [vmem:[%s1287_s0 + $0x8c] ss:$16 sps:$4 sm:$0xff]  }
  0x13   :  { %v985_v50 = vld [vmem:[%s1287_s0 + $0x80] ss:$16 sps:$4 sm:$0xff]   ;;  %v986_v51 = vld [vmem:[%s1287_s0 + $0x88] ss:$16 sps:$4 sm:$0xff]   ;;  %v987_v52 = vld [vmem:[%s1287_s0 + $0xa4] ss:$16 sps:$4 sm:$0xff]  }
  0x14   :  { %806 = vmatpush3.bf16.msra.mxu0 %v943_v18  ;;  %v989_v53 = vld [vmem:[%s1287_s0 + $0xac] ss:$16 sps:$4 sm:$0xff]   ;;  %v991_v54 = vld [vmem:[%s1287_s0 + $0xa0] ss:$16 sps:$4 sm:$0xff]   ;;  %v992_v55 = vld [vmem:[%s1287_s0 + $0xa8] ss:$16 sps:$4 sm:$0xff]  }
  0x15   :  { %870 = vmatpush3.bf16.msra.mxu1 %v944_v19  ;;  %807 = vmatprep.subr.bf16.mxu0 %v945_v20  ;;  %v993_v56 = vld [vmem:[%s1287_s0 + $0xc4] ss:$16 sps:$4 sm:$0xff]   ;;  %v995_v57 = vld [vmem:[%s1287_s0 + $0xcc] ss:$16 sps:$4 sm:$0xff]   ;;  %v997_v58 = vld [vmem:[%s1287_s0 + $0xc0] ss:$16 sps:$4 sm:$0xff]  }
  0x16   :  { %871 = vmatprep.subr.bf16.mxu1 %v946_v21  ;;  %v998_v59 = vld [vmem:[%s1287_s0 + $0xc8] ss:$16 sps:$4 sm:$0xff]   ;;  %v999_v60 = vld [vmem:[%s1287_s0 + $0xe4] ss:$16 sps:$4 sm:$0xff]   ;;  %v1001_v61 = vld [vmem:[%s1287_s0 + $0xec] ss:$16 sps:$4 sm:$0xff]  }
  0x17   :  { %v1003_v62 = vld [vmem:[%s1287_s0 + $0xe0] ss:$16 sps:$4 sm:$0xff]   ;;  %v1004_v63 = vld [vmem:[%s1287_s0 + $0xe8] ss:$16 sps:$4 sm:$0xff]  }
  0x18   :  { %808 = vmatpush3.bf16.msra.mxu0 %v947_v22 }
  0x19   :  { %872 = vmatpush3.bf16.msra.mxu1 %v948_v23  ;;  %809 = vmatprep.subr.bf16.mxu0 %v949_v24 }
  0x1a   :  { %873 = vmatprep.subr.bf16.mxu1 %v950_v25 }
  0x1c   :  { %810 = vmatpush3.bf16.msra.mxu0 %v951_v26 }
  0x1d   :  { %874 = vmatpush3.bf16.msra.mxu1 %v952_v27  ;;  %811 = vmatprep.subr.bf16.mxu0 %v953_v28 }
  0x1e   :  { %875 = vmatprep.subr.bf16.mxu1 %v954_v29 }
  0x20   :  { %812 = vmatpush3.bf16.msra.mxu0 %v955_v30 }
  0x21   :  { %876 = vmatpush3.bf16.msra.mxu1 %v956_v31 }
  0x23   :  { %503 = vmatmul.mubr.bf16.vlgmr.msra.gmra.mrb[0].mxu0 %v957_v32 }
  0x24   :  { %600 = vmatmul.mubr.bf16.vlgmr.msra.gmra.mrb[0].mxu1 %v960_v34  ;;  %510 = vmatprep.mubr.bf16.mxu0 %v963_v36 }
  0x25   :  { %607 = vmatprep.mubr.bf16.mxu1 %v965_v37 }
  0x2b   :  { %511 = vmatmul.mubr.bf16.gmra.mrb[4].mxu0 %v967_v38 }
  0x2c   :  { %608 = vmatmul.mubr.bf16.gmra.mrb[4].mxu1 %v968_v39  ;;  %518 = vmatprep.mubr.bf16.mxu0 %v969_v40 }
  0x2d   :  { %615 = vmatprep.mubr.bf16.mxu1 %v971_v41 }
  0x33   :  { %519 = vmatmul.mubr.bf16.gmra.mrb[8].mxu0 %v973_v42 }
  0x34   :  { %616 = vmatmul.mubr.bf16.gmra.mrb[8].mxu1 %v974_v43  ;;  %526 = vmatprep.mubr.bf16.mxu0 %v975_v44 }
  0x35   :  { %623 = vmatprep.mubr.bf16.mxu1 %v977_v45 }
  0x3b   :  { %527 = vmatmul.mubr.bf16.gmra.mrb[12].mxu0 %v979_v46 }
  0x3c   :  { %624 = vmatmul.mubr.bf16.gmra.mrb[12].mxu1 %v980_v47  ;;  %534 = vmatprep.mubr.bf16.mxu0 %v981_v48 }
  0x3d   :  { %631 = vmatprep.mubr.bf16.mxu1 %v983_v49 }
  0x43   :  { %535 = vmatmul.mubr.bf16.gmra.mrb[16].mxu0 %v985_v50 }
  0x44   :  { %632 = vmatmul.mubr.bf16.gmra.mrb[16].mxu1 %v986_v51  ;;  %542 = vmatprep.mubr.bf16.mxu0 %v987_v52 }
  0x45   :  { %639 = vmatprep.mubr.bf16.mxu1 %v989_v53 }
  0x4b   :  { %543 = vmatmul.mubr.bf16.gmra.mrb[20].mxu0 %v991_v54 }
  0x4c   :  { %640 = vmatmul.mubr.bf16.gmra.mrb[20].mxu1 %v992_v55  ;;  %550 = vmatprep.mubr.bf16.mxu0 %v993_v56 }
  0x4d   :  { %647 = vmatprep.mubr.bf16.mxu1 %v995_v57 }
  0x53   :  { %551 = vmatmul.mubr.bf16.gmra.mrb[24].mxu0 %v997_v58 }
  0x54   :  { %648 = vmatmul.mubr.bf16.gmra.mrb[24].mxu1 %v998_v59  ;;  %558 = vmatprep.mubr.bf16.mxu0 %v999_v60 }
  0x55   :  { %655 = vmatprep.mubr.bf16.mxu1 %v1001_v61 }
  0x5b   :  { %559 = vmatmul.mubr.bf16.gmra.mrb[28].mxu0 %v1003_v62 }
  0x5c   :  { %656 = vmatmul.mubr.bf16.gmra.mrb[28].mxu1 %v1004_v63 }
  0xf6   :  { %v813_v0 = vpop.f32.mrb[0].mxu0 }
  0xf7   :  { %v877_v1 = vpop.f32.mrb[0].mxu1  ;;  %v814_v3 = vpop.f32.mrb[1].mxu0 }
  0xf8   :  { %v815_v4 = vadd.f32 %v814_v3, %v813_v0  ;;  %v878_v5 = vpop.f32.mrb[1].mxu1  ;;  %v816_v6 = vpop.f32.mrb[2].mxu0 }
  0xf9   :  { %v879_v7 = vadd.f32 %v878_v5, %v877_v1  ;;  %v880_v8 = vpop.f32.mrb[2].mxu1  ;;  %v817_v9 = vpop.f32.mrb[3].mxu0 }
  0xfa   :  { %v505_v10 = vadd.f32 %v815_v4, %v1220_v2  ;;  %v818_v11 = vadd.f32 %v817_v9, %v816_v6  ;;  %v881_v12 = vpop.f32.mrb[3].mxu1 }
  0xfb   :  { %v882_v13 = vadd.f32 %v881_v12, %v880_v8 }
  0xfc   :  { %v602_v14 = vadd.f32 %v879_v7, %v505_v10  ;;  %v508_v15 = vadd.f32 %v818_v11, %v1220_v2 }
  0xfe   :  { %vm664_vm0 = vcmp.gt.f32.partialorder %v602_v14, 0.0  ;;  %v680_v16 = vmul.f32 0.1, %v602_v14  ;;  %v605_v17 = vadd.f32 %v882_v13, %v508_v15  ;;  %v819_v18 = vpop.f32.mrb[4].mxu0 }
  0xff   :  { %v883_v19 = vpop.f32.mrb[4].mxu1  ;;  %v820_v20 = vpop.f32.mrb[5].mxu0 }
 0x100   :  { %v696_v21 = vsel %vm664_vm0, %v602_v14, %v680_v16  ;;  %vm665_vm1 = vcmp.gt.f32.partialorder %v605_v17, 0.0  ;;  %v681_v22 = vmul.f32 0.1, %v605_v17  ;;  %v821_v23 = vadd.f32 %v820_v20, %v819_v18  ;;  %v884_v24 = vpop.f32.mrb[5].mxu1  ;;  %v822_v25 = vpop.f32.mrb[6].mxu0 }
 0x101   :  { %712 = vst [vmem:[%s1289_s3] sm:$0xff] %v696_v21  ;;  %v885_v26 = vadd.f32 %v884_v24, %v883_v19  ;;  %v886_v27 = vpop.f32.mrb[6].mxu1  ;;  %v823_v28 = vpop.f32.mrb[7].mxu0 }
 0x102   :  { %v697_v29 = vsel %vm665_vm1, %v605_v17, %v681_v22  ;;  %v513_v30 = vadd.f32 %v821_v23, %v1220_v2  ;;  %v824_v31 = vadd.f32 %v823_v28, %v822_v25  ;;  %v887_v32 = vpop.f32.mrb[7].mxu1 }
 0x103   :  { %713 = vst [vmem:[%s1289_s3 + $0x8] sm:$0xff] %v697_v29  ;;  %v888_v33 = vadd.f32 %v887_v32, %v886_v27 }
 0x104   :  { %v610_v34 = vadd.f32 %v885_v26, %v513_v30  ;;  %v516_v35 = vadd.f32 %v824_v31, %v1220_v2 }
 0x106   :  { %vm666_vm2 = vcmp.gt.f32.partialorder %v610_v34, 0.0  ;;  %v682_v36 = vmul.f32 0.1, %v610_v34  ;;  %v613_v37 = vadd.f32 %v888_v33, %v516_v35  ;;  %v825_v38 = vpop.f32.mrb[8].mxu0 }
 0x107   :  { %v889_v39 = vpop.f32.mrb[8].mxu1  ;;  %v826_v40 = vpop.f32.mrb[9].mxu0 }
 0x108   :  { %v698_v41 = vsel %vm666_vm2, %v610_v34, %v682_v36  ;;  %vm667_vm3 = vcmp.gt.f32.partialorder %v613_v37, 0.0  ;;  %v683_v42 = vmul.f32 0.1, %v613_v37  ;;  %v827_v43 = vadd.f32 %v826_v40, %v825_v38  ;;  %v890_v44 = vpop.f32.mrb[9].mxu1  ;;  %v828_v45 = vpop.f32.mrb[10].mxu0 }
 0x109   :  { %714 = vst [vmem:[%s1289_s3 + $0x10] sm:$0xff] %v698_v41  ;;  %v891_v46 = vadd.f32 %v890_v44, %v889_v39  ;;  %v892_v47 = vpop.f32.mrb[10].mxu1  ;;  %v829_v48 = vpop.f32.mrb[11].mxu0 }
 0x10a   :  { %v699_v49 = vsel %vm667_vm3, %v613_v37, %v683_v42  ;;  %v521_v50 = vadd.f32 %v827_v43, %v1220_v2  ;;  %v830_v51 = vadd.f32 %v829_v48, %v828_v45  ;;  %v893_v52 = vpop.f32.mrb[11].mxu1 }
 0x10b   :  { %715 = vst [vmem:[%s1289_s3 + $0x18] sm:$0xff] %v699_v49  ;;  %v894_v53 = vadd.f32 %v893_v52, %v892_v47 }
 0x10c   :  { %v618_v54 = vadd.f32 %v891_v46, %v521_v50  ;;  %v524_v55 = vadd.f32 %v830_v51, %v1220_v2 }
 0x10e   :  { %vm668_vm4 = vcmp.gt.f32.partialorder %v618_v54, 0.0  ;;  %v684_v56 = vmul.f32 0.1, %v618_v54  ;;  %v621_v57 = vadd.f32 %v894_v53, %v524_v55  ;;  %v831_v58 = vpop.f32.mrb[12].mxu0 }
 0x10f   :  { %v895_v59 = vpop.f32.mrb[12].mxu1  ;;  %v832_v60 = vpop.f32.mrb[13].mxu0 }
 0x110   :  { %v700_v61 = vsel %vm668_vm4, %v618_v54, %v684_v56  ;;  %vm669_vm5 = vcmp.gt.f32.partialorder %v621_v57, 0.0  ;;  %v685_v62 = vmul.f32 0.1, %v621_v57  ;;  %v833_v63 = vadd.f32 %v832_v60, %v831_v58  ;;  %v896_v0 = vpop.f32.mrb[13].mxu1  ;;  %v834_v1 = vpop.f32.mrb[14].mxu0 }
 0x111   :  { %716 = vst [vmem:[%s1289_s3 + $0x20] sm:$0xff] %v700_v61  ;;  %v897_v3 = vadd.f32 %v896_v0, %v895_v59  ;;  %v898_v4 = vpop.f32.mrb[14].mxu1  ;;  %v835_v5 = vpop.f32.mrb[15].mxu0 }
 0x112   :  { %v701_v6 = vsel %vm669_vm5, %v621_v57, %v685_v62  ;;  %v529_v7 = vadd.f32 %v833_v63, %v1220_v2  ;;  %v836_v8 = vadd.f32 %v835_v5, %v834_v1  ;;  %v899_v9 = vpop.f32.mrb[15].mxu1 }
 0x113   :  { %717 = vst [vmem:[%s1289_s3 + $0x28] sm:$0xff] %v701_v6  ;;  %v900_v10 = vadd.f32 %v899_v9, %v898_v4 }
 0x114   :  { %v626_v11 = vadd.f32 %v897_v3, %v529_v7  ;;  %v532_v12 = vadd.f32 %v836_v8, %v1220_v2 }
 0x116   :  { %vm670_vm6 = vcmp.gt.f32.partialorder %v626_v11, 0.0  ;;  %v686_v13 = vmul.f32 0.1, %v626_v11  ;;  %v629_v14 = vadd.f32 %v900_v10, %v532_v12  ;;  %v837_v15 = vpop.f32.mrb[16].mxu0 }
 0x117   :  { %v901_v16 = vpop.f32.mrb[16].mxu1  ;;  %v838_v17 = vpop.f32.mrb[17].mxu0 }
 0x118   :  { %v702_v18 = vsel %vm670_vm6, %v626_v11, %v686_v13  ;;  %vm671_vm7 = vcmp.gt.f32.partialorder %v629_v14, 0.0  ;;  %v687_v19 = vmul.f32 0.1, %v629_v14  ;;  %v839_v20 = vadd.f32 %v838_v17, %v837_v15  ;;  %v902_v21 = vpop.f32.mrb[17].mxu1  ;;  %v840_v22 = vpop.f32.mrb[18].mxu0 }
 0x119   :  { %718 = vst [vmem:[%s1289_s3 + $0x30] sm:$0xff] %v702_v18  ;;  %v903_v23 = vadd.f32 %v902_v21, %v901_v16  ;;  %v904_v24 = vpop.f32.mrb[18].mxu1  ;;  %v841_v25 = vpop.f32.mrb[19].mxu0 }
 0x11a   :  { %v703_v26 = vsel %vm671_vm7, %v629_v14, %v687_v19  ;;  %v537_v27 = vadd.f32 %v839_v20, %v1220_v2  ;;  %v842_v28 = vadd.f32 %v841_v25, %v840_v22  ;;  %v905_v29 = vpop.f32.mrb[19].mxu1 }
 0x11b   :  { %719 = vst [vmem:[%s1289_s3 + $0x38] sm:$0xff] %v703_v26  ;;  %v906_v30 = vadd.f32 %v905_v29, %v904_v24 }
 0x11c   :  { %v634_v31 = vadd.f32 %v903_v23, %v537_v27  ;;  %v540_v32 = vadd.f32 %v842_v28, %v1220_v2 }
 0x11e   :  { %vm672_vm8 = vcmp.gt.f32.partialorder %v634_v31, 0.0  ;;  %v688_v33 = vmul.f32 0.1, %v634_v31  ;;  %v637_v34 = vadd.f32 %v906_v30, %v540_v32  ;;  %v843_v35 = vpop.f32.mrb[20].mxu0 }
 0x11f   :  { %v907_v36 = vpop.f32.mrb[20].mxu1  ;;  %v844_v37 = vpop.f32.mrb[21].mxu0 }
 0x120   :  { %v704_v38 = vsel %vm672_vm8, %v634_v31, %v688_v33  ;;  %vm673_vm9 = vcmp.gt.f32.partialorder %v637_v34, 0.0  ;;  %v689_v39 = vmul.f32 0.1, %v637_v34  ;;  %v845_v40 = vadd.f32 %v844_v37, %v843_v35  ;;  %v908_v41 = vpop.f32.mrb[21].mxu1  ;;  %v846_v42 = vpop.f32.mrb[22].mxu0 }
 0x121   :  { %720 = vst [vmem:[%s1289_s3 + $0x40] sm:$0xff] %v704_v38  ;;  %v909_v43 = vadd.f32 %v908_v41, %v907_v36  ;;  %v910_v44 = vpop.f32.mrb[22].mxu1  ;;  %v847_v45 = vpop.f32.mrb[23].mxu0 }
 0x122   :  { %v705_v46 = vsel %vm673_vm9, %v637_v34, %v689_v39  ;;  %v545_v47 = vadd.f32 %v845_v40, %v1220_v2  ;;  %v848_v48 = vadd.f32 %v847_v45, %v846_v42  ;;  %v911_v49 = vpop.f32.mrb[23].mxu1 }
 0x123   :  { %721 = vst [vmem:[%s1289_s3 + $0x48] sm:$0xff] %v705_v46  ;;  %v912_v50 = vadd.f32 %v911_v49, %v910_v44 }
 0x124   :  { %v642_v51 = vadd.f32 %v909_v43, %v545_v47  ;;  %v548_v52 = vadd.f32 %v848_v48, %v1220_v2 }
 0x126   :  { %vm674_vm10 = vcmp.gt.f32.partialorder %v642_v51, 0.0  ;;  %v690_v53 = vmul.f32 0.1, %v642_v51  ;;  %v645_v54 = vadd.f32 %v912_v50, %v548_v52  ;;  %v849_v55 = vpop.f32.mrb[24].mxu0 }
 0x127   :  { %v913_v56 = vpop.f32.mrb[24].mxu1  ;;  %v850_v57 = vpop.f32.mrb[25].mxu0 }
 0x128   :  { %v706_v58 = vsel %vm674_vm10, %v642_v51, %v690_v53  ;;  %vm675_vm11 = vcmp.gt.f32.partialorder %v645_v54, 0.0  ;;  %v691_v59 = vmul.f32 0.1, %v645_v54  ;;  %v851_v60 = vadd.f32 %v850_v57, %v849_v55  ;;  %v914_v61 = vpop.f32.mrb[25].mxu1  ;;  %v852_v62 = vpop.f32.mrb[26].mxu0 }
 0x129   :  { %722 = vst [vmem:[%s1289_s3 + $0x50] sm:$0xff] %v706_v58  ;;  %v915_v63 = vadd.f32 %v914_v61, %v913_v56  ;;  %v916_v0 = vpop.f32.mrb[26].mxu1  ;;  %v853_v1 = vpop.f32.mrb[27].mxu0 }
 0x12a   :  { %v707_v3 = vsel %vm675_vm11, %v645_v54, %v691_v59  ;;  %v553_v4 = vadd.f32 %v851_v60, %v1220_v2  ;;  %v854_v5 = vadd.f32 %v853_v1, %v852_v62  ;;  %v917_v6 = vpop.f32.mrb[27].mxu1 }
 0x12b   :  { %723 = vst [vmem:[%s1289_s3 + $0x58] sm:$0xff] %v707_v3  ;;  %v918_v7 = vadd.f32 %v917_v6, %v916_v0 }
 0x12c   :  { %v650_v8 = vadd.f32 %v915_v63, %v553_v4  ;;  %v556_v9 = vadd.f32 %v854_v5, %v1220_v2 }
 0x12e   :  { %vm676_vm12 = vcmp.gt.f32.partialorder %v650_v8, 0.0  ;;  %v692_v10 = vmul.f32 0.1, %v650_v8  ;;  %v653_v11 = vadd.f32 %v918_v7, %v556_v9  ;;  %v855_v12 = vpop.f32.mrb[28].mxu0 }
 0x12f   :  { %v919_v13 = vpop.f32.mrb[28].mxu1  ;;  %v856_v14 = vpop.f32.mrb[29].mxu0 }
 0x130   :  { %v708_v15 = vsel %vm676_vm12, %v650_v8, %v692_v10  ;;  %vm677_vm13 = vcmp.gt.f32.partialorder %v653_v11, 0.0  ;;  %v693_v16 = vmul.f32 0.1, %v653_v11  ;;  %v857_v17 = vadd.f32 %v856_v14, %v855_v12  ;;  %v920_v18 = vpop.f32.mrb[29].mxu1  ;;  %v858_v19 = vpop.f32.mrb[30].mxu0 }
 0x131   :  { %724 = vst [vmem:[%s1289_s3 + $0x60] sm:$0xff] %v708_v15  ;;  %v921_v20 = vadd.f32 %v920_v18, %v919_v13  ;;  %v922_v21 = vpop.f32.mrb[30].mxu1  ;;  %v859_v22 = vpop.f32.mrb[31].mxu0 }
 0x132   :  { %v709_v23 = vsel %vm677_vm13, %v653_v11, %v693_v16  ;;  %v561_v24 = vadd.f32 %v857_v17, %v1220_v2  ;;  %v860_v25 = vadd.f32 %v859_v22, %v858_v19  ;;  %v923_v26 = vpop.f32.mrb[31].mxu1 }
 0x133   :  { %725 = vst [vmem:[%s1289_s3 + $0x68] sm:$0xff] %v709_v23  ;;  %v924_v27 = vadd.f32 %v923_v26, %v922_v21 }
 0x134   :  { %v658_v28 = vadd.f32 %v921_v20, %v561_v24  ;;  %v564_v29 = vadd.f32 %v860_v25, %v1220_v2 }
 0x136   :  { %vm678_vm14 = vcmp.gt.f32.partialorder %v658_v28, 0.0  ;;  %v694_v30 = vmul.f32 0.1, %v658_v28  ;;  %v661_v31 = vadd.f32 %v924_v27, %v564_v29 }
 0x138   :  { %v710_v32 = vsel %vm678_vm14, %v658_v28, %v694_v30  ;;  %vm679_vm15 = vcmp.gt.f32.partialorder %v661_v31, 0.0  ;;  %v695_v33 = vmul.f32 0.1, %v661_v31 }
 0x139   :  { %726 = vst [vmem:[%s1289_s3 + $0x70] sm:$0xff] %v710_v32 }
 0x13a   :  { %v711_v34 = vsel %vm679_vm15, %v661_v31, %v695_v33 }
 0x13b   :  { %727 = vst [vmem:[%s1289_s3 + $0x78] sm:$0xff] %v711_v34 }

// kernel: _lambda_.13
= control target key start
LH: loop header
LB: loop body
LE: loop exit
PB: predicated region body
PF: predicated region fallthrough
CT: control target
= control target key end

     0   :  { %s275_s1 = inlined_call_operand.vmem [shape: bf16[128,128], index: 1, kind: input, shape index: {}]   ;;  %s276_s0 = inlined_call_operand.vmem [shape: bf16[32,128], index: 0, kind: input, shape index: {}]   ;;  %s277_s2 = inlined_call_operand.vmem [shape: f32[1,128], index: 2, kind: input, shape index: {}]   ;;  %s278_s3 = inlined_call_operand.vmem [shape: f32[32,128], index: 3, kind: output, shape index: {}]  }
   0x1   :  { %v200_v0 = vld [vmem:[%s275_s1] sm:$0xff]   ;;  %v201_v1 = vld [vmem:[%s275_s1 + $0x8] sm:$0xff]   ;;  %v202_v2 = vld [vmem:[%s275_s1 + $0x10] sm:$0xff]  }
   0x2   :  { %180 = vmatprep.subr.bf16.mxu0 %v200_v0  ;;  %v203_v3 = vld [vmem:[%s275_s1 + $0x18] sm:$0xff]   ;;  %v208_v4 = vld [vmem:[%s276_s0] sm:$0xff]   ;;  %v205_v6 = vld [vmem:[%s275_s1 + $0x28] sm:$0xff]  }
   0x3   :  { %181 = vmatpush3.bf16.msra.mxu0 %v200_v0  ;;  %196 = vmatprep.mubr.bf16.mxu0 %v208_v4  ;;  %v204_v5 = vld [vmem:[%s275_s1 + $0x20] sm:$0xff]   ;;  %v206_v7 = vld [vmem:[%s275_s1 + $0x30] sm:$0xff]   ;;  %v207_v8 = vld [vmem:[%s275_s1 + $0x38] sm:$0xff]  }
   0x4   :  { %182 = vmatprep.subr.bf16.mxu0 %v201_v1  ;;  %v209_v9 = vld [vmem:[%s276_s0 + $0x8] sm:$0xff]   ;;  %v159_v10 = vld [vmem:[%s277_s2] ss:$0 sm:$0xff] }
   0x7   :  { %183 = vmatpush3.bf16.msra.mxu0 %v201_v1 }
   0x8   :  { %184 = vmatprep.subr.bf16.mxu0 %v202_v2 }
   0xb   :  { %185 = vmatpush3.bf16.msra.mxu0 %v202_v2 }
   0xc   :  { %186 = vmatprep.subr.bf16.mxu0 %v203_v3 }
   0xf   :  { %187 = vmatpush3.bf16.msra.mxu0 %v203_v3 }
  0x10   :  { %188 = vmatprep.subr.bf16.mxu0 %v204_v5 }
  0x13   :  { %189 = vmatpush3.bf16.msra.mxu0 %v204_v5 }
  0x14   :  { %190 = vmatprep.subr.bf16.mxu0 %v205_v6 }
  0x17   :  { %191 = vmatpush3.bf16.msra.mxu0 %v205_v6 }
  0x18   :  { %192 = vmatprep.subr.bf16.mxu0 %v206_v7 }
  0x1b   :  { %193 = vmatpush3.bf16.msra.mxu0 %v206_v7 }
  0x1c   :  { %194 = vmatprep.subr.bf16.mxu0 %v207_v8 }
  0x1f   :  { %195 = vmatpush3.bf16.msra.mxu0 %v207_v8 }
  0x22   :  { %197 = vmatmul.mubr.bf16.vlgmr.msra.gmra.mrb[0].mxu0 %v209_v9 }
  0xf5   :  { %v198_v11 = vpop.f32.mrb[0].mxu0 }
  0xf6   :  { %v145_v12 = vadd.f32 %v198_v11, %v159_v10  ;;  %v136_v13 = vpop.f32.mrb[1].mxu0 }
  0xf7   :  { %v137_v14 = vadd.f32 %v159_v10, %v136_v13  ;;  %v199_v15 = vpop.f32.mrb[2].mxu0 }
  0xf8   :  { %153 = vst [vmem:[%s278_s3 + $0x10] sm:$0xff] %v145_v12  ;;  %v148_v16 = vadd.f32 %v199_v15, %v159_v10  ;;  %v139_v17 = vpop.f32.mrb[3].mxu0 }
  0xf9   :  { %151 = vst [vmem:[%s278_s3] sm:$0xff] %v137_v14  ;;  %v140_v18 = vadd.f32 %v159_v10, %v139_v17 }
  0xfa   :  { %154 = vst [vmem:[%s278_s3 + $0x18] sm:$0xff] %v148_v16 }
  0xfb   :  { %152 = vst [vmem:[%s278_s3 + $0x8] sm:$0xff] %v140_v18 }

// kernel: _lambda_.17
= control target key start
LH: loop header
LB: loop body
LE: loop exit
PB: predicated region body
PF: predicated region fallthrough
CT: control target
= control target key end

     0   :  { %v40_v0 = vlaneseq  ;;  %vm1140_vm8 = vcmask 56320   ;;  %s2101_s0 = inlined_call_operand.vmem [shape: f32[256,7], index: 0, kind: input, shape index: {}]   ;;  %s2102_s1 = inlined_call_operand.vmem [shape: f32[256,7], index: 1, kind: output, shape index: {}]  }
   0x1   :  { %v8_v1 = vld [vmem:[%s2101_s0] sm:$0xff]  ;;  %v9_v2 = vld [vmem:[%s2101_s0 + $0x8] sm:$0xff]  ;;  %v10_v3 = vld [vmem:[%s2101_s0 + $0x10] sm:$0xff] }
   0x2   :  { %v1392_v4 = vshrl.u32 %v40_v0, 7  ;;  %v1394_v5 = vand.u32 127, %v40_v0  ;;  %v590_v6 = vsub.f32 0.0, %v8_v1  ;;  %v591_v7 = vsub.f32 0.0, %v9_v2  ;;  %v11_v8 = vld [vmem:[%s2101_s0 + $0x18] sm:$0xff]  ;;  %v1402_v9 = vld [vmem:[%s2101_s0 + $0x20] sm:$0xff] }
   0x3   :  { %v592_v10 = vsub.f32 0.0, %v10_v3  ;;  %v593_v15 = vsub.f32 0.0, %v11_v8  ;;  %v594_v16 = vsub.f32 0.0, %v1402_v9  ;;  %v1371_v0 = vmov 11.5  }
   0x4   :  { %v73_v11 = vcvt.s32.f32 %v1392_v4  ;;  %v622_v12 = vmul.f32 1.442695, %v590_v6  ;;  %vm782_vm0 = vcmp.ge.s32.totalorder %v1394_v5, 2  ;;  %vm783_vm1 = vcmp.lt.s32.totalorder %v1394_v5, 4 }
   0x5   :  { %vm1409_vm2 = vmand %vm782_vm0, %vm783_vm1  ;;  %v42_v14 = vadd.s32 8, %v1392_v4  ;;  %v624_v19 = vmul.f32 1.442695, %v591_v7  ;;  %v43_v23 = vadd.s32 16, %v1392_v4  ;;  %v626_v26 = vmul.f32 1.442695, %v592_v10 }
   0x6   :  { %v108_v17 = vmul.f32 0.015625, %v73_v11  ;;  %1179 = vpow2.f32 %v622_v12  ;;  %v785_v18 = vsel %vm1409_vm2, %v8_v1, 0.0  ;;  %v786_v22 = vsel %vm1409_vm2, %v9_v2, 0.0 }
   0x7   :  { %v817_v20 = vmul.f32 1.442695, %v785_v18  ;;  %v74_v21 = vcvt.s32.f32 %v42_v14  ;;  %1181 = vpow2.f32 %v624_v19  ;;  %v819_v25 = vmul.f32 1.442695, %v786_v22 }
   0x8   :  { %v140_v24 = vfloor.f32 %v108_v17  ;;  %vm978_vm3 = vcmp.eq.s32.totalorder %v1394_v5, 2  ;;  %v75_v28 = vcvt.s32.f32 %v43_v23  ;;  %v787_v29 = vsel %vm1409_vm2, %v10_v3, 0.0 }
   0x9   :  { %1183 = vpow2.f32 %v817_v20  ;;  %v109_v27 = vmul.f32 0.015625, %v74_v21  ;;  %v821_v32 = vmul.f32 1.442695, %v787_v29  ;;  %vm881_vm4 = vcmp.eq.s32.totalorder %v1394_v5, 0 }
   0xa   :  { %v172_v30 = vmul.f32 64.0, %v140_v24  ;;  %v366_v31 = vmul.f32 0.5, %v140_v24  ;;  %1185 = vpow2.f32 %v819_v25  ;;  %v110_v34 = vmul.f32 0.015625, %v75_v28 }
   0xb   :  { %v141_v33 = vfloor.f32 %v109_v27  ;;  %1187 = vpow2.f32 %v626_v26  ;;  %v1425_v35 = vadd.s32 24, %v1392_v4  ;;  %v628_v38 = vmul.f32 1.442695, %v593_v15 }
   0xc   :  { %v204_v36 = vsub.f32 %v73_v11, %v172_v30  ;;  %v398_v37 = vfloor.f32 %v366_v31  ;;  %1189 = vpow2.f32 %v821_v32  ;;  %v142_v41 = vfloor.f32 %v110_v34 }
   0xd   :  { %v173_v39 = vmul.f32 64.0, %v141_v33  ;;  %v367_v40 = vmul.f32 0.5, %v141_v33  ;;  %v76_v42 = vcvt.s32.f32 %v1425_v35  ;;  %1191 = vpow2.f32 %v628_v38 }
   0xe   :  { %v237_v43 = vmul.f32 0.125, %v204_v36  ;;  %v430_v44 = vmul.f32 2.0, %v398_v37  ;;  %v788_v45 = vsel %vm1409_vm2, %v11_v8, 0.0  ;;  %v174_v48 = vmul.f32 64.0, %v142_v41 }
   0xf   :  { %v205_v46 = vsub.f32 %v74_v21, %v173_v39  ;;  %v399_v47 = vfloor.f32 %v367_v40  ;;  %v368_v49 = vmul.f32 0.5, %v142_v41  ;;  %v111_v53 = vmul.f32 0.015625, %v76_v42 }
  0x10   :  { %v1180_v50 = vpop.eup %1179  ;;  %v269_v51 = vfloor.f32 %v237_v43  ;;  %v462_v52 = vsub.f32 %v140_v24, %v430_v44  ;;  %v823_v54 = vmul.f32 1.442695, %v788_v45  ;;  %v1432_v58 = vsub.f32 %v75_v28, %v174_v48 }
  0x11   :  { %v686_v55 = vadd.f32 1.0, %v1180_v50  ;;  %v238_v56 = vmul.f32 0.125, %v205_v46  ;;  %v431_v57 = vmul.f32 2.0, %v399_v47  ;;  %v1182_v59 = vpop.eup %1181  ;;  %v400_v61 = vfloor.f32 %v368_v49 }
  0x12   :  { %v301_v60 = vmul.f32 8.0, %v269_v51  ;;  %vm494_vm5 = vcmp.eq.f32.partialorder %v462_v52, 1.0  ;;  %v1434_v62 = vfloor.f32 %v111_v53  ;;  %v1372_v2 = vmov 13.5  }
  0x13   :  { %v1184_v63 = vpop.eup %1183  ;;  %v526_v1 = vsel %vm494_vm5, 18.5, %v1371_v0  ;;  %v558_v3 = vsel %vm494_vm5, 29.0, %v1372_v2  ;;  %1193 = vrcp.f32 %v686_v55  ;;  %v270_v6 = vfloor.f32 %v238_v56 }
  0x14   :  { %v1186_v7 = vpop.eup %1185  ;;  %v333_v8 = vsub.f32 %v204_v36, %v301_v60  ;;  %v979_v10 = vsel %vm978_vm3, %v526_v1, %v558_v3  ;;  %v463_v11 = vsub.f32 %v141_v33, %v431_v57  ;;  %v687_v12 = vadd.f32 1.0, %v1182_v59 }
  0x15   :  { %v1188_v14 = vpop.eup %1187  ;;  %v1011_v15 = vmul.f32 %v1184_v63, %v979_v10  ;;  %v302_v17 = vmul.f32 8.0, %v270_v6  ;;  %v239_v18 = vmul.f32 0.125, %v1432_v58  ;;  %v432_v19 = vmul.f32 2.0, %v400_v61 }
  0x16   :  { %v1190_v20 = vpop.eup %1189  ;;  %v882_v21 = vsel %vm881_vm4, %v333_v8, %v269_v51  ;;  %vm495_vm6 = vcmp.eq.f32.partialorder %v463_v11, 1.0  ;;  %1195 = vrcp.f32 %v687_v12  ;;  %v688_v22 = vadd.f32 1.0, %v1188_v14 }
  0x17   :  { %v1043_v23 = vmul.f32 2.0, %v1011_v15  ;;  %vm1075_vm7 = vcmp.lt.s32.totalorder %v1394_v5, 2  ;;  %v334_v24 = vsub.f32 %v205_v46, %v302_v17  ;;  %v527_v25 = vsel %vm495_vm6, 18.5, %v1371_v0  ;;  %v1192_v27 = vpop.eup %1191 }
  0x18   :  { %v559_v26 = vsel %vm495_vm6, 29.0, %v1372_v2  ;;  %v271_v29 = vfloor.f32 %v239_v18  ;;  %v464_v30 = vsub.f32 %v142_v41, %v432_v19  ;;  %1197 = vrcp.f32 %v688_v22  ;;  %v13_v18 = vld [vmem:[%s2101_s0 + $0x28] sm:$0xff] }
  0x19   :  { %v980_v28 = vsel %vm978_vm3, %v527_v25, %v559_v26  ;;  %v883_v31 = vsel %vm881_vm4, %v334_v24, %v270_v6  ;;  %v175_v33 = vmul.f32 64.0, %v1434_v62  ;;  %v369_v34 = vmul.f32 0.5, %v1434_v62 }
  0x1a   :  { %v1012_v32 = vmul.f32 %v1186_v7, %v980_v28  ;;  %v303_v36 = vmul.f32 8.0, %v271_v29  ;;  %vm496_vm9 = vcmp.eq.f32.partialorder %v464_v30, 1.0  ;;  %v689_v37 = vadd.f32 1.0, %v1192_v27 }
  0x1b   :  { %1199 = vpow2.f32 %v823_v54  ;;  %v528_v39 = vsel %vm496_vm9, 18.5, %v1371_v0  ;;  %v560_v40 = vsel %vm496_vm9, 29.0, %v1372_v2  ;;  %v207_v41 = vsub.f32 %v76_v42, %v175_v33 }
  0x1c   :  { %v1044_v38 = vmul.f32 2.0, %v1012_v32  ;;  %v335_v43 = vsub.f32 %v1432_v58, %v303_v36  ;;  %v981_v44 = vsel %vm978_vm3, %v528_v39, %v560_v40  ;;  %v401_v45 = vfloor.f32 %v369_v34 }
  0x1d   :  { %1201 = vrcp.f32 %v689_v37  ;;  %v1194_v46 = vpop.eup %1193  ;;  %v1013_v47 = vmul.f32 %v1190_v20, %v981_v44  ;;  %v240_v48 = vmul.f32 0.125, %v207_v41  ;;  %v45_v49 = vadd.s32 32, %v1392_v4 }
  0x1e   :  { %v630_v50 = vmul.f32 1.442695, %v594_v16  ;;  %v914_v51 = vadd.f32 %v1194_v46, %v882_v21  ;;  %v1076_v35 = vsel %vm783_vm1, %v1043_v23, %v1194_v46  ;;  %v884_v42 = vsel %vm881_vm4, %v335_v43, %v271_v29 }
  0x1f   :  { %v433_v52 = vmul.f32 2.0, %v401_v45  ;;  %v1045_v53 = vmul.f32 2.0, %v1013_v47  ;;  %v272_v54 = vfloor.f32 %v240_v48  ;;  %v77_v55 = vcvt.s32.f32 %v45_v49  ;;  %v14_v47 = vld [vmem:[%s2101_s0 + $0x30] sm:$0xff] }
  0x20   :  { %1203 = vpow2.f32 %v630_v50  ;;  %v1196_v56 = vpop.eup %1195  ;;  %v946_v57 = vmul.f32 2.0, %v914_v51  ;;  %v789_v16 = vsel %vm1409_vm2, %v1402_v9, 0.0  ;;  %v46_v59 = vadd.s32 40, %v1392_v4 }
  0x21   :  { %v465_v58 = vsub.f32 %v1434_v62, %v433_v52  ;;  %v915_v60 = vadd.f32 %v1196_v56, %v883_v31  ;;  %v1077_v61 = vsel %vm783_vm1, %v1044_v38, %v1196_v56  ;;  %v304_v63 = vmul.f32 8.0, %v272_v54 }
  0x22   :  { %v112_v1 = vmul.f32 0.015625, %v77_v55  ;;  %v1198_v3 = vpop.eup %1197  ;;  %v1108_v6 = vsel %vm1075_vm7, %v946_v57, %v1076_v35  ;;  %v825_v7 = vmul.f32 1.442695, %v789_v16  ;;  %v78_v8 = vcvt.s32.f32 %v46_v59 }
  0x23   :  { %vm497_vm10 = vcmp.eq.f32.partialorder %v465_v58, 1.0  ;;  %1141 = vst.msk [vmem:[%s2102_s1] sm:$0xff] %vm1140_vm8, %v1108_v6  ;;  %v947_v9 = vmul.f32 2.0, %v915_v60  ;;  %v916_v62 = vadd.f32 %v1198_v3, %v884_v42  ;;  %v1078_v10 = vsel %vm783_vm1, %v1045_v53, %v1198_v3 }
  0x24   :  { %v336_v11 = vsub.f32 %v207_v41, %v304_v63  ;;  %v529_v14 = vsel %vm497_vm10, 18.5, %v1371_v0  ;;  %v561_v15 = vsel %vm497_vm10, 29.0, %v1372_v2  ;;  %v144_v17 = vfloor.f32 %v112_v1 }
  0x25   :  { %v1200_v12 = vpop.eup %1199  ;;  %1205 = vpow2.f32 %v825_v7  ;;  %v1109_v19 = vsel %vm1075_vm7, %v947_v9, %v1077_v61  ;;  %v948_v20 = vmul.f32 2.0, %v916_v62  ;;  %v982_v22 = vsel %vm978_vm3, %v529_v14, %v561_v15  ;;  %v15_v14 = vld [vmem:[%s2101_s0 + $0x38] sm:$0xff] }
  0x26   :  { %v885_v21 = vsel %vm881_vm4, %v336_v11, %v272_v54  ;;  %1142 = vst.msk [vmem:[%s2102_s1 + $0x8] sm:$0xff] %vm1140_vm8, %v1109_v19  ;;  %v1014_v24 = vmul.f32 %v1200_v12, %v982_v22  ;;  %v176_v25 = vmul.f32 64.0, %v144_v17  ;;  %v370_v26 = vmul.f32 0.5, %v144_v17 }
  0x27   :  { %v1202_v23 = vpop.eup %1201  ;;  %v113_v27 = vmul.f32 0.015625, %v78_v8  ;;  %v1110_v28 = vsel %vm1075_vm7, %v948_v20, %v1078_v10  ;;  %v595_v30 = vsub.f32 0.0, %v13_v18  ;;  %v790_v31 = vsel %vm1409_vm2, %v13_v18, 0.0 }
  0x28   :  { %v917_v29 = vadd.f32 %v1202_v23, %v885_v21  ;;  %1143 = vst.msk [vmem:[%s2102_s1 + $0x10] sm:$0xff] %vm1140_vm8, %v1110_v28  ;;  %v1046_v32 = vmul.f32 2.0, %v1014_v24  ;;  %v208_v33 = vsub.f32 %v77_v55, %v176_v25  ;;  %v402_v34 = vfloor.f32 %v370_v26 }
  0x29   :  { %v145_v36 = vfloor.f32 %v113_v27  ;;  %v632_v39 = vmul.f32 1.442695, %v595_v30  ;;  %v827_v40 = vmul.f32 1.442695, %v790_v31  ;;  %v47_v41 = vadd.s32 48, %v1392_v4 }
  0x2a   :  { %v1204_v37 = vpop.eup %1203  ;;  %v949_v38 = vmul.f32 2.0, %v917_v29  ;;  %v1079_v43 = vsel %vm783_vm1, %v1046_v32, %v1202_v23  ;;  %v241_v44 = vmul.f32 0.125, %v208_v33  ;;  %v434_v45 = vmul.f32 2.0, %v402_v34 }
  0x2b   :  { %v690_v46 = vadd.f32 1.0, %v1204_v37  ;;  %v177_v49 = vmul.f32 64.0, %v145_v36  ;;  %v371_v50 = vmul.f32 0.5, %v145_v36  ;;  %1207 = vpow2.f32 %v632_v39 }
  0x2c   :  { %v1111_v48 = vsel %vm1075_vm7, %v949_v38, %v1079_v43  ;;  %v273_v51 = vfloor.f32 %v241_v44  ;;  %v466_v35 = vsub.f32 %v144_v17, %v434_v45  ;;  %v79_v42 = vcvt.s32.f32 %v47_v41 }
  0x2d   :  { %1144 = vst.msk [vmem:[%s2102_s1 + $0x18] sm:$0xff] %vm1140_vm8, %v1111_v48  ;;  %1209 = vrcp.f32 %v690_v46  ;;  %v209_v52 = vsub.f32 %v78_v8, %v177_v49  ;;  %v403_v53 = vfloor.f32 %v371_v50  ;;  %v596_v54 = vsub.f32 0.0, %v14_v47 }
  0x2e   :  { %1211 = vpow2.f32 %v827_v40  ;;  %v305_v56 = vmul.f32 8.0, %v273_v51  ;;  %vm498_vm11 = vcmp.eq.f32.partialorder %v466_v35, 1.0  ;;  %v114_v57 = vmul.f32 0.015625, %v79_v42 }
  0x2f   :  { %v1206_v55 = vpop.eup %1205  ;;  %v791_v58 = vsel %vm1409_vm2, %v14_v47, 0.0  ;;  %v530_v16 = vsel %vm498_vm11, 18.5, %v1371_v0  ;;  %v562_v59 = vsel %vm498_vm11, 29.0, %v1372_v2  ;;  %v242_v60 = vmul.f32 0.125, %v209_v52 }
  0x30   :  { %v435_v61 = vmul.f32 2.0, %v403_v53  ;;  %v337_v63 = vsub.f32 %v208_v33, %v305_v56  ;;  %v983_v1 = vsel %vm978_vm3, %v530_v16, %v562_v59  ;;  %v146_v3 = vfloor.f32 %v114_v57 }
  0x31   :  { %v634_v6 = vmul.f32 1.442695, %v596_v54  ;;  %v1015_v7 = vmul.f32 %v1206_v55, %v983_v1  ;;  %v274_v8 = vfloor.f32 %v242_v60  ;;  %v829_v62 = vmul.f32 1.442695, %v791_v58  ;;  %v17_v1 = vld [vmem:[%s2101_s0 + $0x48] sm:$0xff] }
  0x32   :  { %v467_v9 = vsub.f32 %v145_v36, %v435_v61  ;;  %v886_v10 = vsel %vm881_vm4, %v337_v63, %v273_v51  ;;  %v178_v11 = vmul.f32 64.0, %v146_v3  ;;  %v372_v12 = vmul.f32 0.5, %v146_v3 }
  0x33   :  { %1213 = vpow2.f32 %v634_v6  ;;  %v1047_v15 = vmul.f32 2.0, %v1015_v7  ;;  %v306_v17 = vmul.f32 8.0, %v274_v8  ;;  %v48_v25 = vadd.s32 56, %v1392_v4 }
  0x34   :  { %vm499_vm12 = vcmp.eq.f32.partialorder %v467_v9, 1.0  ;;  %1215 = vpow2.f32 %v829_v62  ;;  %v210_v20 = vsub.f32 %v79_v42, %v178_v11  ;;  %v404_v21 = vfloor.f32 %v372_v12  ;;  %v16_v42 = vld [vmem:[%s2101_s0 + $0x40] sm:$0xff] }
  0x35   :  { %v531_v18 = vsel %vm499_vm12, 18.5, %v1371_v0  ;;  %v563_v19 = vsel %vm499_vm12, 29.0, %v1372_v2  ;;  %v1208_v22 = vpop.eup %1207  ;;  %v338_v23 = vsub.f32 %v209_v52, %v306_v17  ;;  %v597_v26 = vsub.f32 0.0, %v15_v14 }
  0x36   :  { %v984_v24 = vsel %vm978_vm3, %v531_v18, %v563_v19  ;;  %v691_v28 = vadd.f32 1.0, %v1208_v22  ;;  %v243_v29 = vmul.f32 0.125, %v210_v20  ;;  %v436_v30 = vmul.f32 2.0, %v404_v21 }
  0x37   :  { %v1210_v27 = vpop.eup %1209  ;;  %v792_v31 = vsel %vm1409_vm2, %v15_v14, 0.0  ;;  %v887_v36 = vsel %vm881_vm4, %v338_v23, %v274_v8  ;;  %v80_v37 = vcvt.s32.f32 %v48_v25  ;;  %v636_v44 = vmul.f32 1.442695, %v597_v26 }
  0x38   :  { %v1212_v32 = vpop.eup %1211  ;;  %v918_v33 = vadd.f32 %v1210_v27, %v886_v10  ;;  %v1080_v34 = vsel %vm783_vm1, %v1047_v15, %v1210_v27  ;;  %1217 = vrcp.f32 %v691_v28  ;;  %v275_v39 = vfloor.f32 %v243_v29 }
  0x39   :  { %v1016_v38 = vmul.f32 %v1212_v32, %v984_v24  ;;  %v468_v40 = vsub.f32 %v146_v3, %v436_v30  ;;  %v115_v43 = vmul.f32 0.015625, %v80_v37  ;;  %v831_v45 = vmul.f32 1.442695, %v792_v31 }
  0x3a   :  { %v950_v41 = vmul.f32 2.0, %v918_v33  ;;  %v307_v47 = vmul.f32 8.0, %v275_v39  ;;  %v49_v48 = vadd.s32 64, %v1392_v4  ;;  %1219 = vpow2.f32 %v636_v44 }
  0x3b   :  { %v1048_v46 = vmul.f32 2.0, %v1016_v38  ;;  %vm500_vm13 = vcmp.eq.f32.partialorder %v468_v40, 1.0  ;;  %v147_v35 = vfloor.f32 %v115_v43  ;;  %1221 = vpow2.f32 %v831_v45 }
  0x3c   :  { %v1112_v49 = vsel %vm1075_vm7, %v950_v41, %v1080_v34  ;;  %v532_v50 = vsel %vm500_vm13, 18.5, %v1371_v0  ;;  %v564_v51 = vsel %vm500_vm13, 29.0, %v1372_v2  ;;  %v339_v53 = vsub.f32 %v210_v20, %v307_v47 }
  0x3d   :  { %v1214_v52 = vpop.eup %1213  ;;  %1145 = vst.msk [vmem:[%s2102_s1 + $0x20] sm:$0xff] %vm1140_vm8, %v1112_v49  ;;  %v985_v54 = vsel %vm978_vm3, %v532_v50, %v564_v51  ;;  %v81_v55 = vcvt.s32.f32 %v49_v48  ;;  %v179_v58 = vmul.f32 64.0, %v147_v35  ;;  %v373_v16 = vmul.f32 0.5, %v147_v35 }
  0x3e   :  { %v1216_v56 = vpop.eup %1215  ;;  %v692_v57 = vadd.f32 1.0, %v1214_v52  ;;  %v888_v59 = vsel %vm881_vm4, %v339_v53, %v275_v39  ;;  %v598_v63 = vsub.f32 0.0, %v16_v42  ;;  %v793_v7 = vsel %vm1409_vm2, %v16_v42, 0.0 }
  0x3f   :  { %v1017_v60 = vmul.f32 %v1216_v56, %v985_v54  ;;  %v116_v61 = vmul.f32 0.015625, %v81_v55  ;;  %v211_v3 = vsub.f32 %v80_v37, %v179_v58  ;;  %v405_v6 = vfloor.f32 %v373_v16 }
  0x40   :  { %1223 = vrcp.f32 %v692_v57  ;;  %v638_v62 = vmul.f32 1.442695, %v598_v63  ;;  %v833_v10 = vmul.f32 1.442695, %v793_v7  ;;  %v1560_v14 = vadd.s32 72, %v1392_v4 }
  0x41   :  { %v1049_v8 = vmul.f32 2.0, %v1017_v60  ;;  %v148_v9 = vfloor.f32 %v116_v61  ;;  %v244_v11 = vmul.f32 0.125, %v211_v3  ;;  %v437_v12 = vmul.f32 2.0, %v405_v6 }
  0x42   :  { %v599_v15 = vsub.f32 0.0, %v17_v1  ;;  %v1218_v17 = vpop.eup %1217  ;;  %1225 = vpow2.f32 %v638_v62  ;;  %v794_v20 = vsel %vm1409_vm2, %v17_v1, 0.0  ;;  %v82_v27 = vcvt.s32.f32 %v1560_v14  ;;  %v18_v1 = vld [vmem:[%s2101_s0 + $0x50] sm:$0xff] }
  0x43   :  { %v180_v18 = vmul.f32 64.0, %v148_v9  ;;  %v374_v19 = vmul.f32 0.5, %v148_v9  ;;  %v919_v21 = vadd.f32 %v1218_v17, %v887_v36  ;;  %v1081_v22 = vsel %vm783_vm1, %v1048_v46, %v1218_v17 }
  0x44   :  { %v276_v23 = vfloor.f32 %v244_v11  ;;  %v469_v24 = vsub.f32 %v147_v35, %v437_v12  ;;  %1227 = vpow2.f32 %v833_v10  ;;  %v640_v30 = vmul.f32 1.442695, %v599_v15  ;;  %v1220_v31 = vpop.eup %1219  ;;  %v1602_v15 = vld [vmem:[%s2101_s0 + $0x58] sm:$0xff] }
  0x45   :  { %v212_v25 = vsub.f32 %v81_v55, %v180_v18  ;;  %v406_v26 = vfloor.f32 %v374_v19  ;;  %v951_v28 = vmul.f32 2.0, %v919_v21  ;;  %v1222_v37 = vpop.eup %1221  ;;  %v693_v40 = vadd.f32 1.0, %v1220_v31 }
  0x46   :  { %v308_v29 = vmul.f32 8.0, %v276_v23  ;;  %vm501_vm14 = vcmp.eq.f32.partialorder %v469_v24, 1.0  ;;  %v117_v46 = vmul.f32 0.015625, %v82_v27  ;;  %v835_v49 = vmul.f32 1.442695, %v794_v20 }
  0x47   :  { %v533_v32 = vsel %vm501_vm14, 18.5, %v1371_v0  ;;  %v565_v33 = vsel %vm501_vm14, 29.0, %v1372_v2  ;;  %v245_v34 = vmul.f32 0.125, %v212_v25  ;;  %v438_v36 = vmul.f32 2.0, %v406_v26 }
  0x48   :  { %v1113_v38 = vsel %vm1075_vm7, %v951_v28, %v1081_v22  ;;  %v340_v39 = vsub.f32 %v211_v3, %v308_v29  ;;  %v986_v41 = vsel %vm978_vm3, %v533_v32, %v565_v33  ;;  %1229 = vrcp.f32 %v693_v40 }
  0x49   :  { %1146 = vst.msk [vmem:[%s2102_s1 + $0x28] sm:$0xff] %vm1140_vm8, %v1113_v38  ;;  %v1018_v43 = vmul.f32 %v1222_v37, %v986_v41  ;;  %v277_v44 = vfloor.f32 %v245_v34  ;;  %v470_v45 = vsub.f32 %v148_v9, %v438_v36  ;;  %v51_v50 = vadd.s32 80, %v1392_v4 }
  0x4a   :  { %v1224_v47 = vpop.eup %1223  ;;  %v889_v48 = vsel %vm881_vm4, %v340_v39, %v276_v23  ;;  %v149_v53 = vfloor.f32 %v117_v46  ;;  %1231 = vpow2.f32 %v640_v30  ;;  %v600_v12 = vsub.f32 0.0, %v18_v1 }
  0x4b   :  { %v920_v51 = vadd.f32 %v1224_v47, %v888_v59  ;;  %v1082_v35 = vsel %vm783_vm1, %v1049_v8, %v1224_v47  ;;  %v1050_v42 = vmul.f32 2.0, %v1018_v43  ;;  %v309_v52 = vmul.f32 8.0, %v277_v44 }
  0x4c   :  { %vm502_vm15 = vcmp.eq.f32.partialorder %v470_v45, 1.0  ;;  %v83_v54 = vcvt.s32.f32 %v51_v50  ;;  %v1226_v55 = vpop.eup %1225  ;;  %v181_v61 = vmul.f32 64.0, %v149_v53  ;;  %v375_v63 = vmul.f32 0.5, %v149_v53 }
  0x4d   :  { %v952_v56 = vmul.f32 2.0, %v920_v51  ;;  %v341_v57 = vsub.f32 %v212_v25, %v309_v52  ;;  %v534_v58 = vsel %vm502_vm15, 18.5, %v1371_v0  ;;  %v566_v16 = vsel %vm502_vm15, 29.0, %v1372_v2 }
  0x4e   :  { %v694_v60 = vadd.f32 1.0, %v1226_v55  ;;  %v987_v59 = vsel %vm978_vm3, %v534_v58, %v566_v16  ;;  %v1228_v3 = vpop.eup %1227  ;;  %1233 = vpow2.f32 %v835_v49  ;;  %v118_v8 = vmul.f32 0.015625, %v83_v54 }
  0x4f   :  { %v1114_v6 = vsel %vm1075_vm7, %v952_v56, %v1082_v35  ;;  %v890_v7 = vsel %vm881_vm4, %v341_v57, %v277_v44  ;;  %v1019_v9 = vmul.f32 %v1228_v3, %v987_v59  ;;  %v213_v62 = vsub.f32 %v82_v27, %v181_v61 }
  0x50   :  { %1147 = vst.msk [vmem:[%s2102_s1 + $0x30] sm:$0xff] %vm1140_vm8, %v1114_v6  ;;  %1235 = vrcp.f32 %v694_v60  ;;  %v407_v10 = vfloor.f32 %v375_v63  ;;  %v150_v11 = vfloor.f32 %v118_v8  ;;  %v795_v14 = vsel %vm1409_vm2, %v18_v1, 0.0  ;;  %v20_v1 = vld [vmem:[%s2101_s0 + $0x60] sm:$0xff] }
  0x51   :  { %v52_v17 = vadd.s32 88, %v1392_v4  ;;  %v1051_v18 = vmul.f32 2.0, %v1019_v9  ;;  %v246_v19 = vmul.f32 0.125, %v213_v62  ;;  %v837_v21 = vmul.f32 1.442695, %v795_v14 }
  0x52   :  { %v439_v20 = vmul.f32 2.0, %v407_v10  ;;  %v182_v22 = vmul.f32 64.0, %v150_v11  ;;  %v376_v23 = vmul.f32 0.5, %v150_v11  ;;  %v642_v24 = vmul.f32 1.442695, %v600_v12  ;;  %v1230_v26 = vpop.eup %1229 }
  0x53   :  { %v84_v25 = vcvt.s32.f32 %v52_v17  ;;  %v278_v27 = vfloor.f32 %v246_v19  ;;  %1237 = vpow2.f32 %v837_v21  ;;  %v601_v29 = vsub.f32 0.0, %v1602_v15 }
  0x54   :  { %v471_v28 = vsub.f32 %v149_v53, %v439_v20  ;;  %v921_v30 = vadd.f32 %v1230_v26, %v889_v48  ;;  %v1083_v31 = vsel %vm783_vm1, %v1050_v42, %v1230_v26  ;;  %v214_v32 = vsub.f32 %v83_v54, %v182_v22  ;;  %v1232_v34 = vpop.eup %1231 }
  0x55   :  { %v408_v33 = vfloor.f32 %v376_v23  ;;  %v310_v36 = vmul.f32 8.0, %v278_v27  ;;  %1239 = vpow2.f32 %v642_v24  ;;  %v119_v37 = vmul.f32 0.015625, %v84_v25 }
  0x56   :  { %vm503_vm0 = vcmp.eq.f32.partialorder %v471_v28, 1.0  ;;  %v953_v38 = vmul.f32 2.0, %v921_v30  ;;  %v695_v41 = vadd.f32 1.0, %v1232_v34  ;;  %v247_v45 = vmul.f32 0.125, %v214_v32  ;;  %v21_v34 = vld [vmem:[%s2101_s0 + $0x68] sm:$0xff] }
  0x57   :  { %v535_v39 = vsel %vm503_vm0, 18.5, %v1371_v0  ;;  %v567_v40 = vsel %vm503_vm0, 29.0, %v1372_v2  ;;  %v342_v43 = vsub.f32 %v213_v62, %v310_v36  ;;  %v440_v46 = vmul.f32 2.0, %v408_v33 }
  0x58   :  { %v988_v44 = vsel %vm978_vm3, %v535_v39, %v567_v40  ;;  %v1234_v47 = vpop.eup %1233  ;;  %v1115_v48 = vsel %vm1075_vm7, %v953_v38, %v1083_v31  ;;  %1241 = vrcp.f32 %v695_v41  ;;  %v151_v49 = vfloor.f32 %v119_v37 }
  0x59   :  { %v644_v50 = vmul.f32 1.442695, %v601_v29  ;;  %1148 = vst.msk [vmem:[%s2102_s1 + $0x38] sm:$0xff] %vm1140_vm8, %v1115_v48  ;;  %v891_v35 = vsel %vm881_vm4, %v342_v43, %v278_v27  ;;  %v1020_v42 = vmul.f32 %v1234_v47, %v988_v44  ;;  %v279_v52 = vfloor.f32 %v247_v45  ;;  %v1660_v48 = vld [vmem:[%s2101_s0 + $0x70] sm:$0xff] }
  0x5a   :  { %v1236_v51 = vpop.eup %1235  ;;  %v472_v53 = vsub.f32 %v150_v11, %v440_v46  ;;  %v183_v56 = vmul.f32 64.0, %v151_v49  ;;  %v377_v57 = vmul.f32 0.5, %v151_v49  ;;  %v796_v9 = vsel %vm1409_vm2, %v1602_v15, 0.0 }
  0x5b   :  { %v922_v54 = vadd.f32 %v1236_v51, %v890_v7  ;;  %v1084_v55 = vsel %vm783_vm1, %v1051_v18, %v1236_v51  ;;  %v1052_v58 = vmul.f32 2.0, %v1020_v42  ;;  %v311_v16 = vmul.f32 8.0, %v279_v52 }
  0x5c   :  { %vm504_vm5 = vcmp.eq.f32.partialorder %v472_v53, 1.0  ;;  %1243 = vpow2.f32 %v644_v50  ;;  %v215_v63 = vsub.f32 %v84_v25, %v183_v56  ;;  %v409_v8 = vfloor.f32 %v377_v57 }
  0x5d   :  { %v954_v60 = vmul.f32 2.0, %v922_v54  ;;  %v536_v59 = vsel %vm504_vm5, 18.5, %v1371_v0  ;;  %v568_v61 = vsel %vm504_vm5, 29.0, %v1372_v2  ;;  %v1238_v3 = vpop.eup %1237  ;;  %v343_v6 = vsub.f32 %v214_v32, %v311_v16 }
  0x5e   :  { %v989_v7 = vsel %vm978_vm3, %v536_v59, %v568_v61  ;;  %v248_v11 = vmul.f32 0.125, %v215_v63  ;;  %v839_v12 = vmul.f32 1.442695, %v796_v9  ;;  %v441_v18 = vmul.f32 2.0, %v409_v8 }
  0x5f   :  { %v1116_v62 = vsel %vm1075_vm7, %v954_v60, %v1084_v55  ;;  %v1021_v10 = vmul.f32 %v1238_v3, %v989_v7  ;;  %v1240_v14 = vpop.eup %1239  ;;  %v1640_v17 = vsel %vm881_vm4, %v343_v6, %v279_v52  ;;  %v53_v19 = vadd.s32 96, %v1392_v4 }
  0x60   :  { %1149 = vst.msk [vmem:[%s2102_s1 + $0x40] sm:$0xff] %vm1140_vm8, %v1116_v62  ;;  %v602_v15 = vsub.f32 0.0, %v20_v1  ;;  %v696_v20 = vadd.f32 1.0, %v1240_v14  ;;  %v280_v22 = vfloor.f32 %v248_v11  ;;  %1245 = vpow2.f32 %v839_v12 }
  0x61   :  { %v1053_v21 = vmul.f32 2.0, %v1021_v10  ;;  %v473_v23 = vsub.f32 %v151_v49, %v441_v18  ;;  %v85_v24 = vcvt.s32.f32 %v53_v19  ;;  %v797_v26 = vsel %vm1409_vm2, %v20_v1, 0.0 }
  0x62   :  { %v646_v25 = vmul.f32 1.442695, %v602_v15  ;;  %v1242_v27 = vpop.eup %1241  ;;  %1247 = vrcp.f32 %v696_v20  ;;  %v312_v28 = vmul.f32 8.0, %v280_v22  ;;  %v841_v29 = vmul.f32 1.442695, %v797_v26 }
  0x63   :  { %v54_v30 = vadd.s32 104, %v1392_v4  ;;  %v923_v31 = vadd.f32 %v1242_v27, %v891_v35  ;;  %v1085_v32 = vsel %vm783_vm1, %v1052_v58, %v1242_v27  ;;  %vm505_vm6 = vcmp.eq.f32.partialorder %v473_v23, 1.0 }
  0x64   :  { %v120_v33 = vmul.f32 0.015625, %v85_v24  ;;  %v344_v36 = vsub.f32 %v215_v63, %v312_v28  ;;  %v537_v37 = vsel %vm505_vm6, 18.5, %v1371_v0  ;;  %v569_v38 = vsel %vm505_vm6, 29.0, %v1372_v2 }
  0x65   :  { %1249 = vpow2.f32 %v646_v25  ;;  %v955_v40 = vmul.f32 2.0, %v923_v31  ;;  %v990_v41 = vsel %vm978_vm3, %v537_v37, %v569_v38  ;;  %v86_v46 = vcvt.s32.f32 %v54_v30 }
  0x66   :  { %v1244_v39 = vpop.eup %1243  ;;  %v152_v43 = vfloor.f32 %v120_v33  ;;  %1251 = vpow2.f32 %v841_v29  ;;  %v893_v45 = vsel %vm881_vm4, %v344_v36, %v280_v22  ;;  %v603_v47 = vsub.f32 0.0, %v21_v34 }
  0x67   :  { %v697_v44 = vadd.f32 1.0, %v1244_v39  ;;  %v1117_v49 = vsel %vm1075_vm7, %v955_v40, %v1085_v32  ;;  %v798_v35 = vsel %vm1409_vm2, %v21_v34, 0.0  ;;  %v121_v42 = vmul.f32 0.015625, %v86_v46 }
  0x68   :  { %v184_v50 = vmul.f32 64.0, %v152_v43  ;;  %v378_v51 = vmul.f32 0.5, %v152_v43  ;;  %1150 = vst.msk [vmem:[%s2102_s1 + $0x48] sm:$0xff] %vm1140_vm8, %v1117_v49  ;;  %v648_v52 = vmul.f32 1.442695, %v603_v47  ;;  %v55_v56 = vadd.s32 112, %v1392_v4 }
  0x69   :  { %1253 = vrcp.f32 %v697_v44  ;;  %v843_v53 = vmul.f32 1.442695, %v798_v35  ;;  %v604_v57 = vsub.f32 0.0, %v1660_v48  ;;  %v153_v16 = vfloor.f32 %v121_v42 }
  0x6a   :  { %v216_v54 = vsub.f32 %v85_v24, %v184_v50  ;;  %v410_v55 = vfloor.f32 %v378_v51  ;;  %v1246_v58 = vpop.eup %1245  ;;  %1255 = vpow2.f32 %v648_v52  ;;  %v799_v60 = vsel %vm1409_vm2, %v1660_v48, 0.0  ;;  %v23_v52 = vld [vmem:[%s2101_s0 + $0x78] sm:$0xff] }
  0x6b   :  { %v1676_v59 = vadd.s32 120, %v1392_v4  ;;  %v1022_v61 = vmul.f32 %v1246_v58, %v990_v41  ;;  %1257 = vpow2.f32 %v843_v53  ;;  %v185_v6 = vmul.f32 64.0, %v153_v16 }
  0x6c   :  { %v249_v63 = vmul.f32 0.125, %v216_v54  ;;  %v442_v1 = vmul.f32 2.0, %v410_v55  ;;  %v1248_v3 = vpop.eup %1247  ;;  %v379_v7 = vmul.f32 0.5, %v153_v16  ;;  %v87_v8 = vcvt.s32.f32 %v55_v56 }
  0x6d   :  { %v650_v9 = vmul.f32 1.442695, %v604_v57  ;;  %v924_v62 = vadd.f32 %v1248_v3, %v1640_v17  ;;  %v1086_v10 = vsel %vm783_vm1, %v1053_v21, %v1248_v3  ;;  %v1054_v11 = vmul.f32 2.0, %v1022_v61 }
  0x6e   :  { %v281_v12 = vfloor.f32 %v249_v63  ;;  %v474_v18 = vsub.f32 %v152_v43, %v442_v1  ;;  %v217_v19 = vsub.f32 %v86_v46, %v185_v6  ;;  %v411_v15 = vfloor.f32 %v379_v7 }
  0x6f   :  { %v1250_v14 = vpop.eup %1249  ;;  %v122_v20 = vmul.f32 0.015625, %v87_v8  ;;  %v956_v23 = vmul.f32 2.0, %v924_v62  ;;  %1259 = vpow2.f32 %v650_v9  ;;  %v845_v56 = vmul.f32 1.442695, %v799_v60  ;;  %v24_v60 = vld [vmem:[%s2101_s0 + $0x80] sm:$0xff] }
  0x70   :  { %v1252_v22 = vpop.eup %1251  ;;  %v313_v24 = vmul.f32 8.0, %v281_v12  ;;  %v698_v25 = vadd.f32 1.0, %v1250_v14  ;;  %vm506_vm9 = vcmp.eq.f32.partialorder %v474_v18, 1.0  ;;  %v250_v26 = vmul.f32 0.125, %v217_v19 }
  0x71   :  { %v443_v27 = vmul.f32 2.0, %v411_v15  ;;  %v154_v28 = vfloor.f32 %v122_v20  ;;  %v1118_v17 = vsel %vm1075_vm7, %v956_v23, %v1086_v10  ;;  %v538_v29 = vsel %vm506_vm9, 18.5, %v1371_v0 }
  0x72   :  { %v345_v21 = vsub.f32 %v216_v54, %v313_v24  ;;  %v570_v30 = vsel %vm506_vm9, 29.0, %v1372_v2  ;;  %1151 = vst.msk [vmem:[%s2102_s1 + $0x50] sm:$0xff] %vm1140_vm8, %v1118_v17  ;;  %1261 = vrcp.f32 %v698_v25  ;;  %v282_v33 = vfloor.f32 %v250_v26 }
  0x73   :  { %v1254_v31 = vpop.eup %1253  ;;  %v991_v32 = vsel %vm978_vm3, %v538_v29, %v570_v30  ;;  %v475_v34 = vsub.f32 %v153_v16, %v443_v27  ;;  %v186_v43 = vmul.f32 64.0, %v154_v28  ;;  %v380_v44 = vmul.f32 0.5, %v154_v28 }
  0x74   :  { %v925_v36 = vadd.f32 %v1254_v31, %v893_v45  ;;  %v1087_v37 = vsel %vm783_vm1, %v1054_v11, %v1254_v31  ;;  %v894_v38 = vsel %vm881_vm4, %v345_v21, %v281_v12  ;;  %v1023_v39 = vmul.f32 %v1252_v22, %v991_v32  ;;  %v1256_v40 = vpop.eup %1255 }
  0x75   :  { %v314_v41 = vmul.f32 8.0, %v282_v33  ;;  %vm507_vm10 = vcmp.eq.f32.partialorder %v475_v34, 1.0  ;;  %v1258_v46 = vpop.eup %1257  ;;  %v699_v51 = vadd.f32 1.0, %v1256_v40  ;;  %v218_v42 = vsub.f32 %v87_v8, %v186_v43  ;;  %v25_v40 = vld [vmem:[%s2101_s0 + $0x88] sm:$0xff] }
  0x76   :  { %v957_v47 = vmul.f32 2.0, %v925_v36  ;;  %v1055_v48 = vmul.f32 2.0, %v1023_v39  ;;  %v539_v49 = vsel %vm507_vm10, 18.5, %v1371_v0  ;;  %v571_v50 = vsel %vm507_vm10, 29.0, %v1372_v2 }
  0x77   :  { %v346_v45 = vsub.f32 %v217_v19, %v314_v41  ;;  %v992_v35 = vsel %vm978_vm3, %v539_v49, %v571_v50  ;;  %v412_v55 = vfloor.f32 %v380_v44  ;;  %1263 = vrcp.f32 %v699_v51 }
  0x78   :  { %v1119_v53 = vsel %vm1075_vm7, %v957_v47, %v1087_v37  ;;  %v1024_v54 = vmul.f32 %v1258_v46, %v992_v35  ;;  %v251_v58 = vmul.f32 0.125, %v218_v42  ;;  %v88_v16 = vcvt.s32.f32 %v1676_v59 }
  0x79   :  { %1152 = vst.msk [vmem:[%s2102_s1 + $0x58] sm:$0xff] %vm1140_vm8, %v1119_v53  ;;  %v895_v57 = vsel %vm881_vm4, %v346_v45, %v282_v33  ;;  %v1260_v61 = vpop.eup %1259  ;;  %v444_v1 = vmul.f32 2.0, %v412_v55  ;;  %1265 = vpow2.f32 %v845_v56  ;;  %v605_v3 = vsub.f32 0.0, %v23_v52 }
  0x7a   :  { %v1056_v63 = vmul.f32 2.0, %v1024_v54  ;;  %v283_v6 = vfloor.f32 %v251_v58  ;;  %v700_v7 = vadd.f32 1.0, %v1260_v61  ;;  %v123_v8 = vmul.f32 0.015625, %v88_v16 }
  0x7b   :  { %v800_v9 = vsel %vm1409_vm2, %v23_v52, 0.0  ;;  %v476_v62 = vsub.f32 %v154_v28, %v444_v1  ;;  %v652_v10 = vmul.f32 1.442695, %v605_v3  ;;  %v1717_v59 = vadd.s32 128, %v1392_v4 }
  0x7c   :  { %v847_v11 = vmul.f32 1.442695, %v800_v9  ;;  %v1262_v12 = vpop.eup %1261  ;;  %v315_v14 = vmul.f32 8.0, %v283_v6  ;;  %1267 = vrcp.f32 %v700_v7  ;;  %v155_v18 = vfloor.f32 %v123_v8 }
  0x7d   :  { %v606_v19 = vsub.f32 0.0, %v24_v60  ;;  %v926_v15 = vadd.f32 %v1262_v12, %v894_v38  ;;  %v1088_v20 = vsel %vm783_vm1, %v1055_v48, %v1262_v12  ;;  %vm508_vm11 = vcmp.eq.f32.partialorder %v476_v62, 1.0 }
  0x7e   :  { %1269 = vpow2.f32 %v652_v10  ;;  %v347_v22 = vsub.f32 %v218_v42, %v315_v14  ;;  %v540_v23 = vsel %vm508_vm11, 18.5, %v1371_v0  ;;  %v572_v24 = vsel %vm508_vm11, 29.0, %v1372_v2 }
  0x7f   :  { %v187_v25 = vmul.f32 64.0, %v155_v18  ;;  %v958_v26 = vmul.f32 2.0, %v926_v15  ;;  %v993_v27 = vsel %vm978_vm3, %v540_v23, %v572_v24  ;;  %v381_v28 = vmul.f32 0.5, %v155_v18 }
  0x80   :  { %1271 = vpow2.f32 %v847_v11  ;;  %v896_v17 = vsel %vm881_vm4, %v347_v22, %v283_v6  ;;  %v89_v29 = vcvt.s32.f32 %v1717_v59  ;;  %v654_v30 = vmul.f32 1.442695, %v606_v19 }
  0x81   :  { %v219_v21 = vsub.f32 %v88_v16, %v187_v25  ;;  %v1120_v31 = vsel %vm1075_vm7, %v958_v26, %v1088_v20  ;;  %v413_v32 = vfloor.f32 %v381_v28  ;;  %v801_v33 = vsel %vm1409_vm2, %v24_v60, 0.0  ;;  %v1264_v36 = vpop.eup %1263 }
  0x82   :  { %v58_v34 = vadd.s32 136, %v1392_v4  ;;  %1153 = vst.msk [vmem:[%s2102_s1 + $0x60] sm:$0xff] %vm1140_vm8, %v1120_v31  ;;  %v124_v38 = vmul.f32 0.015625, %v89_v29  ;;  %1273 = vpow2.f32 %v654_v30  ;;  %v849_v39 = vmul.f32 1.442695, %v801_v33 }
  0x83   :  { %v252_v37 = vmul.f32 0.125, %v219_v21  ;;  %v1266_v41 = vpop.eup %1265  ;;  %v927_v43 = vadd.f32 %v1264_v36, %v895_v57  ;;  %v1089_v44 = vsel %vm783_vm1, %v1056_v63, %v1264_v36  ;;  %v445_v46 = vmul.f32 2.0, %v413_v32 }
  0x84   :  { %v90_v47 = vcvt.s32.f32 %v58_v34  ;;  %v1025_v48 = vmul.f32 %v1266_v41, %v993_v27  ;;  %v156_v50 = vfloor.f32 %v124_v38  ;;  %1275 = vpow2.f32 %v849_v39 }
  0x85   :  { %v284_v49 = vfloor.f32 %v252_v37  ;;  %v959_v45 = vmul.f32 2.0, %v927_v43  ;;  %v477_v51 = vsub.f32 %v155_v18, %v445_v46  ;;  %v607_v42 = vsub.f32 0.0, %v25_v40 }
  0x86   :  { %v125_v35 = vmul.f32 0.015625, %v90_v47  ;;  %v1268_v52 = vpop.eup %1267  ;;  %v1057_v53 = vmul.f32 2.0, %v1025_v48  ;;  %v188_v55 = vmul.f32 64.0, %v156_v50  ;;  %v382_v56 = vmul.f32 0.5, %v156_v50 }
  0x87   :  { %v316_v54 = vmul.f32 8.0, %v284_v49  ;;  %v1121_v57 = vsel %vm1075_vm7, %v959_v45, %v1089_v44  ;;  %v928_v16 = vadd.f32 %v1268_v52, %v896_v17  ;;  %vm509_vm12 = vcmp.eq.f32.partialorder %v477_v51, 1.0  ;;  %v26_v17 = vld [vmem:[%s2101_s0 + $0x90] sm:$0xff] }
  0x88   :  { %v1270_v58 = vpop.eup %1269  ;;  %v157_v61 = vfloor.f32 %v125_v35  ;;  %1154 = vst.msk [vmem:[%s2102_s1 + $0x68] sm:$0xff] %vm1140_vm8, %v1121_v57  ;;  %v1090_v63 = vsel %vm783_vm1, %v1057_v53, %v1268_v52  ;;  %v541_v3 = vsel %vm509_vm12, 18.5, %v1371_v0  ;;  %v573_v60 = vsel %vm509_vm12, 29.0, %v1372_v2  ;;  %v27_v52 = vld [vmem:[%s2101_s0 + $0x98] sm:$0xff] }
  0x89   :  { %v348_v1 = vsub.f32 %v219_v21, %v316_v54  ;;  %v960_v7 = vmul.f32 2.0, %v928_v16  ;;  %v701_v8 = vadd.f32 1.0, %v1270_v58  ;;  %v994_v9 = vsel %vm978_vm3, %v541_v3, %v573_v60 }
  0x8a   :  { %v1272_v6 = vpop.eup %1271  ;;  %v220_v62 = vsub.f32 %v89_v29, %v188_v55  ;;  %v414_v59 = vfloor.f32 %v382_v56  ;;  %v189_v12 = vmul.f32 64.0, %v157_v61  ;;  %v383_v19 = vmul.f32 0.5, %v157_v61 }
  0x8b   :  { %v897_v10 = vsel %vm881_vm4, %v348_v1, %v284_v49  ;;  %v1026_v11 = vmul.f32 %v1272_v6, %v994_v9  ;;  %v1122_v14 = vsel %vm1075_vm7, %v960_v7, %v1090_v63  ;;  %1277 = vrcp.f32 %v701_v8 }
  0x8c   :  { %v253_v18 = vmul.f32 0.125, %v220_v62  ;;  %v1274_v15 = vpop.eup %1273  ;;  %1155 = vst.msk [vmem:[%s2102_s1 + $0x70] sm:$0xff] %vm1140_vm8, %v1122_v14  ;;  %v446_v22 = vmul.f32 2.0, %v414_v59  ;;  %v221_v23 = vsub.f32 %v90_v47, %v189_v12  ;;  %v656_v24 = vmul.f32 1.442695, %v607_v42 }
  0x8d   :  { %v1058_v20 = vmul.f32 2.0, %v1026_v11  ;;  %v702_v26 = vadd.f32 1.0, %v1274_v15  ;;  %v415_v27 = vfloor.f32 %v383_v19  ;;  %v802_v28 = vsel %vm1409_vm2, %v25_v40, 0.0 }
  0x8e   :  { %v285_v25 = vfloor.f32 %v253_v18  ;;  %v1276_v21 = vpop.eup %1275  ;;  %v478_v29 = vsub.f32 %v156_v50, %v446_v22  ;;  %v254_v30 = vmul.f32 0.125, %v221_v23  ;;  %1279 = vpow2.f32 %v656_v24 }
  0x8f   :  { %v851_v31 = vmul.f32 1.442695, %v802_v28  ;;  %1281 = vrcp.f32 %v702_v26  ;;  %v447_v33 = vmul.f32 2.0, %v415_v27  ;;  %v59_v34 = vadd.s32 144, %v1392_v4 }
  0x90   :  { %v317_v32 = vmul.f32 8.0, %v285_v25  ;;  %vm510_vm13 = vcmp.eq.f32.partialorder %v478_v29, 1.0  ;;  %v286_v36 = vfloor.f32 %v254_v30  ;;  %v608_v37 = vsub.f32 0.0, %v26_v17 }
  0x91   :  { %1283 = vpow2.f32 %v851_v31  ;;  %v542_v39 = vsel %vm510_vm13, 18.5, %v1371_v0  ;;  %v574_v40 = vsel %vm510_vm13, 29.0, %v1372_v2  ;;  %v479_v41 = vsub.f32 %v157_v61, %v447_v33 }
  0x92   :  { %v349_v38 = vsub.f32 %v220_v62, %v317_v32  ;;  %v995_v43 = vsel %vm978_vm3, %v542_v39, %v574_v40  ;;  %v318_v44 = vmul.f32 8.0, %v286_v36  ;;  %v91_v46 = vcvt.s32.f32 %v59_v34 }
  0x93   :  { %v658_v47 = vmul.f32 1.442695, %v608_v37  ;;  %v1027_v49 = vmul.f32 %v1276_v21, %v995_v43  ;;  %vm511_vm14 = vcmp.eq.f32.partialorder %v479_v41, 1.0  ;;  %v803_v50 = vsel %vm1409_vm2, %v26_v17, 0.0 }
  0x94   :  { %v898_v48 = vsel %vm881_vm4, %v349_v38, %v285_v25  ;;  %v350_v45 = vsub.f32 %v221_v23, %v318_v44  ;;  %v543_v51 = vsel %vm511_vm14, 18.5, %v1371_v0  ;;  %v575_v35 = vsel %vm511_vm14, 29.0, %v1372_v2  ;;  %v28_v25 = vld [vmem:[%s2101_s0 + $0xa0] sm:$0xff] }
  0x95   :  { %v126_v42 = vmul.f32 0.015625, %v91_v46  ;;  %v1278_v53 = vpop.eup %1277  ;;  %v1059_v54 = vmul.f32 2.0, %v1027_v49  ;;  %v996_v55 = vsel %vm978_vm3, %v543_v51, %v575_v35  ;;  %1285 = vpow2.f32 %v658_v47 }
  0x96   :  { %v853_v56 = vmul.f32 1.442695, %v803_v50  ;;  %v929_v58 = vadd.f32 %v1278_v53, %v897_v10  ;;  %v1091_v57 = vsel %vm783_vm1, %v1058_v20, %v1278_v53  ;;  %v1787_v16 = vsel %vm881_vm4, %v350_v45, %v286_v36 }
  0x97   :  { %v158_v61 = vfloor.f32 %v126_v42  ;;  %v60_v63 = vadd.s32 152, %v1392_v4  ;;  %v609_v1 = vsub.f32 0.0, %v27_v52  ;;  %v804_v3 = vsel %vm1409_vm2, %v27_v52, 0.0 }
  0x98   :  { %1287 = vpow2.f32 %v853_v56  ;;  %v1280_v60 = vpop.eup %1279  ;;  %v961_v6 = vmul.f32 2.0, %v929_v58  ;;  %v855_v9 = vmul.f32 1.442695, %v804_v3  ;;  %v61_v12 = vadd.s32 160, %v1392_v4 }
  0x99   :  { %v190_v7 = vmul.f32 64.0, %v158_v61  ;;  %v384_v8 = vmul.f32 0.5, %v158_v61  ;;  %v1282_v62 = vpop.eup %1281  ;;  %v703_v10 = vadd.f32 1.0, %v1280_v60  ;;  %v92_v11 = vcvt.s32.f32 %v60_v63 }
  0x9a   :  { %v660_v59 = vmul.f32 1.442695, %v609_v1  ;;  %v1123_v18 = vsel %vm1075_vm7, %v961_v6, %v1091_v57  ;;  %v930_v19 = vadd.f32 %v1282_v62, %v898_v48  ;;  %v1092_v15 = vsel %vm783_vm1, %v1059_v54, %v1282_v62 }
  0x9b   :  { %v1284_v14 = vpop.eup %1283  ;;  %v222_v20 = vsub.f32 %v91_v46, %v190_v7  ;;  %1156 = vst.msk [vmem:[%s2102_s1 + $0x78] sm:$0xff] %vm1140_vm8, %v1123_v18  ;;  %1289 = vrcp.f32 %v703_v10  ;;  %v416_v23 = vfloor.f32 %v384_v8  ;;  %v127_v24 = vmul.f32 0.015625, %v92_v11 }
  0x9c   :  { %v1028_v22 = vmul.f32 %v1284_v14, %v996_v55  ;;  %v962_v26 = vmul.f32 2.0, %v930_v19  ;;  %1291 = vpow2.f32 %v660_v59  ;;  %v93_v28 = vcvt.s32.f32 %v61_v12 }
  0x9d   :  { %v255_v27 = vmul.f32 0.125, %v222_v20  ;;  %v448_v21 = vmul.f32 2.0, %v416_v23  ;;  %v159_v29 = vfloor.f32 %v127_v24  ;;  %1293 = vpow2.f32 %v855_v9 }
  0x9e   :  { %v1060_v17 = vmul.f32 2.0, %v1028_v22  ;;  %v1124_v30 = vsel %vm1075_vm7, %v962_v26, %v1092_v15  ;;  %v128_v32 = vmul.f32 0.015625, %v93_v28  ;;  %v610_v33 = vsub.f32 0.0, %v28_v25 }
  0x9f   :  { %v287_v31 = vfloor.f32 %v255_v27  ;;  %v1286_v34 = vpop.eup %1285  ;;  %1157 = vst.msk [vmem:[%s2102_s1 + $0x80] sm:$0xff] %vm1140_vm8, %v1124_v30  ;;  %v480_v36 = vsub.f32 %v158_v61, %v448_v21  ;;  %v191_v37 = vmul.f32 64.0, %v159_v29  ;;  %v385_v38 = vmul.f32 0.5, %v159_v29 }
  0xa0   :  { %v805_v39 = vsel %vm1409_vm2, %v28_v25, 0.0  ;;  %v704_v41 = vadd.f32 1.0, %v1286_v34  ;;  %v160_v43 = vfloor.f32 %v128_v32  ;;  %v662_v44 = vmul.f32 1.442695, %v610_v33 }
  0xa1   :  { %v319_v40 = vmul.f32 8.0, %v287_v31  ;;  %vm512_vm15 = vcmp.eq.f32.partialorder %v480_v36, 1.0  ;;  %v223_v47 = vsub.f32 %v92_v11, %v191_v37  ;;  %v417_v48 = vfloor.f32 %v385_v38 }
  0xa2   :  { %v1288_v46 = vpop.eup %1287  ;;  %v857_v49 = vmul.f32 1.442695, %v805_v39  ;;  %v544_v45 = vsel %vm512_vm15, 18.5, %v1371_v0  ;;  %v576_v51 = vsel %vm512_vm15, 29.0, %v1372_v2  ;;  %1295 = vrcp.f32 %v704_v41 }
  0xa3   :  { %v351_v50 = vsub.f32 %v222_v20, %v319_v40  ;;  %v997_v35 = vsel %vm978_vm3, %v544_v45, %v576_v51  ;;  %v256_v42 = vmul.f32 0.125, %v223_v47  ;;  %v449_v52 = vmul.f32 2.0, %v417_v48  ;;  %v30_v40 = vld [vmem:[%s2101_s0 + $0xb0] sm:$0xff]  ;;  %v31_v45 = vld [vmem:[%s2101_s0 + $0xb8] sm:$0xff] }
  0xa4   :  { %v192_v53 = vmul.f32 64.0, %v160_v43  ;;  %v1029_v55 = vmul.f32 %v1288_v46, %v997_v35  ;;  %v386_v56 = vmul.f32 0.5, %v160_v43  ;;  %1297 = vpow2.f32 %v662_v44 }
  0xa5   :  { %v900_v54 = vsel %vm881_vm4, %v351_v50, %v287_v31  ;;  %v1290_v58 = vpop.eup %1289  ;;  %v288_v57 = vfloor.f32 %v256_v42  ;;  %v481_v61 = vsub.f32 %v159_v29, %v449_v52  ;;  %1299 = vpow2.f32 %v857_v49 }
  0xa6   :  { %v224_v63 = vsub.f32 %v93_v28, %v192_v53  ;;  %v1292_v1 = vpop.eup %1291  ;;  %v931_v3 = vadd.f32 %v1290_v58, %v1787_v16  ;;  %v1093_v60 = vsel %vm783_vm1, %v1060_v17, %v1290_v58  ;;  %v1061_v6 = vmul.f32 2.0, %v1029_v55  ;;  %v29_v16 = vld [vmem:[%s2101_s0 + $0xa8] sm:$0xff] }
  0xa7   :  { %v418_v7 = vfloor.f32 %v386_v56  ;;  %v1294_v8 = vpop.eup %1293  ;;  %v320_v9 = vmul.f32 8.0, %v288_v57  ;;  %vm513_vm0 = vcmp.eq.f32.partialorder %v481_v61, 1.0  ;;  %v705_v62 = vadd.f32 1.0, %v1292_v1 }
  0xa8   :  { %v257_v10 = vmul.f32 0.125, %v224_v63  ;;  %v963_v11 = vmul.f32 2.0, %v931_v3  ;;  %v545_v59 = vsel %vm513_vm0, 18.5, %v1371_v0  ;;  %v577_v12 = vsel %vm513_vm0, 29.0, %v1372_v2 }
  0xa9   :  { %v450_v14 = vmul.f32 2.0, %v418_v7  ;;  %v352_v18 = vsub.f32 %v223_v47, %v320_v9  ;;  %1301 = vrcp.f32 %v705_v62  ;;  %v998_v19 = vsel %vm978_vm3, %v545_v59, %v577_v12 }
  0xaa   :  { %v289_v15 = vfloor.f32 %v257_v10  ;;  %v1125_v20 = vsel %vm1075_vm7, %v963_v11, %v1093_v60  ;;  %v1030_v22 = vmul.f32 %v1294_v8, %v998_v19  ;;  %v62_v24 = vadd.s32 168, %v1392_v4 }
  0xab   :  { %v482_v23 = vsub.f32 %v160_v43, %v450_v14  ;;  %1158 = vst.msk [vmem:[%s2102_s1 + $0x88] sm:$0xff] %vm1140_vm8, %v1125_v20  ;;  %v901_v25 = vsel %vm881_vm4, %v352_v18, %v288_v57  ;;  %v611_v27 = vsub.f32 0.0, %v29_v16  ;;  %v806_v28 = vsel %vm1409_vm2, %v29_v16, 0.0  ;;  %v1870_v16 = vld [vmem:[%s2101_s0 + $0xc0] sm:$0xff] }
  0xac   :  { %v321_v26 = vmul.f32 8.0, %v289_v15  ;;  %v1296_v17 = vpop.eup %1295  ;;  %v1062_v21 = vmul.f32 2.0, %v1030_v22  ;;  %v94_v29 = vcvt.s32.f32 %v62_v24  ;;  %v859_v30 = vmul.f32 1.442695, %v806_v28 }
  0xad   :  { %vm514_vm5 = vcmp.eq.f32.partialorder %v482_v23, 1.0  ;;  %v932_v31 = vadd.f32 %v1296_v17, %v900_v54  ;;  %v1094_v32 = vsel %vm783_vm1, %v1061_v6, %v1296_v17  ;;  %v664_v39 = vmul.f32 1.442695, %v611_v27 }
  0xae   :  { %v353_v33 = vsub.f32 %v224_v63, %v321_v26  ;;  %v546_v34 = vsel %vm514_vm5, 18.5, %v1371_v0  ;;  %v1298_v36 = vpop.eup %1297  ;;  %v578_v37 = vsel %vm514_vm5, 29.0, %v1372_v2  ;;  %v129_v38 = vmul.f32 0.015625, %v94_v29 }
  0xaf   :  { %1303 = vpow2.f32 %v859_v30  ;;  %v1300_v41 = vpop.eup %1299  ;;  %v964_v43 = vmul.f32 2.0, %v932_v31  ;;  %v706_v44 = vadd.f32 1.0, %v1298_v36  ;;  %v999_v47 = vsel %vm978_vm3, %v546_v34, %v578_v37 }
  0xb0   :  { %v902_v46 = vsel %vm881_vm4, %v353_v33, %v289_v15  ;;  %v1031_v48 = vmul.f32 %v1300_v41, %v999_v47  ;;  %v161_v49 = vfloor.f32 %v129_v38  ;;  %1305 = vpow2.f32 %v664_v39 }
  0xb1   :  { %v63_v50 = vadd.s32 176, %v1392_v4  ;;  %v1126_v51 = vsel %vm1075_vm7, %v964_v43, %v1094_v32  ;;  %1307 = vrcp.f32 %v706_v44  ;;  %v612_v35 = vsub.f32 0.0, %v30_v40 }
  0xb2   :  { %v807_v42 = vsel %vm1409_vm2, %v30_v40, 0.0  ;;  %1159 = vst.msk [vmem:[%s2102_s1 + $0x90] sm:$0xff] %vm1140_vm8, %v1126_v51  ;;  %v1063_v52 = vmul.f32 2.0, %v1031_v48  ;;  %v193_v53 = vmul.f32 64.0, %v161_v49  ;;  %v387_v54 = vmul.f32 0.5, %v161_v49 }
  0xb3   :  { %v95_v55 = vcvt.s32.f32 %v63_v50  ;;  %v1302_v56 = vpop.eup %1301  ;;  %v666_v58 = vmul.f32 1.442695, %v612_v35  ;;  %v861_v57 = vmul.f32 1.442695, %v807_v42  ;;  %v64_v61 = vadd.s32 184, %v1392_v4 }
  0xb4   :  { %v613_v63 = vsub.f32 0.0, %v31_v45  ;;  %v933_v1 = vadd.f32 %v1302_v56, %v901_v25  ;;  %v1095_v3 = vsel %vm783_vm1, %v1062_v21, %v1302_v56  ;;  %v225_v60 = vsub.f32 %v94_v29, %v193_v53 }
  0xb5   :  { %v419_v6 = vfloor.f32 %v387_v54  ;;  %v130_v7 = vmul.f32 0.015625, %v95_v55  ;;  %1309 = vpow2.f32 %v666_v58  ;;  %v96_v8 = vcvt.s32.f32 %v64_v61 }
  0xb6   :  { %v668_v9 = vmul.f32 1.442695, %v613_v63  ;;  %v965_v62 = vmul.f32 2.0, %v933_v1  ;;  %v258_v10 = vmul.f32 0.125, %v225_v60  ;;  %1311 = vpow2.f32 %v861_v57 }
  0xb7   :  { %v451_v11 = vmul.f32 2.0, %v419_v6  ;;  %v162_v59 = vfloor.f32 %v130_v7  ;;  %v131_v12 = vmul.f32 0.015625, %v96_v8  ;;  %v808_v14 = vsel %vm1409_vm2, %v31_v45, 0.0 }
  0xb8   :  { %1313 = vpow2.f32 %v668_v9  ;;  %v1127_v19 = vsel %vm1075_vm7, %v965_v62, %v1095_v3  ;;  %v290_v15 = vfloor.f32 %v258_v10  ;;  %v863_v22 = vmul.f32 1.442695, %v808_v14 }
  0xb9   :  { %v1304_v18 = vpop.eup %1303  ;;  %v483_v20 = vsub.f32 %v161_v49, %v451_v11  ;;  %1160 = vst.msk [vmem:[%s2102_s1 + $0x98] sm:$0xff] %vm1140_vm8, %v1127_v19  ;;  %v194_v23 = vmul.f32 64.0, %v162_v59  ;;  %v388_v24 = vmul.f32 0.5, %v162_v59  ;;  %v163_v25 = vfloor.f32 %v131_v12 }
  0xba   :  { %v1879_v26 = vadd.s32 192, %v1392_v4  ;;  %v1306_v27 = vpop.eup %1305  ;;  %v322_v28 = vmul.f32 8.0, %v290_v15  ;;  %1315 = vpow2.f32 %v863_v22  ;;  %v614_v17 = vsub.f32 0.0, %v1870_v16 }
  0xbb   :  { %vm515_vm6 = vcmp.eq.f32.partialorder %v483_v20, 1.0  ;;  %v1308_v21 = vpop.eup %1307  ;;  %v707_v31 = vadd.f32 1.0, %v1306_v27  ;;  %v226_v32 = vsub.f32 %v95_v55, %v194_v23  ;;  %v420_v40 = vfloor.f32 %v388_v24 }
  0xbc   :  { %v547_v29 = vsel %vm515_vm6, 18.5, %v1371_v0  ;;  %v579_v30 = vsel %vm515_vm6, 29.0, %v1372_v2  ;;  %v934_v33 = vadd.f32 %v1308_v21, %v902_v46  ;;  %v1096_v34 = vsel %vm783_vm1, %v1063_v52, %v1308_v21 }
  0xbd   :  { %v354_v36 = vsub.f32 %v225_v60, %v322_v28  ;;  %v1000_v37 = vsel %vm978_vm3, %v547_v29, %v579_v30  ;;  %1317 = vrcp.f32 %v707_v31  ;;  %v259_v39 = vmul.f32 0.125, %v226_v32  ;;  %v33_v28 = vld [vmem:[%s2101_s0 + $0xc8] sm:$0xff] }
  0xbe   :  { %v1032_v38 = vmul.f32 %v1304_v18, %v1000_v37  ;;  %v966_v41 = vmul.f32 2.0, %v934_v33  ;;  %v195_v44 = vmul.f32 64.0, %v163_v25  ;;  %v389_v47 = vmul.f32 0.5, %v163_v25 }
  0xbf   :  { %v903_v43 = vsel %vm881_vm4, %v354_v36, %v290_v15  ;;  %v1310_v48 = vpop.eup %1309  ;;  %v291_v46 = vfloor.f32 %v259_v39  ;;  %v452_v50 = vmul.f32 2.0, %v420_v40  ;;  %v97_v45 = vcvt.s32.f32 %v1879_v26 }
  0xc0   :  { %v1064_v49 = vmul.f32 2.0, %v1032_v38  ;;  %v1312_v51 = vpop.eup %1311  ;;  %v1128_v35 = vsel %vm1075_vm7, %v966_v41, %v1096_v34  ;;  %v708_v42 = vadd.f32 1.0, %v1310_v48  ;;  %v227_v52 = vsub.f32 %v96_v8, %v195_v44 }
  0xc1   :  { %v421_v53 = vfloor.f32 %v389_v47  ;;  %1161 = vst.msk [vmem:[%s2102_s1 + $0xa0] sm:$0xff] %vm1140_vm8, %v1128_v35  ;;  %v323_v55 = vmul.f32 8.0, %v291_v46  ;;  %v484_v56 = vsub.f32 %v162_v59, %v452_v50  ;;  %v132_v58 = vmul.f32 0.015625, %v97_v45 }
  0xc2   :  { %v1314_v54 = vpop.eup %1313  ;;  %v670_v57 = vmul.f32 1.442695, %v614_v17  ;;  %1319 = vrcp.f32 %v708_v42  ;;  %v260_v61 = vmul.f32 0.125, %v227_v52  ;;  %v809_v23 = vsel %vm1409_vm2, %v1870_v16, 0.0 }
  0xc3   :  { %v453_v63 = vmul.f32 2.0, %v421_v53  ;;  %v709_v1 = vadd.f32 1.0, %v1314_v54  ;;  %v355_v3 = vsub.f32 %v226_v32, %v323_v55  ;;  %vm516_vm9 = vcmp.eq.f32.partialorder %v484_v56, 1.0 }
  0xc4   :  { %v164_v60 = vfloor.f32 %v132_v58  ;;  %1321 = vpow2.f32 %v670_v57  ;;  %v1316_v6 = vpop.eup %1315  ;;  %v548_v7 = vsel %vm516_vm9, 18.5, %v1371_v0  ;;  %v580_v8 = vsel %vm516_vm9, 29.0, %v1372_v2 }
  0xc5   :  { %v292_v9 = vfloor.f32 %v260_v61  ;;  %v485_v62 = vsub.f32 %v163_v25, %v453_v63  ;;  %v904_v10 = vsel %vm881_vm4, %v355_v3, %v291_v46  ;;  %v1001_v11 = vsel %vm978_vm3, %v548_v7, %v580_v8  ;;  %v34_v61 = vld [vmem:[%s2101_s0 + $0xd0] sm:$0xff]  ;;  %v35_v8 = vld [vmem:[%s2101_s0 + $0xd8] sm:$0xff] }
  0xc6   :  { %1323 = vrcp.f32 %v709_v1  ;;  %v196_v59 = vmul.f32 64.0, %v164_v60  ;;  %v1033_v12 = vmul.f32 %v1312_v51, %v1001_v11  ;;  %v390_v18 = vmul.f32 0.5, %v164_v60 }
  0xc7   :  { %v324_v14 = vmul.f32 8.0, %v292_v9  ;;  %vm517_vm10 = vcmp.eq.f32.partialorder %v485_v62, 1.0  ;;  %v1318_v19 = vpop.eup %1317  ;;  %v865_v30 = vmul.f32 1.442695, %v809_v23  ;;  %v66_v33 = vadd.s32 200, %v1392_v4 }
  0xc8   :  { %v549_v15 = vsel %vm517_vm10, 18.5, %v1371_v0  ;;  %v581_v20 = vsel %vm517_vm10, 29.0, %v1372_v2  ;;  %v228_v22 = vsub.f32 %v97_v45, %v196_v59  ;;  %v935_v24 = vadd.f32 %v1318_v19, %v903_v43 }
  0xc9   :  { %v1097_v25 = vsel %vm783_vm1, %v1064_v49, %v1318_v19  ;;  %v1065_v26 = vmul.f32 2.0, %v1033_v12  ;;  %v356_v27 = vsub.f32 %v227_v52, %v324_v14  ;;  %v1002_v17 = vsel %vm978_vm3, %v549_v15, %v581_v20 }
  0xca   :  { %v261_v21 = vmul.f32 0.125, %v228_v22  ;;  %v422_v29 = vfloor.f32 %v390_v18  ;;  %v967_v31 = vmul.f32 2.0, %v935_v24  ;;  %v1034_v32 = vmul.f32 %v1316_v6, %v1002_v17 }
  0xcb   :  { %v905_v16 = vsel %vm881_vm4, %v356_v27, %v292_v9  ;;  %1325 = vpow2.f32 %v865_v30  ;;  %v615_v37 = vsub.f32 0.0, %v33_v28  ;;  %v98_v41 = vcvt.s32.f32 %v66_v33 }
  0xcc   :  { %v293_v34 = vfloor.f32 %v261_v21  ;;  %v454_v36 = vmul.f32 2.0, %v422_v29  ;;  %v1320_v38 = vpop.eup %1319  ;;  %v1129_v39 = vsel %vm1075_vm7, %v967_v31, %v1097_v25  ;;  %v1066_v40 = vmul.f32 2.0, %v1034_v32 }
  0xcd   :  { %v810_v43 = vsel %vm1409_vm2, %v33_v28, 0.0  ;;  %1162 = vst.msk [vmem:[%s2102_s1 + $0xa8] sm:$0xff] %vm1140_vm8, %v1129_v39  ;;  %v936_v47 = vadd.f32 %v1320_v38, %v904_v10  ;;  %v1098_v48 = vsel %vm783_vm1, %v1065_v26, %v1320_v38  ;;  %v133_v45 = vmul.f32 0.015625, %v98_v41 }
  0xce   :  { %v1322_v44 = vpop.eup %1321  ;;  %v325_v49 = vmul.f32 8.0, %v293_v34  ;;  %v486_v46 = vsub.f32 %v164_v60, %v454_v36  ;;  %v672_v51 = vmul.f32 1.442695, %v615_v37  ;;  %v867_v35 = vmul.f32 1.442695, %v810_v43 }
  0xcf   :  { %v710_v50 = vadd.f32 1.0, %v1322_v44  ;;  %v968_v52 = vmul.f32 2.0, %v936_v47  ;;  %v67_v54 = vadd.s32 208, %v1392_v4  ;;  %v165_v6 = vfloor.f32 %v133_v45 }
  0xd0   :  { %v1324_v42 = vpop.eup %1323  ;;  %v357_v53 = vsub.f32 %v228_v22, %v325_v49  ;;  %vm518_vm11 = vcmp.eq.f32.partialorder %v486_v46, 1.0  ;;  %v616_v9 = vsub.f32 0.0, %v34_v61  ;;  %v811_v62 = vsel %vm1409_vm2, %v34_v61, 0.0 }
  0xd1   :  { %v937_v55 = vadd.f32 %v1324_v42, %v905_v16  ;;  %v1099_v56 = vsel %vm783_vm1, %v1066_v40, %v1324_v42  ;;  %v550_v58 = vsel %vm518_vm11, 18.5, %v1371_v0  ;;  %v582_v57 = vsel %vm518_vm11, 29.0, %v1372_v2 }
  0xd2   :  { %v1130_v63 = vsel %vm1075_vm7, %v968_v52, %v1098_v48  ;;  %1327 = vrcp.f32 %v710_v50  ;;  %v906_v1 = vsel %vm881_vm4, %v357_v53, %v293_v34  ;;  %v1003_v3 = vsel %vm978_vm3, %v550_v58, %v582_v57 }
  0xd3   :  { %1163 = vst.msk [vmem:[%s2102_s1 + $0xb0] sm:$0xff] %vm1140_vm8, %v1130_v63  ;;  %v969_v60 = vmul.f32 2.0, %v937_v55  ;;  %1329 = vpow2.f32 %v672_v51  ;;  %v99_v7 = vcvt.s32.f32 %v67_v54  ;;  %v68_v10 = vadd.s32 216, %v1392_v4 }
  0xd4   :  { %1331 = vpow2.f32 %v867_v35  ;;  %v197_v59 = vmul.f32 64.0, %v165_v6  ;;  %v391_v12 = vmul.f32 0.5, %v165_v6  ;;  %v674_v19 = vmul.f32 1.442695, %v616_v9 }
  0xd5   :  { %v1131_v11 = vsel %vm1075_vm7, %v969_v60, %v1099_v56  ;;  %v134_v14 = vmul.f32 0.015625, %v99_v7  ;;  %v1326_v18 = vpop.eup %1325  ;;  %v869_v15 = vmul.f32 1.442695, %v811_v62  ;;  %v100_v20 = vcvt.s32.f32 %v68_v10  ;;  %v36_v56 = vld [vmem:[%s2101_s0 + $0xe0] sm:$0xff] }
  0xd6   :  { %1164 = vst.msk [vmem:[%s2102_s1 + $0xb8] sm:$0xff] %vm1140_vm8, %v1131_v11  ;;  %v617_v22 = vsub.f32 0.0, %v35_v8  ;;  %v1035_v23 = vmul.f32 %v1326_v18, %v1003_v3  ;;  %v229_v24 = vsub.f32 %v98_v41, %v197_v59  ;;  %v423_v25 = vfloor.f32 %v391_v12 }
  0xd7   :  { %v166_v26 = vfloor.f32 %v134_v14  ;;  %1333 = vpow2.f32 %v674_v19  ;;  %v135_v27 = vmul.f32 0.015625, %v100_v20  ;;  %v812_v17 = vsel %vm1409_vm2, %v35_v8, 0.0 }
  0xd8   :  { %v676_v28 = vmul.f32 1.442695, %v617_v22  ;;  %v1067_v21 = vmul.f32 2.0, %v1035_v23  ;;  %v262_v29 = vmul.f32 0.125, %v229_v24  ;;  %v455_v30 = vmul.f32 2.0, %v423_v25 }
  0xd9   :  { %v198_v31 = vmul.f32 64.0, %v166_v26  ;;  %v392_v16 = vmul.f32 0.5, %v166_v26  ;;  %1335 = vpow2.f32 %v869_v15  ;;  %v167_v32 = vfloor.f32 %v135_v27 }
  0xda   :  { %v871_v33 = vmul.f32 1.442695, %v812_v17  ;;  %v294_v34 = vfloor.f32 %v262_v29  ;;  %v487_v36 = vsub.f32 %v165_v6, %v455_v30  ;;  %1337 = vpow2.f32 %v676_v28 }
  0xdb   :  { %v230_v37 = vsub.f32 %v99_v7, %v198_v31  ;;  %v424_v39 = vfloor.f32 %v392_v16  ;;  %v199_v40 = vmul.f32 64.0, %v167_v32  ;;  %v393_v41 = vmul.f32 0.5, %v167_v32 }
  0xdc   :  { %v1328_v38 = vpop.eup %1327  ;;  %1339 = vpow2.f32 %v871_v33  ;;  %v326_v48 = vmul.f32 8.0, %v294_v34  ;;  %vm519_vm12 = vcmp.eq.f32.partialorder %v487_v36, 1.0  ;;  %v69_v7 = vadd.s32 224, %v1392_v4 }
  0xdd   :  { %v1330_v43 = vpop.eup %1329  ;;  %v938_v44 = vadd.f32 %v1328_v38, %v906_v1  ;;  %v1100_v47 = vsel %vm783_vm1, %v1067_v21, %v1328_v38  ;;  %v551_v46 = vsel %vm519_vm12, 18.5, %v1371_v0  ;;  %v583_v50 = vsel %vm519_vm12, 29.0, %v1372_v2 }
  0xde   :  { %v1332_v49 = vpop.eup %1331  ;;  %v711_v45 = vadd.f32 1.0, %v1330_v43  ;;  %v263_v51 = vmul.f32 0.125, %v230_v37  ;;  %v358_v42 = vsub.f32 %v229_v24, %v326_v48  ;;  %v1004_v52 = vsel %vm978_vm3, %v551_v46, %v583_v50  ;;  %v38_v46 = vld [vmem:[%s2101_s0 + $0xf0] sm:$0xff] }
  0xdf   :  { %v970_v35 = vmul.f32 2.0, %v938_v44  ;;  %v456_v53 = vmul.f32 2.0, %v424_v39  ;;  %v231_v55 = vsub.f32 %v100_v20, %v199_v40  ;;  %v1036_v57 = vmul.f32 %v1332_v49, %v1004_v52 }
  0xe0   :  { %1341 = vrcp.f32 %v711_v45  ;;  %v295_v54 = vfloor.f32 %v263_v51  ;;  %v425_v63 = vfloor.f32 %v393_v41  ;;  %v907_v3 = vsel %vm881_vm4, %v358_v42, %v294_v34  ;;  %v37_v34 = vld [vmem:[%s2101_s0 + $0xe8] sm:$0xff] }
  0xe1   :  { %v1132_v58 = vsel %vm1075_vm7, %v970_v35, %v1100_v47  ;;  %v488_v61 = vsub.f32 %v166_v26, %v456_v53  ;;  %v1334_v1 = vpop.eup %1333  ;;  %v264_v6 = vmul.f32 0.125, %v231_v55  ;;  %v618_v62 = vsub.f32 0.0, %v36_v56 }
  0xe2   :  { %1165 = vst.msk [vmem:[%s2102_s1 + $0xc0] sm:$0xff] %vm1140_vm8, %v1132_v58  ;;  %v327_v60 = vmul.f32 8.0, %v295_v54  ;;  %v712_v8 = vadd.f32 1.0, %v1334_v1  ;;  %v457_v9 = vmul.f32 2.0, %v425_v63  ;;  %v101_v20 = vcvt.s32.f32 %v69_v7 }
  0xe3   :  { %vm520_vm13 = vcmp.eq.f32.partialorder %v488_v61, 1.0  ;;  %v1336_v10 = vpop.eup %1335  ;;  %v296_v14 = vfloor.f32 %v264_v6  ;;  %v1068_v23 = vmul.f32 2.0, %v1036_v57  ;;  %v678_v28 = vmul.f32 1.442695, %v618_v62 }
  0xe4   :  { %v359_v11 = vsub.f32 %v230_v37, %v327_v60  ;;  %v552_v59 = vsel %vm520_vm13, 18.5, %v1371_v0  ;;  %v584_v12 = vsel %vm520_vm13, 29.0, %v1372_v2  ;;  %v1338_v18 = vpop.eup %1337  ;;  %1343 = vrcp.f32 %v712_v8 }
  0xe5   :  { %v1005_v19 = vsel %vm978_vm3, %v552_v59, %v584_v12  ;;  %v489_v15 = vsub.f32 %v167_v32, %v457_v9  ;;  %v328_v25 = vmul.f32 8.0, %v296_v14  ;;  %v713_v26 = vadd.f32 1.0, %v1338_v18 }
  0xe6   :  { %v1340_v22 = vpop.eup %1339  ;;  %v1037_v24 = vmul.f32 %v1336_v10, %v1005_v19  ;;  %v136_v27 = vmul.f32 0.015625, %v101_v20  ;;  %v813_v17 = vsel %vm1409_vm2, %v36_v56, 0.0  ;;  %v908_v21 = vsel %vm881_vm4, %v359_v11, %v295_v54 }
  0xe7   :  { %vm521_vm14 = vcmp.eq.f32.partialorder %v489_v15, 1.0  ;;  %v360_v29 = vsub.f32 %v231_v55, %v328_v25  ;;  %1345 = vrcp.f32 %v713_v26  ;;  %v873_v33 = vmul.f32 1.442695, %v813_v17 }
  0xe8   :  { %v553_v30 = vsel %vm521_vm14, 18.5, %v1371_v0  ;;  %v585_v31 = vsel %vm521_vm14, 29.0, %v1372_v2  ;;  %v168_v32 = vfloor.f32 %v136_v27  ;;  %v1069_v37 = vmul.f32 2.0, %v1037_v24 }
  0xe9   :  { %v1006_v16 = vsel %vm978_vm3, %v553_v30, %v585_v31  ;;  %v909_v38 = vsel %vm881_vm4, %v360_v29, %v296_v14  ;;  %1347 = vpow2.f32 %v678_v28  ;;  %v70_v39 = vadd.s32 232, %v1392_v4 }
  0xea   :  { %v1342_v36 = vpop.eup %1341  ;;  %v1038_v41 = vmul.f32 %v1340_v22, %v1006_v16  ;;  %v200_v43 = vmul.f32 64.0, %v168_v32  ;;  %v394_v44 = vmul.f32 0.5, %v168_v32  ;;  %1349 = vpow2.f32 %v873_v33 }
  0xeb   :  { %v939_v40 = vadd.f32 %v1342_v36, %v907_v3  ;;  %v1101_v47 = vsel %vm783_vm1, %v1068_v23, %v1342_v36  ;;  %v102_v48 = vcvt.s32.f32 %v70_v39  ;;  %v619_v49 = vsub.f32 0.0, %v37_v34 }
  0xec   :  { %v2001_v45 = vsub.f32 %v101_v20, %v200_v43  ;;  %v426_v51 = vfloor.f32 %v394_v44  ;;  %v814_v35 = vsel %vm1409_vm2, %v37_v34, 0.0  ;;  %v71_v54 = vadd.s32 240, %v1392_v4  ;;  %v39_v34 = vld [vmem:[%s2101_s0 + $0xf8] sm:$0xff] }
  0xed   :  { %v971_v50 = vmul.f32 2.0, %v939_v40  ;;  %v137_v42 = vmul.f32 0.015625, %v102_v48  ;;  %v680_v52 = vmul.f32 1.442695, %v619_v49  ;;  %v875_v53 = vmul.f32 1.442695, %v814_v35 }
  0xee   :  { %v1344_v55 = vpop.eup %1343  ;;  %v2009_v58 = vmul.f32 0.125, %v2001_v45  ;;  %v458_v57 = vmul.f32 2.0, %v426_v51  ;;  %v620_v61 = vsub.f32 0.0, %v38_v46  ;;  %v1070_v1 = vmul.f32 2.0, %v1038_v41 }
  0xef   :  { %v1133_v56 = vsel %vm1075_vm7, %v971_v50, %v1101_v47  ;;  %v940_v63 = vadd.f32 %v1344_v55, %v908_v21  ;;  %v169_v3 = vfloor.f32 %v137_v42  ;;  %1351 = vpow2.f32 %v680_v52 }
  0xf0   :  { %1166 = vst.msk [vmem:[%s2102_s1 + $0xc8] sm:$0xff] %vm1140_vm8, %v1133_v56  ;;  %v1102_v60 = vsel %vm783_vm1, %v1069_v37, %v1344_v55  ;;  %v297_v6 = vfloor.f32 %v2009_v58  ;;  %v490_v7 = vsub.f32 %v168_v32, %v458_v57  ;;  %v103_v8 = vcvt.s32.f32 %v71_v54 }
  0xf1   :  { %v972_v9 = vmul.f32 2.0, %v940_v63  ;;  %v201_v62 = vmul.f32 64.0, %v169_v3  ;;  %v395_v10 = vmul.f32 0.5, %v169_v3  ;;  %v1346_v11 = vpop.eup %1345  ;;  %1353 = vpow2.f32 %v875_v53 }
  0xf2   :  { %vm522_vm15 = vcmp.eq.f32.partialorder %v490_v7, 1.0  ;;  %v138_v59 = vmul.f32 0.015625, %v103_v8  ;;  %v682_v12 = vmul.f32 1.442695, %v620_v61  ;;  %v941_v19 = vadd.f32 %v1346_v11, %v909_v38 }
  0xf3   :  { %v1348_v14 = vpop.eup %1347  ;;  %v1134_v18 = vsel %vm1075_vm7, %v972_v9, %v1102_v60  ;;  %v329_v15 = vmul.f32 8.0, %v297_v6  ;;  %v554_v20 = vsel %vm522_vm15, 18.5, %v1371_v0  ;;  %v1103_v22 = vsel %vm783_vm1, %v1070_v1, %v1346_v11 }
  0xf4   :  { %1167 = vst.msk [vmem:[%s2102_s1 + $0xd0] sm:$0xff] %vm1140_vm8, %v1134_v18  ;;  %v586_v23 = vsel %vm522_vm15, 29.0, %v1372_v2  ;;  %v714_v24 = vadd.f32 1.0, %v1348_v14  ;;  %v233_v25 = vsub.f32 %v102_v48, %v201_v62  ;;  %v1350_v26 = vpop.eup %1349  ;;  %v973_v27 = vmul.f32 2.0, %v941_v19 }
  0xf5   :  { %v427_v28 = vfloor.f32 %v395_v10  ;;  %v170_v17 = vfloor.f32 %v138_v59  ;;  %v815_v21 = vsel %vm1409_vm2, %v38_v46, 0.0  ;;  %v1007_v29 = vsel %vm978_vm3, %v554_v20, %v586_v23 }
  0xf6   :  { %1355 = vrcp.f32 %v714_v24  ;;  %v266_v30 = vmul.f32 0.125, %v233_v25  ;;  %v1135_v31 = vsel %vm1075_vm7, %v973_v27, %v1103_v22  ;;  %v361_v36 = vsub.f32 %v2001_v45, %v329_v15 }
  0xf7   :  { %v459_v16 = vmul.f32 2.0, %v427_v28  ;;  %v202_v32 = vmul.f32 64.0, %v170_v17  ;;  %v396_v33 = vmul.f32 0.5, %v170_v17  ;;  %1168 = vst.msk [vmem:[%s2102_s1 + $0xd8] sm:$0xff] %vm1140_vm8, %v1135_v31  ;;  %1357 = vpow2.f32 %v682_v12 }
  0xf8   :  { %v298_v37 = vfloor.f32 %v266_v30  ;;  %v877_v38 = vmul.f32 1.442695, %v815_v21  ;;  %v72_v44 = vadd.s32 248, %v1392_v4  ;;  %v1039_v47 = vmul.f32 %v1350_v26, %v1007_v29 }
  0xf9   :  { %v1352_v39 = vpop.eup %1351  ;;  %v491_v40 = vsub.f32 %v169_v3, %v459_v16  ;;  %v2042_v41 = vsub.f32 %v103_v8, %v202_v32  ;;  %v428_v43 = vfloor.f32 %v396_v33  ;;  %v621_v46 = vsub.f32 0.0, %v39_v34 }
  0xfa   :  { %v330_v48 = vmul.f32 8.0, %v298_v37  ;;  %v715_v49 = vadd.f32 1.0, %v1352_v39  ;;  %1359 = vpow2.f32 %v877_v38  ;;  %v104_v51 = vcvt.s32.f32 %v72_v44 }
  0xfb   :  { %vm523_vm0 = vcmp.eq.f32.partialorder %v491_v40, 1.0  ;;  %v460_v50 = vmul.f32 2.0, %v428_v43  ;;  %v1354_v35 = vpop.eup %1353  ;;  %v910_v45 = vsel %vm881_vm4, %v361_v36, %v297_v6  ;;  %v267_v53 = vmul.f32 0.125, %v2042_v41 }
  0xfc   :  { %v555_v42 = vsel %vm523_vm0, 18.5, %v1371_v0  ;;  %v587_v52 = vsel %vm523_vm0, 29.0, %v1372_v2  ;;  %1361 = vrcp.f32 %v715_v49  ;;  %v139_v55 = vmul.f32 0.015625, %v104_v51 }
  0xfd   :  { %v1008_v4 = vsel %vm978_vm3, %v555_v42, %v587_v52  ;;  %v492_v54 = vsub.f32 %v170_v17, %v460_v50  ;;  %v1071_v56 = vmul.f32 2.0, %v1039_v47  ;;  %v362_v58 = vsub.f32 %v233_v25, %v330_v48 }
  0xfe   :  { %v684_v57 = vmul.f32 1.442695, %v621_v46  ;;  %v816_v61 = vsel %vm1409_vm2, %v39_v34, 0.0  ;;  %v171_v63 = vfloor.f32 %v139_v55  ;;  %v1040_v3 = vmul.f32 %v1354_v35, %v1008_v4 }
  0xff   :  { %vm524_vm5 = vcmp.eq.f32.partialorder %v492_v54, 1.0  ;;  %v879_v60 = vmul.f32 1.442695, %v816_v61  ;;  %v299_v7 = vfloor.f32 %v267_v53  ;;  %v911_v62 = vsel %vm881_vm4, %v362_v58, %v298_v37 }
 0x100   :  { %v1356_v1 = vpop.eup %1355  ;;  %1363 = vpow2.f32 %v684_v57  ;;  %v203_v10 = vmul.f32 64.0, %v171_v63  ;;  %v397_v11 = vmul.f32 0.5, %v171_v63  ;;  %v556_v13 = vsel %vm524_vm5, 18.5, %v1371_v0 }
 0x101   :  { %v942_v6 = vadd.f32 %v1356_v1, %v910_v45  ;;  %v1358_v8 = vpop.eup %1357  ;;  %v1104_v9 = vsel %vm783_vm1, %v1071_v56, %v1356_v1  ;;  %v588_v12 = vsel %vm524_vm5, 29.0, %v1372_v2  ;;  %v1072_v18 = vmul.f32 2.0, %v1040_v3 }
 0x102   :  { %v716_v14 = vadd.f32 1.0, %v1358_v8  ;;  %v235_v19 = vsub.f32 %v104_v51, %v203_v10  ;;  %v429_v15 = vfloor.f32 %v397_v11  ;;  %1365 = vpow2.f32 %v879_v60 }
 0x103   :  { %v974_v59 = vmul.f32 2.0, %v942_v6  ;;  %v331_v23 = vmul.f32 8.0, %v299_v7  ;;  %v1009_v25 = vsel %vm978_vm3, %v556_v13, %v588_v12 }
 0x104   :  { %v1360_v20 = vpop.eup %1359  ;;  %1367 = vrcp.f32 %v716_v14  ;;  %v268_v26 = vmul.f32 0.125, %v235_v19  ;;  %v461_v27 = vmul.f32 2.0, %v429_v15 }
 0x105   :  { %v1136_v22 = vsel %vm1075_vm7, %v974_v59, %v1104_v9  ;;  %v363_v30 = vsub.f32 %v2042_v41, %v331_v23  ;;  %v1041_v31 = vmul.f32 %v1360_v20, %v1009_v25 }
 0x106   :  { %v1362_v24 = vpop.eup %1361  ;;  %1169 = vst.msk [vmem:[%s2102_s1 + $0xe0] sm:$0xff] %vm1140_vm8, %v1136_v22  ;;  %v493_v21 = vsub.f32 %v171_v63, %v461_v27  ;;  %v300_v16 = vfloor.f32 %v268_v26 }
 0x107   :  { %v943_v28 = vadd.f32 %v1362_v24, %v911_v62  ;;  %v1105_v17 = vsel %vm783_vm1, %v1072_v18, %v1362_v24  ;;  %v912_v38 = vsel %vm881_vm4, %v363_v30, %v299_v7  ;;  %v1073_v39 = vmul.f32 2.0, %v1041_v31 }
 0x108   :  { %vm525_vm2 = vcmp.eq.f32.partialorder %v493_v21, 1.0  ;;  %v332_v40 = vmul.f32 8.0, %v300_v16 }
 0x109   :  { %v975_v29 = vmul.f32 2.0, %v943_v28  ;;  %v557_v34 = vsel %vm525_vm2, 18.5, %v1371_v0  ;;  %v589_v36 = vsel %vm525_vm2, 29.0, %v1372_v2 }
 0x10a   :  { %v1364_v32 = vpop.eup %1363  ;;  %v1010_v43 = vsel %vm978_vm3, %v557_v34, %v589_v36  ;;  %v364_v47 = vsub.f32 %v235_v19, %v332_v40 }
 0x10b   :  { %v1137_v33 = vsel %vm1075_vm7, %v975_v29, %v1105_v17  ;;  %v717_v37 = vadd.f32 1.0, %v1364_v32 }
 0x10c   :  { %1170 = vst.msk [vmem:[%s2102_s1 + $0xe8] sm:$0xff] %vm1140_vm8, %v1137_v33  ;;  %v1366_v41 = vpop.eup %1365  ;;  %v913_v50 = vsel %vm881_vm4, %v364_v47, %v300_v16 }
 0x10d   :  { %1369 = vrcp.f32 %v717_v37  ;;  %v1042_v48 = vmul.f32 %v1366_v41, %v1010_v43 }
 0x10e   :  { %v1368_v44 = vpop.eup %1367 }
 0x10f   :  { %v944_v0 = vadd.f32 %v1368_v44, %v912_v38  ;;  %v1106_v2 = vsel %vm783_vm1, %v1073_v39, %v1368_v44  ;;  %v1074_v51 = vmul.f32 2.0, %v1042_v48 }
 0x111   :  { %v976_v49 = vmul.f32 2.0, %v944_v0 }
 0x113   :  { %v1138_v46 = vsel %vm1075_vm7, %v976_v49, %v1106_v2 }
 0x114   :  { %1171 = vst.msk [vmem:[%s2102_s1 + $0xf0] sm:$0xff] %vm1140_vm8, %v1138_v46 }
 0x117   :  { %v1370_v35 = vpop.eup %1369 }
 0x118   :  { %v945_v45 = vadd.f32 %v1370_v35, %v913_v50  ;;  %v1107_v42 = vsel %vm783_vm1, %v1074_v51, %v1370_v35 }
 0x11a   :  { %v977_v52 = vmul.f32 2.0, %v945_v45 }
 0x11c   :  { %v1139_v4 = vsel %vm1075_vm7, %v977_v52, %v1107_v42 }
 0x11d   :  { %1172 = vst.msk [vmem:[%s2102_s1 + $0xf8] sm:$0xff] %vm1140_vm8, %v1139_v4 }

// kernel: _lambda_.14
= control target key start
LH: loop header
LB: loop body
LE: loop exit
PB: predicated region body
PF: predicated region fallthrough
CT: control target
= control target key end

     0   :  { %v16_v0 = vlaneseq  ;;  %vm300_vm8 = vcmask 56320   ;;  %s579_s0 = inlined_call_operand.vmem [shape: f32[64,7], index: 0, kind: input, shape index: {}]   ;;  %s580_s1 = inlined_call_operand.vmem [shape: f32[64,7], index: 1, kind: output, shape index: {}]  }
   0x1   :  { %v8_v1 = vld [vmem:[%s579_s0] sm:$0xff]  ;;  %v9_v2 = vld [vmem:[%s579_s0 + $0x8] sm:$0xff]  ;;  %v10_v3 = vld [vmem:[%s579_s0 + $0x10] sm:$0xff] }
   0x2   :  { %v384_v4 = vshrl.u32 %v16_v0, 7  ;;  %v386_v5 = vand.u32 127, %v16_v0  ;;  %v158_v6 = vsub.f32 0.0, %v8_v1  ;;  %v159_v7 = vsub.f32 0.0, %v9_v2  ;;  %v11_v8 = vld [vmem:[%s579_s0 + $0x18] sm:$0xff]  ;;  %v394_v9 = vld [vmem:[%s579_s0 + $0x20] sm:$0xff] }
   0x3   :  { %v160_v10 = vsub.f32 0.0, %v10_v3  ;;  %v161_v15 = vsub.f32 0.0, %v11_v8  ;;  %v162_v16 = vsub.f32 0.0, %v394_v9  ;;  %v363_v0 = vmov 2.5  }
   0x4   :  { %v25_v11 = vcvt.s32.f32 %v384_v4  ;;  %v166_v12 = vmul.f32 1.442695, %v158_v6  ;;  %vm206_vm0 = vcmp.ge.s32.totalorder %v386_v5, 2  ;;  %vm207_vm1 = vcmp.lt.s32.totalorder %v386_v5, 4 }
   0x5   :  { %vm401_vm2 = vmand %vm206_vm0, %vm207_vm1  ;;  %v18_v14 = vadd.s32 8, %v384_v4  ;;  %v168_v19 = vmul.f32 1.442695, %v159_v7  ;;  %v19_v23 = vadd.s32 16, %v384_v4  ;;  %v170_v26 = vmul.f32 1.442695, %v160_v10 }
   0x6   :  { %v36_v17 = vmul.f32 0.0625, %v25_v11  ;;  %315 = vpow2.f32 %v166_v12  ;;  %v209_v18 = vsel %vm401_vm2, %v8_v1, 0.0  ;;  %v210_v22 = vsel %vm401_vm2, %v9_v2, 0.0 }
   0x7   :  { %v217_v20 = vmul.f32 1.442695, %v209_v18  ;;  %v26_v21 = vcvt.s32.f32 %v18_v14  ;;  %317 = vpow2.f32 %v168_v19  ;;  %v219_v25 = vmul.f32 1.442695, %v210_v22 }
   0x8   :  { %v44_v24 = vfloor.f32 %v36_v17  ;;  %vm258_vm3 = vcmp.eq.s32.totalorder %v386_v5, 2  ;;  %v27_v28 = vcvt.s32.f32 %v19_v23  ;;  %v211_v29 = vsel %vm401_vm2, %v10_v3, 0.0 }
   0x9   :  { %319 = vpow2.f32 %v217_v20  ;;  %v37_v27 = vmul.f32 0.0625, %v26_v21  ;;  %v221_v32 = vmul.f32 1.442695, %v211_v29  ;;  %vm233_vm4 = vcmp.eq.s32.totalorder %v386_v5, 0 }
   0xa   :  { %v52_v30 = vmul.f32 16.0, %v44_v24  ;;  %v102_v31 = vmul.f32 0.5, %v44_v24  ;;  %321 = vpow2.f32 %v219_v25  ;;  %v38_v34 = vmul.f32 0.0625, %v27_v28 }
   0xb   :  { %v45_v33 = vfloor.f32 %v37_v27  ;;  %323 = vpow2.f32 %v170_v26  ;;  %v417_v35 = vadd.s32 24, %v384_v4  ;;  %v172_v38 = vmul.f32 1.442695, %v161_v15 }
   0xc   :  { %v60_v36 = vsub.f32 %v25_v11, %v52_v30  ;;  %v110_v37 = vfloor.f32 %v102_v31  ;;  %325 = vpow2.f32 %v221_v32  ;;  %v46_v41 = vfloor.f32 %v38_v34 }
   0xd   :  { %v53_v39 = vmul.f32 16.0, %v45_v33  ;;  %v103_v40 = vmul.f32 0.5, %v45_v33  ;;  %v28_v42 = vcvt.s32.f32 %v417_v35  ;;  %327 = vpow2.f32 %v172_v38 }
   0xe   :  { %v69_v43 = vmul.f32 0.25, %v60_v36  ;;  %v118_v44 = vmul.f32 2.0, %v110_v37  ;;  %v212_v45 = vsel %vm401_vm2, %v11_v8, 0.0  ;;  %v54_v48 = vmul.f32 16.0, %v46_v41 }
   0xf   :  { %v61_v46 = vsub.f32 %v26_v21, %v53_v39  ;;  %v111_v47 = vfloor.f32 %v103_v40  ;;  %v104_v49 = vmul.f32 0.5, %v46_v41  ;;  %v39_v53 = vmul.f32 0.0625, %v28_v42 }
  0x10   :  { %v316_v50 = vpop.eup %315  ;;  %v77_v51 = vfloor.f32 %v69_v43  ;;  %v126_v52 = vsub.f32 %v44_v24, %v118_v44  ;;  %v223_v54 = vmul.f32 1.442695, %v212_v45  ;;  %v424_v58 = vsub.f32 %v27_v28, %v54_v48 }
  0x11   :  { %v182_v55 = vadd.f32 1.0, %v316_v50  ;;  %v70_v56 = vmul.f32 0.25, %v61_v46  ;;  %v119_v57 = vmul.f32 2.0, %v111_v47  ;;  %v318_v59 = vpop.eup %317  ;;  %v112_v61 = vfloor.f32 %v104_v49 }
  0x12   :  { %v85_v60 = vmul.f32 4.0, %v77_v51  ;;  %vm134_vm5 = vcmp.eq.f32.partialorder %v126_v52, 1.0  ;;  %v426_v62 = vfloor.f32 %v39_v53  ;;  %v364_v2 = vmov 3.5  }
  0x13   :  { %v320_v63 = vpop.eup %319  ;;  %v142_v1 = vsel %vm134_vm5, 5.75, %v363_v0  ;;  %v150_v3 = vsel %vm134_vm5, 6.75, %v364_v2  ;;  %329 = vrcp.f32 %v182_v55  ;;  %v78_v6 = vfloor.f32 %v70_v56 }
  0x14   :  { %v322_v7 = vpop.eup %321  ;;  %v93_v8 = vsub.f32 %v60_v36, %v85_v60  ;;  %v259_v10 = vsel %vm258_vm3, %v142_v1, %v150_v3  ;;  %v127_v11 = vsub.f32 %v45_v33, %v119_v57  ;;  %v183_v12 = vadd.f32 1.0, %v318_v59 }
  0x15   :  { %v324_v14 = vpop.eup %323  ;;  %v267_v15 = vmul.f32 %v320_v63, %v259_v10  ;;  %v86_v17 = vmul.f32 4.0, %v78_v6  ;;  %v71_v18 = vmul.f32 0.25, %v424_v58  ;;  %v120_v19 = vmul.f32 2.0, %v112_v61 }
  0x16   :  { %v326_v20 = vpop.eup %325  ;;  %v234_v21 = vsel %vm233_vm4, %v93_v8, %v77_v51  ;;  %vm135_vm6 = vcmp.eq.f32.partialorder %v127_v11, 1.0  ;;  %331 = vrcp.f32 %v183_v12  ;;  %v184_v22 = vadd.f32 1.0, %v324_v14 }
  0x17   :  { %v275_v23 = vmul.f32 4.0, %v267_v15  ;;  %vm283_vm7 = vcmp.lt.s32.totalorder %v386_v5, 2  ;;  %v94_v24 = vsub.f32 %v61_v46, %v86_v17  ;;  %v143_v25 = vsel %vm135_vm6, 5.75, %v363_v0  ;;  %v328_v27 = vpop.eup %327 }
  0x18   :  { %v151_v26 = vsel %vm135_vm6, 6.75, %v364_v2  ;;  %v79_v29 = vfloor.f32 %v71_v18  ;;  %v128_v30 = vsub.f32 %v46_v41, %v120_v19  ;;  %333 = vrcp.f32 %v184_v22  ;;  %v13_v18 = vld [vmem:[%s579_s0 + $0x28] sm:$0xff] }
  0x19   :  { %v260_v28 = vsel %vm258_vm3, %v143_v25, %v151_v26  ;;  %v235_v31 = vsel %vm233_vm4, %v94_v24, %v78_v6  ;;  %v55_v33 = vmul.f32 16.0, %v426_v62  ;;  %v105_v34 = vmul.f32 0.5, %v426_v62 }
  0x1a   :  { %v268_v32 = vmul.f32 %v322_v7, %v260_v28  ;;  %v87_v36 = vmul.f32 4.0, %v79_v29  ;;  %vm136_vm9 = vcmp.eq.f32.partialorder %v128_v30, 1.0  ;;  %v185_v37 = vadd.f32 1.0, %v328_v27 }
  0x1b   :  { %335 = vpow2.f32 %v223_v54  ;;  %v144_v39 = vsel %vm136_vm9, 5.75, %v363_v0  ;;  %v152_v40 = vsel %vm136_vm9, 6.75, %v364_v2  ;;  %v63_v41 = vsub.f32 %v28_v42, %v55_v33 }
  0x1c   :  { %v276_v38 = vmul.f32 4.0, %v268_v32  ;;  %v95_v43 = vsub.f32 %v424_v58, %v87_v36  ;;  %v261_v44 = vsel %vm258_vm3, %v144_v39, %v152_v40  ;;  %v113_v45 = vfloor.f32 %v105_v34 }
  0x1d   :  { %337 = vrcp.f32 %v185_v37  ;;  %v330_v46 = vpop.eup %329  ;;  %v269_v47 = vmul.f32 %v326_v20, %v261_v44  ;;  %v72_v48 = vmul.f32 0.25, %v63_v41  ;;  %v21_v49 = vadd.s32 32, %v384_v4 }
  0x1e   :  { %v174_v50 = vmul.f32 1.442695, %v162_v16  ;;  %v242_v51 = vadd.f32 %v330_v46, %v234_v21  ;;  %v284_v35 = vsel %vm207_vm1, %v275_v23, %v330_v46  ;;  %v236_v42 = vsel %vm233_vm4, %v95_v43, %v79_v29 }
  0x1f   :  { %v121_v52 = vmul.f32 2.0, %v113_v45  ;;  %v277_v53 = vmul.f32 4.0, %v269_v47  ;;  %v80_v54 = vfloor.f32 %v72_v48  ;;  %v29_v55 = vcvt.s32.f32 %v21_v49  ;;  %v14_v47 = vld [vmem:[%s579_s0 + $0x30] sm:$0xff] }
  0x20   :  { %339 = vpow2.f32 %v174_v50  ;;  %v332_v56 = vpop.eup %331  ;;  %v250_v57 = vmul.f32 4.0, %v242_v51  ;;  %v213_v16 = vsel %vm401_vm2, %v394_v9, 0.0  ;;  %v22_v59 = vadd.s32 40, %v384_v4 }
  0x21   :  { %v129_v58 = vsub.f32 %v426_v62, %v121_v52  ;;  %v243_v60 = vadd.f32 %v332_v56, %v235_v31  ;;  %v285_v61 = vsel %vm207_vm1, %v276_v38, %v332_v56  ;;  %v88_v63 = vmul.f32 4.0, %v80_v54 }
  0x22   :  { %v40_v1 = vmul.f32 0.0625, %v29_v55  ;;  %v334_v3 = vpop.eup %333  ;;  %v292_v6 = vsel %vm283_vm7, %v250_v57, %v284_v35  ;;  %v225_v7 = vmul.f32 1.442695, %v213_v16  ;;  %v30_v8 = vcvt.s32.f32 %v22_v59 }
  0x23   :  { %vm137_vm10 = vcmp.eq.f32.partialorder %v129_v58, 1.0  ;;  %301 = vst.msk [vmem:[%s580_s1] sm:$0xff] %vm300_vm8, %v292_v6  ;;  %v251_v9 = vmul.f32 4.0, %v243_v60  ;;  %v244_v62 = vadd.f32 %v334_v3, %v236_v42  ;;  %v286_v10 = vsel %vm207_vm1, %v277_v53, %v334_v3 }
  0x24   :  { %v96_v11 = vsub.f32 %v63_v41, %v88_v63  ;;  %v145_v14 = vsel %vm137_vm10, 5.75, %v363_v0  ;;  %v153_v15 = vsel %vm137_vm10, 6.75, %v364_v2  ;;  %v48_v17 = vfloor.f32 %v40_v1 }
  0x25   :  { %v336_v12 = vpop.eup %335  ;;  %341 = vpow2.f32 %v225_v7  ;;  %v293_v19 = vsel %vm283_vm7, %v251_v9, %v285_v61  ;;  %v252_v20 = vmul.f32 4.0, %v244_v62  ;;  %v262_v22 = vsel %vm258_vm3, %v145_v14, %v153_v15 }
  0x26   :  { %v237_v21 = vsel %vm233_vm4, %v96_v11, %v80_v54  ;;  %302 = vst.msk [vmem:[%s580_s1 + $0x8] sm:$0xff] %vm300_vm8, %v293_v19  ;;  %v270_v24 = vmul.f32 %v336_v12, %v262_v22  ;;  %v56_v25 = vmul.f32 16.0, %v48_v17  ;;  %v106_v26 = vmul.f32 0.5, %v48_v17  ;;  %v15_v11 = vld [vmem:[%s579_s0 + $0x38] sm:$0xff] }
  0x27   :  { %v338_v23 = vpop.eup %337  ;;  %v41_v27 = vmul.f32 0.0625, %v30_v8  ;;  %v294_v28 = vsel %vm283_vm7, %v252_v20, %v286_v10  ;;  %v163_v30 = vsub.f32 0.0, %v13_v18  ;;  %v214_v31 = vsel %vm401_vm2, %v13_v18, 0.0 }
  0x28   :  { %v245_v29 = vadd.f32 %v338_v23, %v237_v21  ;;  %303 = vst.msk [vmem:[%s580_s1 + $0x10] sm:$0xff] %vm300_vm8, %v294_v28  ;;  %v278_v32 = vmul.f32 4.0, %v270_v24  ;;  %v64_v33 = vsub.f32 %v29_v55, %v56_v25  ;;  %v114_v34 = vfloor.f32 %v106_v26 }
  0x29   :  { %v49_v36 = vfloor.f32 %v41_v27  ;;  %v176_v39 = vmul.f32 1.442695, %v163_v30  ;;  %v227_v40 = vmul.f32 1.442695, %v214_v31  ;;  %v23_v41 = vadd.s32 48, %v384_v4 }
  0x2a   :  { %v340_v37 = vpop.eup %339  ;;  %v253_v38 = vmul.f32 4.0, %v245_v29  ;;  %v287_v43 = vsel %vm207_vm1, %v278_v32, %v338_v23  ;;  %v73_v44 = vmul.f32 0.25, %v64_v33  ;;  %v122_v45 = vmul.f32 2.0, %v114_v34 }
  0x2b   :  { %v186_v46 = vadd.f32 1.0, %v340_v37  ;;  %v57_v49 = vmul.f32 16.0, %v49_v36  ;;  %v107_v50 = vmul.f32 0.5, %v49_v36  ;;  %343 = vpow2.f32 %v176_v39 }
  0x2c   :  { %v295_v48 = vsel %vm283_vm7, %v253_v38, %v287_v43  ;;  %v81_v51 = vfloor.f32 %v73_v44  ;;  %v130_v35 = vsub.f32 %v48_v17, %v122_v45  ;;  %v31_v42 = vcvt.s32.f32 %v23_v41 }
  0x2d   :  { %304 = vst.msk [vmem:[%s580_s1 + $0x18] sm:$0xff] %vm300_vm8, %v295_v48  ;;  %345 = vrcp.f32 %v186_v46  ;;  %v508_v52 = vsub.f32 %v30_v8, %v57_v49  ;;  %v115_v53 = vfloor.f32 %v107_v50  ;;  %v164_v54 = vsub.f32 0.0, %v14_v47 }
  0x2e   :  { %347 = vpow2.f32 %v227_v40  ;;  %v89_v56 = vmul.f32 4.0, %v81_v51  ;;  %vm138_vm11 = vcmp.eq.f32.partialorder %v130_v35, 1.0  ;;  %v42_v57 = vmul.f32 0.0625, %v31_v42 }
  0x2f   :  { %v342_v55 = vpop.eup %341  ;;  %v215_v58 = vsel %vm401_vm2, %v14_v47, 0.0  ;;  %v146_v16 = vsel %vm138_vm11, 5.75, %v363_v0  ;;  %v154_v59 = vsel %vm138_vm11, 6.75, %v364_v2  ;;  %v515_v60 = vmul.f32 0.25, %v508_v52 }
  0x30   :  { %v123_v61 = vmul.f32 2.0, %v115_v53  ;;  %v97_v63 = vsub.f32 %v64_v33, %v89_v56  ;;  %v263_v1 = vsel %vm258_vm3, %v146_v16, %v154_v59  ;;  %v50_v3 = vfloor.f32 %v42_v57 }
  0x31   :  { %v178_v6 = vmul.f32 1.442695, %v164_v54  ;;  %v271_v7 = vmul.f32 %v342_v55, %v263_v1  ;;  %v229_v9 = vmul.f32 1.442695, %v215_v58  ;;  %v82_v14 = vfloor.f32 %v515_v60 }
  0x32   :  { %v131_v8 = vsub.f32 %v49_v36, %v123_v61  ;;  %v58_v62 = vmul.f32 16.0, %v50_v3  ;;  %v108_v10 = vmul.f32 0.5, %v50_v3  ;;  %v238_v12 = vsel %vm233_vm4, %v97_v63, %v81_v51 }
  0x33   :  { %349 = vpow2.f32 %v178_v6  ;;  %v279_v15 = vmul.f32 4.0, %v271_v7  ;;  %v24_v22 = vadd.s32 56, %v384_v4  ;;  %v165_v23 = vsub.f32 0.0, %v15_v11 }
  0x34   :  { %vm139_vm12 = vcmp.eq.f32.partialorder %v131_v8, 1.0  ;;  %v66_v17 = vsub.f32 %v31_v42, %v58_v62  ;;  %v116_v18 = vfloor.f32 %v108_v10  ;;  %351 = vpow2.f32 %v229_v9 }
  0x35   :  { %v344_v19 = vpop.eup %343  ;;  %v147_v20 = vsel %vm139_vm12, 5.75, %v363_v0  ;;  %v155_v21 = vsel %vm139_vm12, 6.75, %v364_v2  ;;  %v90_v30 = vmul.f32 4.0, %v82_v14  ;;  %v32_v31 = vcvt.s32.f32 %v24_v22 }
  0x36   :  { %v187_v25 = vadd.f32 1.0, %v344_v19  ;;  %v75_v26 = vmul.f32 0.25, %v66_v17  ;;  %v124_v27 = vmul.f32 2.0, %v116_v18  ;;  %v264_v33 = vsel %vm258_vm3, %v147_v20, %v155_v21 }
  0x37   :  { %v346_v24 = vpop.eup %345  ;;  %v43_v37 = vmul.f32 0.0625, %v32_v31  ;;  %v180_v4 = vmul.f32 1.442695, %v165_v23  ;;  %v216_v38 = vsel %vm401_vm2, %v15_v11, 0.0  ;;  %v98_v41 = vsub.f32 %v508_v52, %v90_v30 }
  0x38   :  { %v348_v28 = vpop.eup %347  ;;  %v246_v29 = vadd.f32 %v346_v24, %v238_v12  ;;  %v288_v32 = vsel %vm207_vm1, %v279_v15, %v346_v24  ;;  %353 = vrcp.f32 %v187_v25  ;;  %v132_v34 = vsub.f32 %v50_v3, %v124_v27 }
  0x39   :  { %v83_v39 = vfloor.f32 %v75_v26  ;;  %v272_v43 = vmul.f32 %v348_v28, %v264_v33  ;;  %v51_v44 = vfloor.f32 %v43_v37  ;;  %355 = vpow2.f32 %v180_v4 }
  0x3a   :  { %v254_v36 = vmul.f32 4.0, %v246_v29  ;;  %vm140_vm13 = vcmp.eq.f32.partialorder %v132_v34, 1.0  ;;  %v231_v47 = vmul.f32 1.442695, %v216_v38  ;;  %v239_v54 = vsel %vm233_vm4, %v98_v41, %v82_v14 }
  0x3b   :  { %v148_v46 = vsel %vm140_vm13, 5.75, %v363_v0  ;;  %v156_v13 = vsel %vm140_vm13, 6.75, %v364_v2  ;;  %v59_v49 = vmul.f32 16.0, %v51_v44  ;;  %v109_v50 = vmul.f32 0.5, %v51_v44 }
  0x3c   :  { %v296_v40 = vsel %vm283_vm7, %v254_v36, %v288_v32  ;;  %v91_v35 = vmul.f32 4.0, %v83_v39  ;;  %v265_v42 = vsel %vm258_vm3, %v148_v46, %v156_v13  ;;  %v280_v55 = vmul.f32 4.0, %v272_v43 }
  0x3d   :  { %v350_v45 = vpop.eup %349  ;;  %305 = vst.msk [vmem:[%s580_s1 + $0x20] sm:$0xff] %vm300_vm8, %v296_v40  ;;  %v67_v52 = vsub.f32 %v32_v31, %v59_v49  ;;  %v117_v53 = vfloor.f32 %v109_v50 }
  0x3e   :  { %v188_v48 = vadd.f32 1.0, %v350_v45  ;;  %v352_v51 = vpop.eup %351  ;;  %v99_v16 = vsub.f32 %v66_v17, %v91_v35 }
  0x3f   :  { %v76_v56 = vmul.f32 0.25, %v67_v52  ;;  %v125_v57 = vmul.f32 2.0, %v117_v53  ;;  %v273_v59 = vmul.f32 %v352_v51, %v265_v42 }
  0x40   :  { %357 = vrcp.f32 %v188_v48  ;;  %v240_v7 = vsel %vm233_vm4, %v99_v16, %v83_v39 }
  0x41   :  { %359 = vpow2.f32 %v231_v47  ;;  %v133_v61 = vsub.f32 %v51_v44, %v125_v57  ;;  %v84_v3 = vfloor.f32 %v76_v56  ;;  %v281_v8 = vmul.f32 4.0, %v273_v59 }
  0x42   :  { %v354_v58 = vpop.eup %353 }
  0x43   :  { %v247_v60 = vadd.f32 %v354_v58, %v239_v54  ;;  %v289_v63 = vsel %vm207_vm1, %v280_v55, %v354_v58  ;;  %vm141_vm14 = vcmp.eq.f32.partialorder %v133_v61, 1.0  ;;  %v356_v6 = vpop.eup %355  ;;  %v92_v14 = vmul.f32 4.0, %v84_v3 }
  0x44   :  { %v149_v62 = vsel %vm141_vm14, 5.75, %v363_v0  ;;  %v157_v10 = vsel %vm141_vm14, 6.75, %v364_v2  ;;  %v189_v11 = vadd.f32 1.0, %v356_v6 }
  0x45   :  { %v255_v1 = vmul.f32 4.0, %v247_v60  ;;  %v266_v18 = vsel %vm258_vm3, %v149_v62, %v157_v10  ;;  %v100_v20 = vsub.f32 %v67_v52, %v92_v14 }
  0x46   :  { %361 = vrcp.f32 %v189_v11 }
  0x47   :  { %v297_v9 = vsel %vm283_vm7, %v255_v1, %v289_v63  ;;  %v241_v22 = vsel %vm233_vm4, %v100_v20, %v84_v3 }
  0x48   :  { %306 = vst.msk [vmem:[%s580_s1 + $0x28] sm:$0xff] %vm300_vm8, %v297_v9 }
  0x4a   :  { %v358_v12 = vpop.eup %357 }
  0x4b   :  { %v360_v15 = vpop.eup %359  ;;  %v248_v17 = vadd.f32 %v358_v12, %v240_v7  ;;  %v290_v19 = vsel %vm207_vm1, %v281_v8, %v358_v12 }
  0x4c   :  { %v274_v2 = vmul.f32 %v360_v15, %v266_v18 }
  0x4d   :  { %v256_v0 = vmul.f32 4.0, %v248_v17 }
  0x4e   :  { %v282_v23 = vmul.f32 4.0, %v274_v2 }
  0x4f   :  { %v298_v21 = vsel %vm283_vm7, %v256_v0, %v290_v19 }
  0x50   :  { %307 = vst.msk [vmem:[%s580_s1 + $0x30] sm:$0xff] %vm300_vm8, %v298_v21  ;;  %v362_v24 = vpop.eup %361 }
  0x51   :  { %v249_v25 = vadd.f32 %v362_v24, %v241_v22  ;;  %v291_v26 = vsel %vm207_vm1, %v282_v23, %v362_v24 }
  0x53   :  { %v257_v27 = vmul.f32 4.0, %v249_v25 }
  0x55   :  { %v299_v28 = vsel %vm283_vm7, %v257_v27, %v291_v26 }
  0x56   :  { %308 = vst.msk [vmem:[%s580_s1 + $0x38] sm:$0xff] %vm300_vm8, %v299_v28 }

</bundles_post_ra>
